<compile_context>
chip_gen: v7x
topology: tpu7x:2x2x1
jax: 0.10.0
libtpu: 0.0.40
codegen_flags: <defaults>
</compile_context>

<pallas_src>
import jax
import jax.numpy as jnp
from jax.experimental import pallas as pl
from jax.experimental.pallas import tpu as pltpu

EPS = 1e-5
LANE = 128


def _round_up(x, m):
    return (x + m - 1) // m * m


def _pick_batch_block(n, m):
    """Images folded per grid step so the MXU M-dim is >= ~256, while keeping
    at least 2 grid steps (megacore / v7x dual-TC) when the batch allows it."""
    if m >= 256 or n <= 1:
        return 1
    target = -(-256 // m)                      # ceil(256 / m)
    divs = [d for d in range(1, n + 1) if n % d == 0]
    cand = [d for d in divs if d <= target] or [1]
    nb = max(cand)
    if n // nb < 2:                            # keep >= 2 parallel steps
        smaller = [d for d in divs if n // d >= 2]
        if smaller:
            nb = max(smaller)
    return nb


def _vmem_limit_bytes():
    """~3/4 of physical VMEM of the current generation (v5e/v6e: 96 MiB,
    v7x: 48 MiB). Falls back to a 48 MiB limit if the query is unavailable."""
    try:
        cap = int(pltpu.get_tpu_info().vmem_capacity_bytes)
    except Exception:
        cap = 64 * 1024 * 1024
    return cap * 3 // 4


# --------------------------------------------------------------------------- #
# in-kernel helper
# --------------------------------------------------------------------------- #
def _conv3x3_fused(src_bhwc, w_ref, bias_row, pad_ref, col_ref):
    """Batched 3x3 'SAME' conv of (nb, Hp, Wp, C) as ONE (nb*Hp*Wp, 9C)x(9C, Co)
    MXU matmul.

    pad_ref: VMEM (nb, Hp+2, Wp+2, C) -- only the 1-px border is zeroed, the
             interior is overwritten directly.
    col_ref: VMEM (nb, Hp, Wp, 9*C) im2col scratch; channel slots sit at
             multiples of 128 so all 9 tap stores are lane-aligned / unmasked
             and shape-matched slices of pad_ref (no per-tap relayout).
    Returns the float32 (nb*Hp*Wp, Cout_p) conv output (+ bias).
    """
    nb, Hp, Wp, C = src_bhwc.shape
    M = Hp * Wp
    dt = pad_ref.dtype
    pad_ref[:, 0:1, :, :] = jnp.zeros((nb, 1, Wp + 2, C), dt)
    pad_ref[:, Hp + 1:Hp + 2, :, :] = jnp.zeros((nb, 1, Wp + 2, C), dt)
    pad_ref[:, :, 0:1, :] = jnp.zeros((nb, Hp + 2, 1, C), dt)
    pad_ref[:, :, Wp + 1:Wp + 2, :] = jnp.zeros((nb, Hp + 2, 1, C), dt)
    pad_ref[:, 1:Hp + 1, 1:Wp + 1, :] = src_bhwc.astype(dt)

    for k in range(9):                         # lane-aligned im2col build
        dy, dx = divmod(k, 3)
        col_ref[:, :, :, k * C:(k + 1) * C] = pad_ref[:, dy:dy + Hp, dx:dx + Wp, :]

    lhs = col_ref[...].reshape(nb * M, 9 * C)  # single leading-dim reshape
    acc = jnp.dot(lhs, w_ref[...], preferred_element_type=jnp.float32)
    return acc + bias_row


# --------------------------------------------------------------------------- #
# kernels
# --------------------------------------------------------------------------- #
def _pool_conv1_kernel(x4_ref, w_ref, vec_ref, y_ref, ps_ref, pad_ref, col_ref):
    # x4_ref: (4, nb, Hp, Wp, Cin_p) -- the 4 positions of each 2x2 pool window.
    x4 = x4_ref[...]
    pooled = jnp.maximum(jnp.maximum(x4[0], x4[1]),
                         jnp.maximum(x4[2], x4[3]))           # (nb, Hp, Wp, C)
    acc = _conv3x3_fused(pooled, w_ref, vec_ref[0:1, :], pad_ref, col_ref)
    nb, M = y_ref.shape[0], y_ref.shape[1]
    y_ref[...] = acc.reshape(nb, M, acc.shape[-1]).astype(y_ref.dtype)
    # per-block BN partial sums, computed from the f32 accumulator
    ps_ref[:, 0:1, :] = jnp.sum(acc, axis=0, keepdims=True)[None]
    ps_ref[:, 1:2, :] = jnp.sum(acc * acc, axis=0, keepdims=True)[None]


def _bn1_relu_conv2_kernel(y1_ref, w_ref, vec_ref, y2_ref, ps_ref,
                           pad_ref, col_ref):
    vec = vec_ref[...]                    # rows: [scale1, shift1, conv2 bias]
    nb, Hp, Wp = pad_ref.shape[0], pad_ref.shape[1] - 2, pad_ref.shape[2] - 2
    h = jnp.maximum(y1_ref[...].astype(jnp.float32) * vec[0:1, :] + vec[1:2, :],
                    0.0)                                      # (nb, M, Cout_p)
    acc = _conv3x3_fused(h.reshape(nb, Hp, Wp, h.shape[-1]), w_ref,
                         vec[2:3, :], pad_ref, col_ref)
    y2_ref[...] = acc.reshape(nb, Hp * Wp, acc.shape[-1]).astype(y2_ref.dtype)
    ps_ref[:, 0:1, :] = jnp.sum(acc, axis=0, keepdims=True)[None]
    ps_ref[:, 1:2, :] = jnp.sum(acc * acc, axis=0, keepdims=True)[None]


def _bn2_relu_kernel(y2_ref, vec_ref, out_ref):
    vec = vec_ref[...]                    # rows: [scale2, shift2]
    out_ref[...] = jnp.maximum(
        y2_ref[...].astype(jnp.float32) * vec[0:1, :] + vec[1:2, :], 0.0)


# --------------------------------------------------------------------------- #
# wrapper
# --------------------------------------------------------------------------- #
def contracting_forward(x_nchw, params, *, compute_dtype=jnp.bfloat16):
    """Forward of Contracting(in_ch, out_ch, model='UNet') (ConvCell branch).

    compute_dtype controls the MXU-operand / intermediate-storage dtype
    (bfloat16 recommended: ~2-4x MXU rate and half the HBM/VMEM traffic;
    float32 gives exact parity with the reference). Accumulation, BN stats and
    BN/ReLU math are always float32.
    """
    x_nchw = x_nchw.astype(jnp.float32)
    N, Cin, H, W = x_nchw.shape
    Hp, Wp = H // 2, W // 2
    M = Hp * Wp
    Cout = params["w1"].shape[0]
    Cin_p = _round_up(Cin, LANE)
    Cout_p = _round_up(Cout, LANE)
    nb = _pick_batch_block(N, M)
    G = N // nb
    store_dtype = compute_dtype               # y1 / y2 HBM intermediates

    # ---- layout glue: NCHW -> NHWC; split the 4 positions of each 2x2 pool
    #      window; pad channels LAST so the transpose runs on unpadded data.
    x = jnp.transpose(x_nchw, (0, 2, 3, 1))                      # (N,H,W,Cin)
    x4 = (x.reshape(N, Hp, 2, Wp, 2, Cin)
            .transpose(2, 4, 0, 1, 3, 5)
            .reshape(4, N, Hp, Wp, Cin))
    x4 = jnp.pad(x4, ((0, 0),) * 4 + ((0, Cin_p - Cin),)).astype(compute_dtype)

    def taps(w, cin_p):   # (Cout, Cin, 3, 3) -> lane-padded (9*cin_p, Cout_p)
        co, ci = w.shape[0], w.shape[1]
        wt = jnp.transpose(w, (2, 3, 1, 0)).astype(jnp.float32)
        wt = jnp.pad(wt, ((0, 0), (0, 0), (0, cin_p - ci), (0, Cout_p - co)))
        return wt.reshape(9 * cin_p, Cout_p).astype(compute_dtype)

    def pad_c(v):
        return jnp.zeros((Cout_p,), jnp.float32).at[:v.shape[0]].set(
            v.astype(jnp.float32))

    def pack_rows(rows):  # pack small per-channel vectors into one (8, Cout_p)
        v = jnp.zeros((8, Cout_p), jnp.float32)
        for i, r in enumerate(rows):
            r = r.astype(jnp.float32)
            v = v.at[i, :r.shape[0]].set(r)
        return v

    def bn_scale_shift(ps, gamma, beta):
        # Tiny inter-pass reduction (hoisted out of the per-step kernels).
        # Note: E[x^2]-E[x]^2 in f32, clamped at 0 to guard against
        # catastrophic cancellation at large N*H*W.
        s = jnp.sum(ps, axis=0)                                  # (2, Cout_p)
        inv_cnt = 1.0 / float(N * M)
        mean = s[0] * inv_cnt
        var = jnp.maximum(s[1] * inv_cnt - mean * mean, 0.0)
        scale = pad_c(gamma) * jax.lax.rsqrt(var + EPS)
        shift = pad_c(beta) - mean * scale
        return scale, shift

    w1 = taps(params["w1"], Cin_p)
    w2 = taps(params["w2"], Cout_p)
    vec_a = pack_rows([params["b1"]])                            # conv1 bias

    cparams = pltpu.CompilerParams(dimension_semantics=("parallel",),
                                   vmem_limit_bytes=_vmem_limit_bytes())
    full2 = lambda b: (0, 0)
    per_b = lambda b: (b, 0, 0)

    # ---- pass A: MaxPool2d(2) + Conv1 + bias; per-block channel sum / sumsq
    y1, ps1 = pl.pallas_call(
        _pool_conv1_kernel,
        out_shape=[jax.ShapeDtypeStruct((N, M, Cout_p), store_dtype),
                   jax.ShapeDtypeStruct((G, 2, Cout_p), jnp.float32)],
        grid=(G,),
        in_specs=[
            pl.BlockSpec((4, nb, Hp, Wp, Cin_p), lambda b: (0, b, 0, 0, 0)),
            pl.BlockSpec((9 * Cin_p, Cout_p), full2),
            pl.BlockSpec((8, Cout_p), full2),
        ],
        out_specs=[pl.BlockSpec((nb, M, Cout_p), per_b),
                   pl.BlockSpec((1, 2, Cout_p), per_b)],
        scratch_shapes=[pltpu.VMEM((nb, Hp + 2, Wp + 2, Cin_p), compute_dtype),
                        pltpu.VMEM((nb, Hp, Wp, 9 * Cin_p), compute_dtype)],
        compiler_params=cparams,
    )(x4, w1, vec_a)

    # ---- BN1 stats -> (scale, shift), packed together with the conv2 bias
    sc1, sh1 = bn_scale_shift(ps1, params["g1"], params["be1"])
    vec_b = pack_rows([sc1, sh1, params["b2"]])

    # ---- pass B: BN1 + ReLU + Conv2 + bias; per-block channel sum / sumsq
    y2, ps2 = pl.pallas_call(
        _bn1_relu_conv2_kernel,
        out_shape=[jax.ShapeDtypeStruct((N, M, Cout_p), store_dtype),
                   jax.ShapeDtypeStruct((G, 2, Cout_p), jnp.float32)],
        grid=(G,),
        in_specs=[
            pl.BlockSpec((nb, M, Cout_p), per_b),
            pl.BlockSpec((9 * Cout_p, Cout_p), full2),
            pl.BlockSpec((8, Cout_p), full2),
        ],
        out_specs=[pl.BlockSpec((nb, M, Cout_p), per_b),
                   pl.BlockSpec((1, 2, Cout_p), per_b)],
        scratch_shapes=[pltpu.VMEM((nb, Hp + 2, Wp + 2, Cout_p), compute_dtype),
                        pltpu.VMEM((nb, Hp, Wp, 9 * Cout_p), compute_dtype)],
        compiler_params=cparams,
    )(y1, w2, vec_b)

    # ---- BN2 stats -> (scale, shift)
    sc2, sh2 = bn_scale_shift(ps2, params["g2"], params["be2"])
    vec_c = pack_rows([sc2, sh2])

    # ---- pass C: BN2 + ReLU (pure streaming)
    out_flat = pl.pallas_call(
        _bn2_relu_kernel,
        out_shape=jax.ShapeDtypeStruct((N, M, Cout_p), jnp.float32),
        grid=(G,),
        in_specs=[pl.BlockSpec((nb, M, Cout_p), per_b),
                  pl.BlockSpec((8, Cout_p), full2)],
        out_specs=pl.BlockSpec((nb, M, Cout_p), per_b),
        compiler_params=cparams,
    )(y2, vec_c)

    # ---- layout glue: drop channel padding, NHWC -> NCHW
    out = out_flat[:, :, :Cout].reshape(N, Hp, Wp, Cout)
    return jnp.transpose(out, (0, 3, 1, 2))


# --------------------------------------------------------------------------- #
# pure-JAX reference and test harness
# --------------------------------------------------------------------------- #
def _reference_forward(x_nchw, params):
    """Pure-JAX reference of the same forward pass (for validation)."""
    x = jnp.transpose(x_nchw.astype(jnp.float32), (0, 2, 3, 1))
    pooled = jax.lax.reduce_window(x, -jnp.inf, jax.lax.max,
                                   (1, 2, 2, 1), (1, 2, 2, 1), "VALID")

    def conv_bn_relu(h, w, b, g, be):
        wt = jnp.transpose(w, (2, 3, 1, 0))  # HWIO
        y = jax.lax.conv_general_dilated(
            h, wt, (1, 1), "SAME",
            dimension_numbers=("NHWC", "HWIO", "NHWC")) + b
        mean = y.mean(axis=(0, 1, 2))
        var = ((y - mean) ** 2).mean(axis=(0, 1, 2))
        y = (y - mean) * jax.lax.rsqrt(var + EPS) * g + be
        return jnp.maximum(y, 0.0)

    h = conv_bn_relu(pooled, params["w1"], params["b1"], params["g1"], params["be1"])
    h = conv_bn_relu(h, params["w2"], params["b2"], params["g2"], params["be2"])
    return jnp.transpose(h, (0, 3, 1, 2))


def init_params(key, in_channels, out_channels):
    ks = jax.random.split(key, 8)
    return {
        "w1": 0.1 * jax.random.normal(ks[0], (out_channels, in_channels, 3, 3), jnp.float32),
        "b1": 0.1 * jax.random.normal(ks[1], (out_channels,), jnp.float32),
        "g1": 1.0 + 0.1 * jax.random.normal(ks[2], (out_channels,), jnp.float32),
        "be1": 0.1 * jax.random.normal(ks[3], (out_channels,), jnp.float32),
        "w2": 0.1 * jax.random.normal(ks[4], (out_channels, out_channels, 3, 3), jnp.float32),
        "b2": 0.1 * jax.random.normal(ks[5], (out_channels,), jnp.float32),
        "g2": 1.0 + 0.1 * jax.random.normal(ks[6], (out_channels,), jnp.float32),
        "be2": 0.1 * jax.random.normal(ks[7], (out_channels,), jnp.float32),
    }


if __name__ == "__main__":
    key = jax.random.PRNGKey(0)
    k_x, k_p = jax.random.split(key)

    N, Cin, Cout, H, W = 2, 4, 8, 16, 16
    x = jax.random.normal(k_x, (N, Cin, H, W), jnp.float32)   # PyTorch NCHW input
    params = init_params(k_p, Cin, Cout)

    ref = jax.block_until_ready(_reference_forward(x, params))

    # exact-parity path: f32 MXU operands / f32 intermediates
    f32_fwd = jax.jit(lambda a, p: contracting_forward(a, p, compute_dtype=jnp.float32))
    out32 = jax.block_until_ready(f32_fwd(x, params))
    assert out32.shape == (N, Cout, H // 2, W // 2), out32.shape
    err32 = float(jnp.max(jnp.abs(out32 - ref)))
    assert err32 < 2e-3, f"f32 path mismatch vs reference: {err32}"

    # default fast path: bf16 MXU operands / bf16 intermediates, f32 accumulation
    out_bf = jax.block_until_ready(jax.jit(contracting_forward)(x, params))
    assert out_bf.shape == (N, Cout, H // 2, W // 2), out_bf.shape
    errbf = float(jnp.max(jnp.abs(out_bf - ref)))
    meanbf = float(jnp.mean(jnp.abs(out_bf - ref)))
    assert errbf < 1e-1 and meanbf < 2e-2, f"bf16 path drift too large: {errbf}, {meanbf}"

    print("KERNEL_OK")
</pallas_src>

<mosaic_0001>
module attributes {stable_mosaic.version = 11 : i64} {
  func.func @_pool_conv1_kernel(%arg0: i32, %arg1: memref<4x1x8x8x128xf32, #tpu.memory_space<vmem>>, %arg2: memref<1152x128xf32, #tpu.memory_space<vmem>>, %arg3: memref<8x128xf32, #tpu.memory_space<vmem>>, %arg4: memref<1x64x128xf32, #tpu.memory_space<vmem>>, %arg5: memref<1x2x128xf32, #tpu.memory_space<vmem>>, %arg6: memref<1x10x10x128xf32, #tpu.memory_space<vmem>>, %arg7: memref<1x8x8x1152xf32, #tpu.memory_space<vmem>>) attributes {dimension_semantics = [#tpu.dimension_semantics<parallel>], iteration_bounds = array<i64: 2>, scalar_prefetch = 0 : i64, scratch_operands = 2 : i64, tpu.core_type = #tpu.core_type<tc>, window_params = [{transform_indices = @transform_0, window_bounds = array<i64: 4, 1, 8, 8, 128>}, {pipeline_mode = #tpu.pipeline_mode<synchronous>, transform_indices = @transform_1, window_bounds = array<i64: 1152, 128>}, {pipeline_mode = #tpu.pipeline_mode<synchronous>, transform_indices = @transform_2, window_bounds = array<i64: 8, 128>}, {transform_indices = @transform_3, window_bounds = array<i64: 1, 64, 128>}, {transform_indices = @transform_4, window_bounds = array<i64: 1, 2, 128>}]} {
    %c0 = arith.constant 0 : index
    %c0_0 = arith.constant 0 : index
    %c0_1 = arith.constant 0 : index
    %c0_2 = arith.constant 0 : index
    %c0_3 = arith.constant 0 : index
    %0 = vector.load %arg1[%c0, %c0_0, %c0_1, %c0_2, %c0_3] : memref<4x1x8x8x128xf32, #tpu.memory_space<vmem>>, vector<4x1x8x8x128xf32>
    %1 = vector.extract_strided_slice %0 {offsets = [0, 0, 0, 0, 0], sizes = [1, 1, 8, 8, 128], strides = [1, 1, 1, 1, 1]} : vector<4x1x8x8x128xf32> to vector<1x1x8x8x128xf32>
    %2 = vector.shape_cast %1 : vector<1x1x8x8x128xf32> to vector<1x8x8x128xf32>
    %3 = vector.extract_strided_slice %0 {offsets = [1, 0, 0, 0, 0], sizes = [1, 1, 8, 8, 128], strides = [1, 1, 1, 1, 1]} : vector<4x1x8x8x128xf32> to vector<1x1x8x8x128xf32>
    %4 = vector.shape_cast %3 : vector<1x1x8x8x128xf32> to vector<1x8x8x128xf32>
    %5 = arith.maximumf %2, %4 : vector<1x8x8x128xf32>
    %6 = vector.extract_strided_slice %0 {offsets = [2, 0, 0, 0, 0], sizes = [1, 1, 8, 8, 128], strides = [1, 1, 1, 1, 1]} : vector<4x1x8x8x128xf32> to vector<1x1x8x8x128xf32>
    %7 = vector.shape_cast %6 : vector<1x1x8x8x128xf32> to vector<1x8x8x128xf32>
    %8 = vector.extract_strided_slice %0 {offsets = [3, 0, 0, 0, 0], sizes = [1, 1, 8, 8, 128], strides = [1, 1, 1, 1, 1]} : vector<4x1x8x8x128xf32> to vector<1x1x8x8x128xf32>
    %9 = vector.shape_cast %8 : vector<1x1x8x8x128xf32> to vector<1x8x8x128xf32>
    %10 = arith.maximumf %7, %9 : vector<1x8x8x128xf32>
    %11 = arith.maximumf %5, %10 : vector<1x8x8x128xf32>
    %c0_4 = arith.constant 0 : index
    %c0_5 = arith.constant 0 : index
    %12 = vector.load %arg3[%c0_4, %c0_5] : memref<8x128xf32, #tpu.memory_space<vmem>>, vector<1x128xf32>
    %cst = arith.constant 0.000000e+00 : f32
    %13 = vector.broadcast %cst : f32 to vector<1x1x10x128xf32>
    %c0_6 = arith.constant 0 : index
    %c0_7 = arith.constant 0 : index
    %c0_8 = arith.constant 0 : index
    %c0_9 = arith.constant 0 : index
    %14 = vector.load %arg6[%c0_6, %c0_7, %c0_8, %c0_9] : memref<1x10x10x128xf32, #tpu.memory_space<vmem>>, vector<1x1x10x128xf32>
    tpu.vector_store %arg6[%c0_6, %c0_7, %c0_8, %c0_9], %13 {strides = array<i32>} : memref<1x10x10x128xf32, #tpu.memory_space<vmem>>, vector<1x1x10x128xf32>,
    %cst_10 = arith.constant 0.000000e+00 : f32
    %15 = vector.broadcast %cst_10 : f32 to vector<1x1x10x128xf32>
    %c0_11 = arith.constant 0 : index
    %c9 = arith.constant 9 : index
    %c0_12 = arith.constant 0 : index
    %c0_13 = arith.constant 0 : index
    %16 = vector.load %arg6[%c0_11, %c9, %c0_12, %c0_13] : memref<1x10x10x128xf32, #tpu.memory_space<vmem>>, vector<1x1x10x128xf32>
    tpu.vector_store %arg6[%c0_11, %c9, %c0_12, %c0_13], %15 {strides = array<i32>} : memref<1x10x10x128xf32, #tpu.memory_space<vmem>>, vector<1x1x10x128xf32>,
    %cst_14 = arith.constant 0.000000e+00 : f32
    %17 = vector.broadcast %cst_14 : f32 to vector<1x10x1x128xf32>
    %c0_15 = arith.constant 0 : index
    %c0_16 = arith.constant 0 : index
    %c0_17 = arith.constant 0 : index
    %c0_18 = arith.constant 0 : index
    %18 = vector.load %arg6[%c0_15, %c0_16, %c0_17, %c0_18] : memref<1x10x10x128xf32, #tpu.memory_space<vmem>>, vector<1x10x1x128xf32>
    tpu.vector_store %arg6[%c0_15, %c0_16, %c0_17, %c0_18], %17 {strides = array<i32>} : memref<1x10x10x128xf32, #tpu.memory_space<vmem>>, vector<1x10x1x128xf32>,
    %cst_19 = arith.constant 0.000000e+00 : f32
    %19 = vector.broadcast %cst_19 : f32 to vector<1x10x1x128xf32>
    %c0_20 = arith.constant 0 : index
    %c0_21 = arith.constant 0 : index
    %c9_22 = arith.constant 9 : index
    %c0_23 = arith.constant 0 : index
    %20 = vector.load %arg6[%c0_20, %c0_21, %c9_22, %c0_23] : memref<1x10x10x128xf32, #tpu.memory_space<vmem>>, vector<1x10x1x128xf32>
    tpu.vector_store %arg6[%c0_20, %c0_21, %c9_22, %c0_23], %19 {strides = array<i32>} : memref<1x10x10x128xf32, #tpu.memory_space<vmem>>, vector<1x10x1x128xf32>,
    %c0_24 = arith.constant 0 : index
    %c1 = arith.constant 1 : index
    %c1_25 = arith.constant 1 : index
    %c0_26 = arith.constant 0 : index
    %21 = vector.load %arg6[%c0_24, %c1, %c1_25, %c0_26] : memref<1x10x10x128xf32, #tpu.memory_space<vmem>>, vector<1x8x8x128xf32>
    tpu.vector_store %arg6[%c0_24, %c1, %c1_25, %c0_26], %11 {strides = array<i32>} : memref<1x10x10x128xf32, #tpu.memory_space<vmem>>, vector<1x8x8x128xf32>,
    %c0_27 = arith.constant 0 : index
    %c0_28 = arith.constant 0 : index
    %c0_29 = arith.constant 0 : index
    %c0_30 = arith.constant 0 : index
    %22 = vector.load %arg6[%c0_27, %c0_28, %c0_29, %c0_30] : memref<1x10x10x128xf32, #tpu.memory_space<vmem>>, vector<1x8x8x128xf32>
    %c0_31 = arith.constant 0 : index
    %c0_32 = arith.constant 0 : index
    %c0_33 = arith.constant 0 : index
    %c0_34 = arith.constant 0 : index
    %23 = vector.load %arg7[%c0_31, %c0_32, %c0_33, %c0_34] : memref<1x8x8x1152xf32, #tpu.memory_space<vmem>>, vector<1x8x8x128xf32>
    tpu.vector_store %arg7[%c0_31, %c0_32, %c0_33, %c0_34], %22 {strides = array<i32>} : memref<1x8x8x1152xf32, #tpu.memory_space<vmem>>, vector<1x8x8x128xf32>,
    %c0_35 = arith.constant 0 : index
    %c0_36 = arith.constant 0 : index
    %c1_37 = arith.constant 1 : index
    %c0_38 = arith.constant 0 : index
    %24 = vector.load %arg6[%c0_35, %c0_36, %c1_37, %c0_38] : memref<1x10x10x128xf32, #tpu.memory_space<vmem>>, vector<1x8x8x128xf32>
    %c0_39 = arith.constant 0 : index
    %c0_40 = arith.constant 0 : index
    %c0_41 = arith.constant 0 : index
    %c128 = arith.constant 128 : index
    %25 = vector.load %arg7[%c0_39, %c0_40, %c0_41, %c128] : memref<1x8x8x1152xf32, #tpu.memory_space<vmem>>, vector<1x8x8x128xf32>
    tpu.vector_store %arg7[%c0_39, %c0_40, %c0_41, %c128], %24 {strides = array<i32>} : memref<1x8x8x1152xf32, #tpu.memory_space<vmem>>, vector<1x8x8x128xf32>,
    %c0_42 = arith.constant 0 : index
    %c0_43 = arith.constant 0 : index
    %c2 = arith.constant 2 : index
    %c0_44 = arith.constant 0 : index
    %26 = vector.load %arg6[%c0_42, %c0_43, %c2, %c0_44] : memref<1x10x10x128xf32, #tpu.memory_space<vmem>>, vector<1x8x8x128xf32>
    %c0_45 = arith.constant 0 : index
    %c0_46 = arith.constant 0 : index
    %c0_47 = arith.constant 0 : index
    %c256 = arith.constant 256 : index
    %27 = vector.load %arg7[%c0_45, %c0_46, %c0_47, %c256] : memref<1x8x8x1152xf32, #tpu.memory_space<vmem>>, vector<1x8x8x128xf32>
    tpu.vector_store %arg7[%c0_45, %c0_46, %c0_47, %c256], %26 {strides = array<i32>} : memref<1x8x8x1152xf32, #tpu.memory_space<vmem>>, vector<1x8x8x128xf32>,
    %c0_48 = arith.constant 0 : index
    %c1_49 = arith.constant 1 : index
    %c0_50 = arith.constant 0 : index
    %c0_51 = arith.constant 0 : index
    %28 = vector.load %arg6[%c0_48, %c1_49, %c0_50, %c0_51] : memref<1x10x10x128xf32, #tpu.memory_space<vmem>>, vector<1x8x8x128xf32>
    %c0_52 = arith.constant 0 : index
    %c0_53 = arith.constant 0 : index
    %c0_54 = arith.constant 0 : index
    %c384 = arith.constant 384 : index
    %29 = vector.load %arg7[%c0_52, %c0_53, %c0_54, %c384] : memref<1x8x8x1152xf32, #tpu.memory_space<vmem>>, vector<1x8x8x128xf32>
    tpu.vector_store %arg7[%c0_52, %c0_53, %c0_54, %c384], %28 {strides = array<i32>} : memref<1x8x8x1152xf32, #tpu.memory_space<vmem>>, vector<1x8x8x128xf32>,
    %c0_55 = arith.constant 0 : index
    %c1_56 = arith.constant 1 : index
    %c1_57 = arith.constant 1 : index
    %c0_58 = arith.constant 0 : index
    %30 = vector.load %arg6[%c0_55, %c1_56, %c1_57, %c0_58] : memref<1x10x10x128xf32, #tpu.memory_space<vmem>>, vector<1x8x8x128xf32>
    %c0_59 = arith.constant 0 : index
    %c0_60 = arith.constant 0 : index
    %c0_61 = arith.constant 0 : index
    %c512 = arith.constant 512 : index
    %31 = vector.load %arg7[%c0_59, %c0_60, %c0_61, %c512] : memref<1x8x8x1152xf32, #tpu.memory_space<vmem>>, vector<1x8x8x128xf32>
    tpu.vector_store %arg7[%c0_59, %c0_60, %c0_61, %c512], %30 {strides = array<i32>} : memref<1x8x8x1152xf32, #tpu.memory_space<vmem>>, vector<1x8x8x128xf32>,
    %c0_62 = arith.constant 0 : index
    %c1_63 = arith.constant 1 : index
    %c2_64 = arith.constant 2 : index
    %c0_65 = arith.constant 0 : index
    %32 = vector.load %arg6[%c0_62, %c1_63, %c2_64, %c0_65] : memref<1x10x10x128xf32, #tpu.memory_space<vmem>>, vector<1x8x8x128xf32>
    %c0_66 = arith.constant 0 : index
    %c0_67 = arith.constant 0 : index
    %c0_68 = arith.constant 0 : index
    %c640 = arith.constant 640 : index
    %33 = vector.load %arg7[%c0_66, %c0_67, %c0_68, %c640] : memref<1x8x8x1152xf32, #tpu.memory_space<vmem>>, vector<1x8x8x128xf32>
    tpu.vector_store %arg7[%c0_66, %c0_67, %c0_68, %c640], %32 {strides = array<i32>} : memref<1x8x8x1152xf32, #tpu.memory_space<vmem>>, vector<1x8x8x128xf32>,
    %c0_69 = arith.constant 0 : index
    %c2_70 = arith.constant 2 : index
    %c0_71 = arith.constant 0 : index
    %c0_72 = arith.constant 0 : index
    %34 = vector.load %arg6[%c0_69, %c2_70, %c0_71, %c0_72] : memref<1x10x10x128xf32, #tpu.memory_space<vmem>>, vector<1x8x8x128xf32>
    %c0_73 = arith.constant 0 : index
    %c0_74 = arith.constant 0 : index
    %c0_75 = arith.constant 0 : index
    %c768 = arith.constant 768 : index
    %35 = vector.load %arg7[%c0_73, %c0_74, %c0_75, %c768] : memref<1x8x8x1152xf32, #tpu.memory_space<vmem>>, vector<1x8x8x128xf32>
    tpu.vector_store %arg7[%c0_73, %c0_74, %c0_75, %c768], %34 {strides = array<i32>} : memref<1x8x8x1152xf32, #tpu.memory_space<vmem>>, vector<1x8x8x128xf32>,
    %c0_76 = arith.constant 0 : index
    %c2_77 = arith.constant 2 : index
    %c1_78 = arith.constant 1 : index
    %c0_79 = arith.constant 0 : index
    %36 = vector.load %arg6[%c0_76, %c2_77, %c1_78, %c0_79] : memref<1x10x10x128xf32, #tpu.memory_space<vmem>>, vector<1x8x8x128xf32>
    %c0_80 = arith.constant 0 : index
    %c0_81 = arith.constant 0 : index
    %c0_82 = arith.constant 0 : index
    %c896 = arith.constant 896 : index
    %37 = vector.load %arg7[%c0_80, %c0_81, %c0_82, %c896] : memref<1x8x8x1152xf32, #tpu.memory_space<vmem>>, vector<1x8x8x128xf32>
    tpu.vector_store %arg7[%c0_80, %c0_81, %c0_82, %c896], %36 {strides = array<i32>} : memref<1x8x8x1152xf32, #tpu.memory_space<vmem>>, vector<1x8x8x128xf32>,
    %c0_83 = arith.constant 0 : index
    %c2_84 = arith.constant 2 : index
    %c2_85 = arith.constant 2 : index
    %c0_86 = arith.constant 0 : index
    %38 = vector.load %arg6[%c0_83, %c2_84, %c2_85, %c0_86] : memref<1x10x10x128xf32, #tpu.memory_space<vmem>>, vector<1x8x8x128xf32>
    %c0_87 = arith.constant 0 : index
    %c0_88 = arith.constant 0 : index
    %c0_89 = arith.constant 0 : index
    %c1024 = arith.constant 1024 : index
    %39 = vector.load %arg7[%c0_87, %c0_88, %c0_89, %c1024] : memref<1x8x8x1152xf32, #tpu.memory_space<vmem>>, vector<1x8x8x128xf32>
    tpu.vector_store %arg7[%c0_87, %c0_88, %c0_89, %c1024], %38 {strides = array<i32>} : memref<1x8x8x1152xf32, #tpu.memory_space<vmem>>, vector<1x8x8x128xf32>,
    %c0_90 = arith.constant 0 : index
    %c0_91 = arith.constant 0 : index
    %c0_92 = arith.constant 0 : index
    %c0_93 = arith.constant 0 : index
    %40 = vector.load %arg7[%c0_90, %c0_91, %c0_92, %c0_93] : memref<1x8x8x1152xf32, #tpu.memory_space<vmem>>, vector<1x8x8x1152xf32>
    %41 = vector.shape_cast %40 : vector<1x8x8x1152xf32> to vector<64x1152xf32>
    %c0_94 = arith.constant 0 : index
    %c0_95 = arith.constant 0 : index
    %42 = vector.load %arg2[%c0_94, %c0_95] : memref<1152x128xf32, #tpu.memory_space<vmem>>, vector<1152x128xf32>
    %cst_96 = arith.constant dense<0.000000e+00> : vector<64x128xf32>
    %43 = tpu.matmul %41, %42, %cst_96 {dimension_numbers = #tpu.dot_dimension_numbers<[1], [0], [0], [1], [0, 0, 1, 1], [], []>} : vector<64x1152xf32>, vector<1152x128xf32>, vector<64x128xf32> -> vector<64x128xf32>
    %44 = vector.broadcast %12 : vector<1x128xf32> to vector<64x128xf32>
    %45 = arith.addf %43, %44 : vector<64x128xf32>
    %46 = vector.shape_cast %45 : vector<64x128xf32> to vector<1x64x128xf32>
    %c0_97 = arith.constant 0 : index
    %c0_98 = arith.constant 0 : index
    %c0_99 = arith.constant 0 : index
    %47 = vector.load %arg4[%c0_97, %c0_98, %c0_99] : memref<1x64x128xf32, #tpu.memory_space<vmem>>, vector<1x64x128xf32>
    tpu.vector_store %arg4[%c0_97, %c0_98, %c0_99], %46 {strides = array<i32>} : memref<1x64x128xf32, #tpu.memory_space<vmem>>, vector<1x64x128xf32>,
    %cst_100 = arith.constant dense<0.000000e+00> : vector<128xf32>
    %48 = vector.multi_reduction <add>, %45, %cst_100 [0] : vector<64x128xf32> to vector<128xf32>
    %49 = vector.shape_cast %48 : vector<128xf32> to vector<1x128xf32>
    %50 = vector.shape_cast %49 : vector<1x128xf32> to vector<1x1x128xf32>
    %c0_101 = arith.constant 0 : index
    %c0_102 = arith.constant 0 : index
    %c0_103 = arith.constant 0 : index
    %51 = vector.load %arg5[%c0_101, %c0_102, %c0_103] : memref<1x2x128xf32, #tpu.memory_space<vmem>>, vector<1x1x128xf32>
    tpu.vector_store %arg5[%c0_101, %c0_102, %c0_103], %50 {strides = array<i32>} : memref<1x2x128xf32, #tpu.memory_space<vmem>>, vector<1x1x128xf32>,
    %52 = arith.mulf %45, %45 : vector<64x128xf32>
    %cst_104 = arith.constant dense<0.000000e+00> : vector<128xf32>
    %53 = vector.multi_reduction <add>, %52, %cst_104 [0] : vector<64x128xf32> to vector<128xf32>
    %54 = vector.shape_cast %53 : vector<128xf32> to vector<1x128xf32>
    %55 = vector.shape_cast %54 : vector<1x128xf32> to vector<1x1x128xf32>
    %c0_105 = arith.constant 0 : index
    %c1_106 = arith.constant 1 : index
    %c0_107 = arith.constant 0 : index
    %56 = vector.load %arg5[%c0_105, %c1_106, %c0_107] : memref<1x2x128xf32, #tpu.memory_space<vmem>>, vector<1x1x128xf32>
    tpu.vector_store %arg5[%c0_105, %c1_106, %c0_107], %55 {strides = array<i32>} : memref<1x2x128xf32, #tpu.memory_space<vmem>>, vector<1x1x128xf32>,
    return
  }
  func.func @transform_0(%arg0: i32) -> (i32, i32, i32, i32, i32) {
    %c0_i32 = arith.constant 0 : i32
    %c0_i32_0 = arith.constant 0 : i32
    %c0_i32_1 = arith.constant 0 : i32
    %c0_i32_2 = arith.constant 0 : i32
    %c0_i32_3 = arith.constant 0 : i32
    return %c0_i32, %arg0, %c0_i32_0, %c0_i32_1, %c0_i32_2 : i32, i32, i32, i32, i32
  }
  func.func @transform_1(%arg0: i32) -> (i32, i32) {
    %c0_i32 = arith.constant 0 : i32
    %c0_i32_0 = arith.constant 0 : i32
    %c0_i32_1 = arith.constant 0 : i32
    return %c0_i32, %c0_i32_0 : i32, i32
  }
  func.func @transform_2(%arg0: i32) -> (i32, i32) {
    %c0_i32 = arith.constant 0 : i32
    %c0_i32_0 = arith.constant 0 : i32
    %c0_i32_1 = arith.constant 0 : i32
    return %c0_i32, %c0_i32_0 : i32, i32
  }
  func.func @transform_3(%arg0: i32) -> (i32, i32, i32) {
    %c0_i32 = arith.constant 0 : i32
    %c0_i32_0 = arith.constant 0 : i32
    %c0_i32_1 = arith.constant 0 : i32
    return %arg0, %c0_i32, %c0_i32_0 : i32, i32, i32
  }
  func.func @transform_4(%arg0: i32) -> (i32, i32, i32) {
    %c0_i32 = arith.constant 0 : i32
    %c0_i32_0 = arith.constant 0 : i32
    %c0_i32_1 = arith.constant 0 : i32
    return %arg0, %c0_i32, %c0_i32_0 : i32, i32, i32
  }
}

module attributes {stable_mosaic.version = 11 : i64} {
  func.func @_bn1_relu_conv2_kernel(%arg0: i32, %arg1: memref<1x64x128xf32, #tpu.memory_space<vmem>>, %arg2: memref<1152x128xf32, #tpu.memory_space<vmem>>, %arg3: memref<8x128xf32, #tpu.memory_space<vmem>>, %arg4: memref<1x64x128xf32, #tpu.memory_space<vmem>>, %arg5: memref<1x2x128xf32, #tpu.memory_space<vmem>>, %arg6: memref<1x10x10x128xf32, #tpu.memory_space<vmem>>, %arg7: memref<1x8x8x1152xf32, #tpu.memory_space<vmem>>) attributes {dimension_semantics = [#tpu.dimension_semantics<parallel>], iteration_bounds = array<i64: 2>, scalar_prefetch = 0 : i64, scratch_operands = 2 : i64, tpu.core_type = #tpu.core_type<tc>, window_params = [{transform_indices = @transform_0, window_bounds = array<i64: 1, 64, 128>}, {pipeline_mode = #tpu.pipeline_mode<synchronous>, transform_indices = @transform_1, window_bounds = array<i64: 1152, 128>}, {pipeline_mode = #tpu.pipeline_mode<synchronous>, transform_indices = @transform_2, window_bounds = array<i64: 8, 128>}, {transform_indices = @transform_3, window_bounds = array<i64: 1, 64, 128>}, {transform_indices = @transform_4, window_bounds = array<i64: 1, 2, 128>}]} {
    %c0 = arith.constant 0 : index
    %c0_0 = arith.constant 0 : index
    %0 = vector.load %arg3[%c0, %c0_0] : memref<8x128xf32, #tpu.memory_space<vmem>>, vector<8x128xf32>
    %c0_1 = arith.constant 0 : index
    %c0_2 = arith.constant 0 : index
    %c0_3 = arith.constant 0 : index
    %1 = vector.load %arg1[%c0_1, %c0_2, %c0_3] : memref<1x64x128xf32, #tpu.memory_space<vmem>>, vector<1x64x128xf32>
    %2 = vector.extract_strided_slice %0 {offsets = [0, 0], sizes = [1, 128], strides = [1, 1]} : vector<8x128xf32> to vector<1x128xf32>
    %3 = vector.shape_cast %2 : vector<1x128xf32> to vector<1x1x128xf32>
    %4 = vector.broadcast %3 : vector<1x1x128xf32> to vector<1x64x128xf32>
    %5 = arith.mulf %1, %4 : vector<1x64x128xf32>
    %6 = vector.extract_strided_slice %0 {offsets = [1, 0], sizes = [1, 128], strides = [1, 1]} : vector<8x128xf32> to vector<1x128xf32>
    %7 = vector.shape_cast %6 : vector<1x128xf32> to vector<1x1x128xf32>
    %8 = vector.broadcast %7 : vector<1x1x128xf32> to vector<1x64x128xf32>
    %9 = arith.addf %5, %8 : vector<1x64x128xf32>
    %cst = arith.constant 0.000000e+00 : f32
    %10 = vector.broadcast %cst : f32 to vector<1x64x128xf32>
    %11 = arith.maximumf %9, %10 : vector<1x64x128xf32>
    %12 = vector.shape_cast %11 : vector<1x64x128xf32> to vector<1x8x8x128xf32>
    %13 = vector.extract_strided_slice %0 {offsets = [2, 0], sizes = [1, 128], strides = [1, 1]} : vector<8x128xf32> to vector<1x128xf32>
    %cst_4 = arith.constant 0.000000e+00 : f32
    %14 = vector.broadcast %cst_4 : f32 to vector<1x1x10x128xf32>
    %c0_5 = arith.constant 0 : index
    %c0_6 = arith.constant 0 : index
    %c0_7 = arith.constant 0 : index
    %c0_8 = arith.constant 0 : index
    %15 = vector.load %arg6[%c0_5, %c0_6, %c0_7, %c0_8] : memref<1x10x10x128xf32, #tpu.memory_space<vmem>>, vector<1x1x10x128xf32>
    tpu.vector_store %arg6[%c0_5, %c0_6, %c0_7, %c0_8], %14 {strides = array<i32>} : memref<1x10x10x128xf32, #tpu.memory_space<vmem>>, vector<1x1x10x128xf32>,
    %cst_9 = arith.constant 0.000000e+00 : f32
    %16 = vector.broadcast %cst_9 : f32 to vector<1x1x10x128xf32>
    %c0_10 = arith.constant 0 : index
    %c9 = arith.constant 9 : index
    %c0_11 = arith.constant 0 : index
    %c0_12 = arith.constant 0 : index
    %17 = vector.load %arg6[%c0_10, %c9, %c0_11, %c0_12] : memref<1x10x10x128xf32, #tpu.memory_space<vmem>>, vector<1x1x10x128xf32>
    tpu.vector_store %arg6[%c0_10, %c9, %c0_11, %c0_12], %16 {strides = array<i32>} : memref<1x10x10x128xf32, #tpu.memory_space<vmem>>, vector<1x1x10x128xf32>,
    %cst_13 = arith.constant 0.000000e+00 : f32
    %18 = vector.broadcast %cst_13 : f32 to vector<1x10x1x128xf32>
    %c0_14 = arith.constant 0 : index
    %c0_15 = arith.constant 0 : index
    %c0_16 = arith.constant 0 : index
    %c0_17 = arith.constant 0 : index
    %19 = vector.load %arg6[%c0_14, %c0_15, %c0_16, %c0_17] : memref<1x10x10x128xf32, #tpu.memory_space<vmem>>, vector<1x10x1x128xf32>
    tpu.vector_store %arg6[%c0_14, %c0_15, %c0_16, %c0_17], %18 {strides = array<i32>} : memref<1x10x10x128xf32, #tpu.memory_space<vmem>>, vector<1x10x1x128xf32>,
    %cst_18 = arith.constant 0.000000e+00 : f32
    %20 = vector.broadcast %cst_18 : f32 to vector<1x10x1x128xf32>
    %c0_19 = arith.constant 0 : index
    %c0_20 = arith.constant 0 : index
    %c9_21 = arith.constant 9 : index
    %c0_22 = arith.constant 0 : index
    %21 = vector.load %arg6[%c0_19, %c0_20, %c9_21, %c0_22] : memref<1x10x10x128xf32, #tpu.memory_space<vmem>>, vector<1x10x1x128xf32>
    tpu.vector_store %arg6[%c0_19, %c0_20, %c9_21, %c0_22], %20 {strides = array<i32>} : memref<1x10x10x128xf32, #tpu.memory_space<vmem>>, vector<1x10x1x128xf32>,
    %c0_23 = arith.constant 0 : index
    %c1 = arith.constant 1 : index
    %c1_24 = arith.constant 1 : index
    %c0_25 = arith.constant 0 : index
    %22 = vector.load %arg6[%c0_23, %c1, %c1_24, %c0_25] : memref<1x10x10x128xf32, #tpu.memory_space<vmem>>, vector<1x8x8x128xf32>
    tpu.vector_store %arg6[%c0_23, %c1, %c1_24, %c0_25], %12 {strides = array<i32>} : memref<1x10x10x128xf32, #tpu.memory_space<vmem>>, vector<1x8x8x128xf32>,
    %c0_26 = arith.constant 0 : index
    %c0_27 = arith.constant 0 : index
    %c0_28 = arith.constant 0 : index
    %c0_29 = arith.constant 0 : index
    %23 = vector.load %arg6[%c0_26, %c0_27, %c0_28, %c0_29] : memref<1x10x10x128xf32, #tpu.memory_space<vmem>>, vector<1x8x8x128xf32>
    %c0_30 = arith.constant 0 : index
    %c0_31 = arith.constant 0 : index
    %c0_32 = arith.constant 0 : index
    %c0_33 = arith.constant 0 : index
    %24 = vector.load %arg7[%c0_30, %c0_31, %c0_32, %c0_33] : memref<1x8x8x1152xf32, #tpu.memory_space<vmem>>, vector<1x8x8x128xf32>
    tpu.vector_store %arg7[%c0_30, %c0_31, %c0_32, %c0_33], %23 {strides = array<i32>} : memref<1x8x8x1152xf32, #tpu.memory_space<vmem>>, vector<1x8x8x128xf32>,
    %c0_34 = arith.constant 0 : index
    %c0_35 = arith.constant 0 : index
    %c1_36 = arith.constant 1 : index
    %c0_37 = arith.constant 0 : index
    %25 = vector.load %arg6[%c0_34, %c0_35, %c1_36, %c0_37] : memref<1x10x10x128xf32, #tpu.memory_space<vmem>>, vector<1x8x8x128xf32>
    %c0_38 = arith.constant 0 : index
    %c0_39 = arith.constant 0 : index
    %c0_40 = arith.constant 0 : index
    %c128 = arith.constant 128 : index
    %26 = vector.load %arg7[%c0_38, %c0_39, %c0_40, %c128] : memref<1x8x8x1152xf32, #tpu.memory_space<vmem>>, vector<1x8x8x128xf32>
    tpu.vector_store %arg7[%c0_38, %c0_39, %c0_40, %c128], %25 {strides = array<i32>} : memref<1x8x8x1152xf32, #tpu.memory_space<vmem>>, vector<1x8x8x128xf32>,
    %c0_41 = arith.constant 0 : index
    %c0_42 = arith.constant 0 : index
    %c2 = arith.constant 2 : index
    %c0_43 = arith.constant 0 : index
    %27 = vector.load %arg6[%c0_41, %c0_42, %c2, %c0_43] : memref<1x10x10x128xf32, #tpu.memory_space<vmem>>, vector<1x8x8x128xf32>
    %c0_44 = arith.constant 0 : index
    %c0_45 = arith.constant 0 : index
    %c0_46 = arith.constant 0 : index
    %c256 = arith.constant 256 : index
    %28 = vector.load %arg7[%c0_44, %c0_45, %c0_46, %c256] : memref<1x8x8x1152xf32, #tpu.memory_space<vmem>>, vector<1x8x8x128xf32>
    tpu.vector_store %arg7[%c0_44, %c0_45, %c0_46, %c256], %27 {strides = array<i32>} : memref<1x8x8x1152xf32, #tpu.memory_space<vmem>>, vector<1x8x8x128xf32>,
    %c0_47 = arith.constant 0 : index
    %c1_48 = arith.constant 1 : index
    %c0_49 = arith.constant 0 : index
    %c0_50 = arith.constant 0 : index
    %29 = vector.load %arg6[%c0_47, %c1_48, %c0_49, %c0_50] : memref<1x10x10x128xf32, #tpu.memory_space<vmem>>, vector<1x8x8x128xf32>
    %c0_51 = arith.constant 0 : index
    %c0_52 = arith.constant 0 : index
    %c0_53 = arith.constant 0 : index
    %c384 = arith.constant 384 : index
    %30 = vector.load %arg7[%c0_51, %c0_52, %c0_53, %c384] : memref<1x8x8x1152xf32, #tpu.memory_space<vmem>>, vector<1x8x8x128xf32>
    tpu.vector_store %arg7[%c0_51, %c0_52, %c0_53, %c384], %29 {strides = array<i32>} : memref<1x8x8x1152xf32, #tpu.memory_space<vmem>>, vector<1x8x8x128xf32>,
    %c0_54 = arith.constant 0 : index
    %c1_55 = arith.constant 1 : index
    %c1_56 = arith.constant 1 : index
    %c0_57 = arith.constant 0 : index
    %31 = vector.load %arg6[%c0_54, %c1_55, %c1_56, %c0_57] : memref<1x10x10x128xf32, #tpu.memory_space<vmem>>, vector<1x8x8x128xf32>
    %c0_58 = arith.constant 0 : index
    %c0_59 = arith.constant 0 : index
    %c0_60 = arith.constant 0 : index
    %c512 = arith.constant 512 : index
    %32 = vector.load %arg7[%c0_58, %c0_59, %c0_60, %c512] : memref<1x8x8x1152xf32, #tpu.memory_space<vmem>>, vector<1x8x8x128xf32>
    tpu.vector_store %arg7[%c0_58, %c0_59, %c0_60, %c512], %31 {strides = array<i32>} : memref<1x8x8x1152xf32, #tpu.memory_space<vmem>>, vector<1x8x8x128xf32>,
    %c0_61 = arith.constant 0 : index
    %c1_62 = arith.constant 1 : index
    %c2_63 = arith.constant 2 : index
    %c0_64 = arith.constant 0 : index
    %33 = vector.load %arg6[%c0_61, %c1_62, %c2_63, %c0_64] : memref<1x10x10x128xf32, #tpu.memory_space<vmem>>, vector<1x8x8x128xf32>
    %c0_65 = arith.constant 0 : index
    %c0_66 = arith.constant 0 : index
    %c0_67 = arith.constant 0 : index
    %c640 = arith.constant 640 : index
    %34 = vector.load %arg7[%c0_65, %c0_66, %c0_67, %c640] : memref<1x8x8x1152xf32, #tpu.memory_space<vmem>>, vector<1x8x8x128xf32>
    tpu.vector_store %arg7[%c0_65, %c0_66, %c0_67, %c640], %33 {strides = array<i32>} : memref<1x8x8x1152xf32, #tpu.memory_space<vmem>>, vector<1x8x8x128xf32>,
    %c0_68 = arith.constant 0 : index
    %c2_69 = arith.constant 2 : index
    %c0_70 = arith.constant 0 : index
    %c0_71 = arith.constant 0 : index
    %35 = vector.load %arg6[%c0_68, %c2_69, %c0_70, %c0_71] : memref<1x10x10x128xf32, #tpu.memory_space<vmem>>, vector<1x8x8x128xf32>
    %c0_72 = arith.constant 0 : index
    %c0_73 = arith.constant 0 : index
    %c0_74 = arith.constant 0 : index
    %c768 = arith.constant 768 : index
    %36 = vector.load %arg7[%c0_72, %c0_73, %c0_74, %c768] : memref<1x8x8x1152xf32, #tpu.memory_space<vmem>>, vector<1x8x8x128xf32>
    tpu.vector_store %arg7[%c0_72, %c0_73, %c0_74, %c768], %35 {strides = array<i32>} : memref<1x8x8x1152xf32, #tpu.memory_space<vmem>>, vector<1x8x8x128xf32>,
    %c0_75 = arith.constant 0 : index
    %c2_76 = arith.constant 2 : index
    %c1_77 = arith.constant 1 : index
    %c0_78 = arith.constant 0 : index
    %37 = vector.load %arg6[%c0_75, %c2_76, %c1_77, %c0_78] : memref<1x10x10x128xf32, #tpu.memory_space<vmem>>, vector<1x8x8x128xf32>
    %c0_79 = arith.constant 0 : index
    %c0_80 = arith.constant 0 : index
    %c0_81 = arith.constant 0 : index
    %c896 = arith.constant 896 : index
    %38 = vector.load %arg7[%c0_79, %c0_80, %c0_81, %c896] : memref<1x8x8x1152xf32, #tpu.memory_space<vmem>>, vector<1x8x8x128xf32>
    tpu.vector_store %arg7[%c0_79, %c0_80, %c0_81, %c896], %37 {strides = array<i32>} : memref<1x8x8x1152xf32, #tpu.memory_space<vmem>>, vector<1x8x8x128xf32>,
    %c0_82 = arith.constant 0 : index
    %c2_83 = arith.constant 2 : index
    %c2_84 = arith.constant 2 : index
    %c0_85 = arith.constant 0 : index
    %39 = vector.load %arg6[%c0_82, %c2_83, %c2_84, %c0_85] : memref<1x10x10x128xf32, #tpu.memory_space<vmem>>, vector<1x8x8x128xf32>
    %c0_86 = arith.constant 0 : index
    %c0_87 = arith.constant 0 : index
    %c0_88 = arith.constant 0 : index
    %c1024 = arith.constant 1024 : index
    %40 = vector.load %arg7[%c0_86, %c0_87, %c0_88, %c1024] : memref<1x8x8x1152xf32, #tpu.memory_space<vmem>>, vector<1x8x8x128xf32>
    tpu.vector_store %arg7[%c0_86, %c0_87, %c0_88, %c1024], %39 {strides = array<i32>} : memref<1x8x8x1152xf32, #tpu.memory_space<vmem>>, vector<1x8x8x128xf32>,
    %c0_89 = arith.constant 0 : index
    %c0_90 = arith.constant 0 : index
    %c0_91 = arith.constant 0 : index
    %c0_92 = arith.constant 0 : index
    %41 = vector.load %arg7[%c0_89, %c0_90, %c0_91, %c0_92] : memref<1x8x8x1152xf32, #tpu.memory_space<vmem>>, vector<1x8x8x1152xf32>
    %42 = vector.shape_cast %41 : vector<1x8x8x1152xf32> to vector<64x1152xf32>
    %c0_93 = arith.constant 0 : index
    %c0_94 = arith.constant 0 : index
    %43 = vector.load %arg2[%c0_93, %c0_94] : memref<1152x128xf32, #tpu.memory_space<vmem>>, vector<1152x128xf32>
    %cst_95 = arith.constant dense<0.000000e+00> : vector<64x128xf32>
    %44 = tpu.matmul %42, %43, %cst_95 {dimension_numbers = #tpu.dot_dimension_numbers<[1], [0], [0], [1], [0, 0, 1, 1], [], []>} : vector<64x1152xf32>, vector<1152x128xf32>, vector<64x128xf32> -> vector<64x128xf32>
    %45 = vector.broadcast %13 : vector<1x128xf32> to vector<64x128xf32>
    %46 = arith.addf %44, %45 : vector<64x128xf32>
    %47 = vector.shape_cast %46 : vector<64x128xf32> to vector<1x64x128xf32>
    %c0_96 = arith.constant 0 : index
    %c0_97 = arith.constant 0 : index
    %c0_98 = arith.constant 0 : index
    %48 = vector.load %arg4[%c0_96, %c0_97, %c0_98] : memref<1x64x128xf32, #tpu.memory_space<vmem>>, vector<1x64x128xf32>
    tpu.vector_store %arg4[%c0_96, %c0_97, %c0_98], %47 {strides = array<i32>} : memref<1x64x128xf32, #tpu.memory_space<vmem>>, vector<1x64x128xf32>,
    %cst_99 = arith.constant dense<0.000000e+00> : vector<128xf32>
    %49 = vector.multi_reduction <add>, %46, %cst_99 [0] : vector<64x128xf32> to vector<128xf32>
    %50 = vector.shape_cast %49 : vector<128xf32> to vector<1x128xf32>
    %51 = vector.shape_cast %50 : vector<1x128xf32> to vector<1x1x128xf32>
    %c0_100 = arith.constant 0 : index
    %c0_101 = arith.constant 0 : index
    %c0_102 = arith.constant 0 : index
    %52 = vector.load %arg5[%c0_100, %c0_101, %c0_102] : memref<1x2x128xf32, #tpu.memory_space<vmem>>, vector<1x1x128xf32>
    tpu.vector_store %arg5[%c0_100, %c0_101, %c0_102], %51 {strides = array<i32>} : memref<1x2x128xf32, #tpu.memory_space<vmem>>, vector<1x1x128xf32>,
    %53 = arith.mulf %46, %46 : vector<64x128xf32>
    %cst_103 = arith.constant dense<0.000000e+00> : vector<128xf32>
    %54 = vector.multi_reduction <add>, %53, %cst_103 [0] : vector<64x128xf32> to vector<128xf32>
    %55 = vector.shape_cast %54 : vector<128xf32> to vector<1x128xf32>
    %56 = vector.shape_cast %55 : vector<1x128xf32> to vector<1x1x128xf32>
    %c0_104 = arith.constant 0 : index
    %c1_105 = arith.constant 1 : index
    %c0_106 = arith.constant 0 : index
    %57 = vector.load %arg5[%c0_104, %c1_105, %c0_106] : memref<1x2x128xf32, #tpu.memory_space<vmem>>, vector<1x1x128xf32>
    tpu.vector_store %arg5[%c0_104, %c1_105, %c0_106], %56 {strides = array<i32>} : memref<1x2x128xf32, #tpu.memory_space<vmem>>, vector<1x1x128xf32>,
    return
  }
  func.func @transform_0(%arg0: i32) -> (i32, i32, i32) {
    %c0_i32 = arith.constant 0 : i32
    %c0_i32_0 = arith.constant 0 : i32
    %c0_i32_1 = arith.constant 0 : i32
    return %arg0, %c0_i32, %c0_i32_0 : i32, i32, i32
  }
  func.func @transform_1(%arg0: i32) -> (i32, i32) {
    %c0_i32 = arith.constant 0 : i32
    %c0_i32_0 = arith.constant 0 : i32
    %c0_i32_1 = arith.constant 0 : i32
    return %c0_i32, %c0_i32_0 : i32, i32
  }
  func.func @transform_2(%arg0: i32) -> (i32, i32) {
    %c0_i32 = arith.constant 0 : i32
    %c0_i32_0 = arith.constant 0 : i32
    %c0_i32_1 = arith.constant 0 : i32
    return %c0_i32, %c0_i32_0 : i32, i32
  }
  func.func @transform_3(%arg0: i32) -> (i32, i32, i32) {
    %c0_i32 = arith.constant 0 : i32
    %c0_i32_0 = arith.constant 0 : i32
    %c0_i32_1 = arith.constant 0 : i32
    return %arg0, %c0_i32, %c0_i32_0 : i32, i32, i32
  }
  func.func @transform_4(%arg0: i32) -> (i32, i32, i32) {
    %c0_i32 = arith.constant 0 : i32
    %c0_i32_0 = arith.constant 0 : i32
    %c0_i32_1 = arith.constant 0 : i32
    return %arg0, %c0_i32, %c0_i32_0 : i32, i32, i32
  }
}

module attributes {stable_mosaic.version = 11 : i64} {
  func.func @_bn2_relu_kernel(%arg0: i32, %arg1: memref<1x64x128xf32, #tpu.memory_space<vmem>>, %arg2: memref<8x128xf32, #tpu.memory_space<vmem>>, %arg3: memref<1x64x128xf32, #tpu.memory_space<vmem>>) attributes {dimension_semantics = [#tpu.dimension_semantics<parallel>], iteration_bounds = array<i64: 2>, scalar_prefetch = 0 : i64, scratch_operands = 0 : i64, tpu.core_type = #tpu.core_type<tc>, window_params = [{transform_indices = @transform_0, window_bounds = array<i64: 1, 64, 128>}, {pipeline_mode = #tpu.pipeline_mode<synchronous>, transform_indices = @transform_1, window_bounds = array<i64: 8, 128>}, {transform_indices = @transform_2, window_bounds = array<i64: 1, 64, 128>}]} {
    %c0 = arith.constant 0 : index
    %c0_0 = arith.constant 0 : index
    %0 = vector.load %arg2[%c0, %c0_0] : memref<8x128xf32, #tpu.memory_space<vmem>>, vector<8x128xf32>
    %c0_1 = arith.constant 0 : index
    %c0_2 = arith.constant 0 : index
    %c0_3 = arith.constant 0 : index
    %1 = vector.load %arg1[%c0_1, %c0_2, %c0_3] : memref<1x64x128xf32, #tpu.memory_space<vmem>>, vector<1x64x128xf32>
    %2 = vector.extract_strided_slice %0 {offsets = [0, 0], sizes = [1, 128], strides = [1, 1]} : vector<8x128xf32> to vector<1x128xf32>
    %3 = vector.shape_cast %2 : vector<1x128xf32> to vector<1x1x128xf32>
    %4 = vector.broadcast %3 : vector<1x1x128xf32> to vector<1x64x128xf32>
    %5 = arith.mulf %1, %4 : vector<1x64x128xf32>
    %6 = vector.extract_strided_slice %0 {offsets = [1, 0], sizes = [1, 128], strides = [1, 1]} : vector<8x128xf32> to vector<1x128xf32>
    %7 = vector.shape_cast %6 : vector<1x128xf32> to vector<1x1x128xf32>
    %8 = vector.broadcast %7 : vector<1x1x128xf32> to vector<1x64x128xf32>
    %9 = arith.addf %5, %8 : vector<1x64x128xf32>
    %cst = arith.constant 0.000000e+00 : f32
    %10 = vector.broadcast %cst : f32 to vector<1x64x128xf32>
    %11 = arith.maximumf %9, %10 : vector<1x64x128xf32>
    %c0_4 = arith.constant 0 : index
    %c0_5 = arith.constant 0 : index
    %c0_6 = arith.constant 0 : index
    %12 = vector.load %arg3[%c0_4, %c0_5, %c0_6] : memref<1x64x128xf32, #tpu.memory_space<vmem>>, vector<1x64x128xf32>
    tpu.vector_store %arg3[%c0_4, %c0_5, %c0_6], %11 {strides = array<i32>} : memref<1x64x128xf32, #tpu.memory_space<vmem>>, vector<1x64x128xf32>,
    return
  }
  func.func @transform_0(%arg0: i32) -> (i32, i32, i32) {
    %c0_i32 = arith.constant 0 : i32
    %c0_i32_0 = arith.constant 0 : i32
    %c0_i32_1 = arith.constant 0 : i32
    return %arg0, %c0_i32, %c0_i32_0 : i32, i32, i32
  }
  func.func @transform_1(%arg0: i32) -> (i32, i32) {
    %c0_i32 = arith.constant 0 : i32
    %c0_i32_0 = arith.constant 0 : i32
    %c0_i32_1 = arith.constant 0 : i32
    return %c0_i32, %c0_i32_0 : i32, i32
  }
  func.func @transform_2(%arg0: i32) -> (i32, i32, i32) {
    %c0_i32 = arith.constant 0 : i32
    %c0_i32_0 = arith.constant 0 : i32
    %c0_i32_1 = arith.constant 0 : i32
    return %arg0, %c0_i32, %c0_i32_0 : i32, i32, i32
  }
}

</mosaic_0001>

<bundles_post_ra>
// kernel: _lambda_.5
= control target key start
LH: loop header
LB: loop body
LE: loop exit
PB: predicated region body
PF: predicated region fallthrough
CT: control target
= control target key end

     0   :  { %s292_s9 = smov 0   ;;  %s315_s0 = inlined_call_operand.vmem [shape: f32[2,64,128], index: 0, kind: input, shape index: {}]   ;;  %s316_s1 = inlined_call_operand.vmem [shape: f32[8,128], index: 1, kind: input, shape index: {}]   ;;  %s317_s2 = inlined_call_operand.vmem [shape: f32[2,64,128], index: 2, kind: output, shape index: {}]  }
   0x1 LB: > { %s248_s10 = sadd.s32 4294967295, %s275_s9   ;;  %p252_p0 = scmp.ge.s32.totalorder %s275_s9, 1  ;;  %s275_s9 = sphi %s292_s9, %s12_s9  }
   0x2   : > { %p112_p1 = scmp.lt.s32.totalorder %s275_s9, 3 }
   0x4   : > { %p113_p2 = pnand %p252_p0, %p112_p1 }
   0x5   : > { %p134_p3 = scmp.lt.s32.totalorder (!%p113_p2), %s248_s10, 1  ;;  %v153_v0 = vlaneseq (!%p113_p2)  ;;  %v144_v2 = vld [vmem:[%s316_s1] sm:$0xff] (!%p113_p2) }
   0x6   : > { %116 = sbr.rel (%p113_p2) target bundleno = 27 (0x1b), region = 28 }
   0x7   : > { %v154_v1 = vshrl.u32 (!%p113_p2), %v153_v0, 7 }
   0x9   : > { %v155_v3 = vsub.s32 (!%p113_p2), 0, %v154_v1  ;;  %v167_v4 = vsub.s32 (!%p113_p2), 1, %v154_v1 }
   0xb   : > { %v156_v6 = vrot.slane (!%p113_p2), %v144_v2, %v155_v3  ;;  %v168_v7 = vrot.slane (!%p113_p2), %v144_v2, %v167_v4 }
   0xd   : > { %s319_s10 = smov (!%p134_p3, %s248_s10), 1 }
   0xe   : > { %s259_s13 = sshll.u32 %s319_s10, 6 }
   0xf   : > { %s138_s16 = scalar_lea.vmem %s315_s0, %s259_s13  ;;  %s143_s19 = scalar_lea.vmem %s317_s2, %s259_s13 }
  0x10   : > { %v145_v5 = vld [vmem:[%s138_s16] sm:$0xff]  ;;  %v146_v8 = vld [vmem:[%s138_s16 + $0x8] sm:$0xff]  ;;  %v147_v9 = vld [vmem:[%s138_s16 + $0x10] sm:$0xff] }
  0x11   : > { %v148_v10 = vld [vmem:[%s138_s16 + $0x18] sm:$0xff]  ;;  %v149_v11 = vld [vmem:[%s138_s16 + $0x20] sm:$0xff]  ;;  %v150_v12 = vld [vmem:[%s138_s16 + $0x28] sm:$0xff]  ;;  %v157_v13 = vmul.f32 %v156_v6, %v145_v5  ;;  %v158_v14 = vmul.f32 %v156_v6, %v146_v8  ;;  %v159_v15 = vmul.f32 %v156_v6, %v147_v9 }
  0x12   : > { %v160_v16 = vmul.f32 %v156_v6, %v148_v10  ;;  %v151_v17 = vld [vmem:[%s138_s16 + $0x30] sm:$0xff]  ;;  %v152_v18 = vld [vmem:[%s138_s16 + $0x38] sm:$0xff]  ;;  %v161_v19 = vmul.f32 %v156_v6, %v149_v11  ;;  %v162_v20 = vmul.f32 %v156_v6, %v150_v12 }
  0x13   : > { %v163_v21 = vmul.f32 %v156_v6, %v151_v17  ;;  %v164_v22 = vmul.f32 %v156_v6, %v152_v18  ;;  %v169_v23 = vadd.f32 %v168_v7, %v157_v13  ;;  %v170_v24 = vadd.f32 %v168_v7, %v158_v14 }
  0x14   : > { %v171_v25 = vadd.f32 %v168_v7, %v159_v15  ;;  %v172_v26 = vadd.f32 %v168_v7, %v160_v16  ;;  %v173_v27 = vadd.f32 %v168_v7, %v161_v19  ;;  %v174_v28 = vadd.f32 %v168_v7, %v162_v20 }
  0x15   : > { %v175_v29 = vadd.f32 %v168_v7, %v163_v21  ;;  %v176_v30 = vadd.f32 %v168_v7, %v164_v22  ;;  %v177_v31 = vmax.f32 %v169_v23, 0.0  ;;  %v178_v32 = vmax.f32 %v170_v24, 0.0 }
  0x16   : > { %v179_v33 = vmax.f32 %v171_v25, 0.0  ;;  %v180_v34 = vmax.f32 %v172_v26, 0.0  ;;  %v181_v35 = vmax.f32 %v173_v27, 0.0  ;;  %v182_v36 = vmax.f32 %v174_v28, 0.0 }
  0x17   : > { %v183_v37 = vmax.f32 %v175_v29, 0.0  ;;  %v184_v38 = vmax.f32 %v176_v30, 0.0  ;;  %185 = vst [vmem:[%s143_s19] sm:$0xff] %v177_v31  ;;  %186 = vst [vmem:[%s143_s19 + $0x8] sm:$0xff] %v178_v32 }
  0x18   : > { %187 = vst [vmem:[%s143_s19 + $0x10] sm:$0xff] %v179_v33  ;;  %188 = vst [vmem:[%s143_s19 + $0x18] sm:$0xff] %v180_v34 }
  0x19   : > { %189 = vst [vmem:[%s143_s19 + $0x20] sm:$0xff] %v181_v35  ;;  %190 = vst [vmem:[%s143_s19 + $0x28] sm:$0xff] %v182_v36 }
  0x1a   : > { %191 = vst [vmem:[%s143_s19 + $0x30] sm:$0xff] %v183_v37  ;;  %192 = vst [vmem:[%s143_s19 + $0x38] sm:$0xff] %v184_v38 }
  0x1b PF: > { %s12_s9 = sadd.s32 1, %s275_s9  }
  0x1c   : > { %p9_p4 = scmp.ge.s32.totalorder %s12_s9, 4  }
  0x1e   :  { %11 = sbr.rel (!%p9_p4) target bundleno = 1 (0x1), region = 58 }

// kernel: _lambda_.4
= control target key start
LH: loop header
LB: loop body
LE: loop exit
PB: predicated region body
PF: predicated region fallthrough
CT: control target
= control target key end

     0   :  { %s1829_s15 = smov 0   ;;  %s2466_s0 = inlined_call_operand.vmem [shape: f32[2,64,128], index: 0, kind: input, shape index: {}]   ;;  %s2467_s1 = inlined_call_operand.vmem [shape: f32[1152,128], index: 1, kind: input, shape index: {}]   ;;  %s2468_s2 = inlined_call_operand.vmem [shape: f32[8,128], index: 2, kind: input, shape index: {}]   ;;  %s2469_s3 = inlined_call_operand.vmem [shape: f32[2,64,128], index: 3, kind: output, shape index: {0}]   ;;  %s2470_s4 = inlined_call_operand.vmem [shape: f32[2,2,128], index: 4, kind: output, shape index: {1}]  }
   0x1 LB: > { %s1304_s16 = sadd.s32 4294967295, %s1801_s15   ;;  %p1308_p0 = scmp.ge.s32.totalorder %s1801_s15, 1  ;;  %s1801_s15 = sphi %s1829_s15, %s15_s15  }
   0x2   : > { %p165_p1 = scmp.lt.s32.totalorder %s1801_s15, 3 }
   0x4   : > { %p166_p2 = pnand %p1308_p0, %p165_p1 }
   0x5   : > { %v517_v0 = vld [vmem:[%s2467_s1 + $0x80] sm:$0xff] (!%p166_p2)  ;;  %v518_v1 = vld [vmem:[%s2467_s1 + $0x88] sm:$0xff] (!%p166_p2)  ;;  %v1803_v7 = vmov (!%p166_p2), 0.0   ;;  %v519_v12 = vld [vmem:[%s2467_s1 + $0x90] sm:$0xff] (!%p166_p2)  ;;  %p1920_p3 = scmp.lt.s32.totalorder (!%p166_p2), %s1304_s16, 1  ;;  %v218_v48 = vlaneseq (!%p166_p2) }
   0x6   : > { %169 = sbr.rel (%p166_p2) target bundleno = 351 (0x15f), region = 32  ;;  %v549_v2 = vld [vmem:[%s2467_s1 + $0x180] sm:$0xff] (!%p166_p2)  ;;  %v1610_v3 = vpack.c.bf16 (!%p166_p2), %v518_v1, %v517_v0  ;;  %v550_v4 = vld [vmem:[%s2467_s1 + $0x188] sm:$0xff] (!%p166_p2)  ;;  %250 = vst [vmem:[#allocation2] sm:$0xff] (!%p166_p2), %v1803_v7  ;;  %251 = vst [vmem:[#allocation2 + $0x8] sm:$0x3] (!%p166_p2), %v1803_v7 }
   0x7   : > { %v501_v5 = vld [vmem:[%s2467_s1] sm:$0xff] (!%p166_p2)  ;;  %v502_v6 = vld [vmem:[%s2467_s1 + $0x8] sm:$0xff] (!%p166_p2)  ;;  %253 = vst [vmem:[#allocation2 + $0x90] sm:$0xff] (!%p166_p2), %v1803_v7  ;;  %254 = vst [vmem:[#allocation2 + $0x98] sm:$0x3] (!%p166_p2), %v1803_v7  ;;  %v1642_v8 = vpack.c.bf16 (!%p166_p2), %v550_v4, %v549_v2  ;;  %v1975_v62 = vshrl.u32 (!%p166_p2), %v218_v48, 7 }
   0x8   : > { %256 = vst [vmem:[#allocation2 + $0x10] sm:$0x1] (!%p166_p2), %v1803_v7  ;;  %257 = vst [vmem:[#allocation2 + $0x20] sm:$0x1] (!%p166_p2), %v1803_v7  ;;  %v1612_v9 = vpack.c.bf16 (!%p166_p2), %v502_v6, %v501_v5  ;;  %v533_v10 = vld [vmem:[%s2467_s1 + $0x100] sm:$0xff] (!%p166_p2)  ;;  %v534_v11 = vld [vmem:[%s2467_s1 + $0x108] sm:$0xff] (!%p166_p2)  ;;  %1611 = vmatprep.subr.bf16.mxu0 (!%p166_p2), %v1610_v3 }
   0x9   : > { %258 = vst [vmem:[#allocation2 + $0x30] sm:$0x1] (!%p166_p2), %v1803_v7  ;;  %259 = vst [vmem:[#allocation2 + $0x40] sm:$0x1] (!%p166_p2), %v1803_v7  ;;  %v1644_v13 = vpack.c.bf16 (!%p166_p2), %v534_v11, %v533_v10  ;;  %v520_v14 = vld [vmem:[%s2467_s1 + $0x98] sm:$0xff] (!%p166_p2)  ;;  %v551_v15 = vld [vmem:[%s2467_s1 + $0x190] sm:$0xff] (!%p166_p2)  ;;  %1643 = vmatprep.subr.bf16.mxu1 (!%p166_p2), %v1642_v8 }
   0xa   : > { %260 = vst [vmem:[#allocation2 + $0x50] sm:$0x1] (!%p166_p2), %v1803_v7  ;;  %261 = vst [vmem:[#allocation2 + $0x60] sm:$0x1] (!%p166_p2), %v1803_v7  ;;  %v552_v16 = vld [vmem:[%s2467_s1 + $0x198] sm:$0xff] (!%p166_p2)  ;;  %1613 = vmatpush3.bf16.msra.mxu0 (!%p166_p2), %v1612_v9  ;;  %v1614_v17 = vpack.c.bf16 (!%p166_p2), %v520_v14, %v519_v12  ;;  %v503_v19 = vld [vmem:[%s2467_s1 + $0x10] sm:$0xff] (!%p166_p2) }
   0xb   : > { %262 = vst [vmem:[#allocation2 + $0x70] sm:$0x1] (!%p166_p2), %v1803_v7  ;;  %263 = vst [vmem:[#allocation2 + $0x80] sm:$0x1] (!%p166_p2), %v1803_v7  ;;  %v1646_v18 = vpack.c.bf16 (!%p166_p2), %v552_v16, %v551_v15  ;;  %v504_v20 = vld [vmem:[%s2467_s1 + $0x18] sm:$0xff] (!%p166_p2)  ;;  %v535_v21 = vld [vmem:[%s2467_s1 + $0x110] sm:$0xff] (!%p166_p2)  ;;  %1645 = vmatpush3.bf16.msra.mxu1 (!%p166_p2), %v1644_v13 }
   0xc   : > { %266 = vst [vmem:[#allocation2 + $0x19] sm:$0x1] (!%p166_p2), %v1803_v7  ;;  %267 = vst [vmem:[#allocation2 + $0x29] sm:$0x1] (!%p166_p2), %v1803_v7  ;;  %v1616_v22 = vpack.c.bf16 (!%p166_p2), %v504_v20, %v503_v19  ;;  %v536_v23 = vld [vmem:[%s2467_s1 + $0x118] sm:$0xff] (!%p166_p2)  ;;  %v521_v24 = vld [vmem:[%s2467_s1 + $0xa0] sm:$0xff] (!%p166_p2)  ;;  %1615 = vmatprep.subr.bf16.mxu0 (!%p166_p2), %v1614_v17 }
   0xd   : > { %268 = vst [vmem:[#allocation2 + $0x39] sm:$0x1] %v1803_v7  ;;  %269 = vst [vmem:[#allocation2 + $0x49] sm:$0x1] %v1803_v7  ;;  %v522_v25 = vld [vmem:[%s2467_s1 + $0xa8] sm:$0xff]  ;;  %1647 = vmatprep.subr.bf16.mxu1 %v1646_v18  ;;  %v1648_v26 = vpack.c.bf16 %v536_v23, %v535_v21  ;;  %v553_v28 = vld [vmem:[%s2467_s1 + $0x1a0] sm:$0xff] }
   0xe   : > { %270 = vst [vmem:[#allocation2 + $0x59] sm:$0x1] %v1803_v7  ;;  %271 = vst [vmem:[#allocation2 + $0x69] sm:$0x1] %v1803_v7  ;;  %v1618_v27 = vpack.c.bf16 %v522_v25, %v521_v24  ;;  %v554_v29 = vld [vmem:[%s2467_s1 + $0x1a8] sm:$0xff]  ;;  %v505_v30 = vld [vmem:[%s2467_s1 + $0x20] sm:$0xff]  ;;  %1617 = vmatpush3.bf16.msra.mxu0 %v1616_v22 }
   0xf   : > { %272 = vst [vmem:[#allocation2 + $0x79] sm:$0x1] %v1803_v7  ;;  %273 = vst [vmem:[#allocation2 + $0x89] sm:$0x1] %v1803_v7  ;;  %v1650_v31 = vpack.c.bf16 %v554_v29, %v553_v28  ;;  %v506_v32 = vld [vmem:[%s2467_s1 + $0x28] sm:$0xff]  ;;  %v537_v33 = vld [vmem:[%s2467_s1 + $0x120] sm:$0xff]  ;;  %1649 = vmatpush3.bf16.msra.mxu1 %v1648_v26 }
  0x10   : > { %255 = vst [vmem:[#allocation2] sm:$0x1] %v1803_v7  ;;  %265 = vst [vmem:[#allocation2 + $0x9] sm:$0x1] %v1803_v7  ;;  %v538_v34 = vld [vmem:[%s2467_s1 + $0x128] sm:$0xff]  ;;  %v1620_v35 = vpack.c.bf16 %v506_v32, %v505_v30  ;;  %v523_v36 = vld [vmem:[%s2467_s1 + $0xb0] sm:$0xff]  ;;  %1619 = vmatprep.subr.bf16.mxu0 %v1618_v27 }
  0x11   : > { %264 = vst [vmem:[#allocation2 + $0x90] sm:$0x1] %v1803_v7  ;;  %274 = vst [vmem:[#allocation2 + $0x99] sm:$0x1] %v1803_v7  ;;  %v524_v37 = vld [vmem:[%s2467_s1 + $0xb8] sm:$0xff]  ;;  %v555_v38 = vld [vmem:[%s2467_s1 + $0x1b0] sm:$0xff]  ;;  %v1652_v39 = vpack.c.bf16 %v538_v34, %v537_v33  ;;  %1651 = vmatprep.subr.bf16.mxu1 %v1650_v31 }
  0x12   : > { %v1622_v40 = vpack.c.bf16 %v524_v37, %v523_v36  ;;  %v556_v41 = vld [vmem:[%s2467_s1 + $0x1b8] sm:$0xff]  ;;  %v507_v42 = vld [vmem:[%s2467_s1 + $0x30] sm:$0xff]  ;;  %v525_v47 = vld [vmem:[%s2467_s1 + $0xc0] sm:$0xff]  ;;  %1621 = vmatpush3.bf16.msra.mxu0 %v1620_v35  ;;  %s2473_s16 = smov (!%p1920_p3, %s1304_s16), 1  ;;  %v220_v11 = vsub.s32 0, %v1975_v62  ;;  %v232_v12 = vsub.s32 1, %v1975_v62 }
  0x13   : > { %v508_v43 = vld [vmem:[%s2467_s1 + $0x38] sm:$0xff]  ;;  %v1654_v44 = vpack.c.bf16 %v556_v41, %v555_v38  ;;  %v539_v45 = vld [vmem:[%s2467_s1 + $0x130] sm:$0xff]  ;;  %v526_v49 = vld [vmem:[%s2467_s1 + $0xc8] sm:$0xff]  ;;  %1653 = vmatpush3.bf16.msra.mxu1 %v1652_v39  ;;  %s1316_s8 = sshll.u32 %s2473_s16, 6 }
  0x14   : > { %v540_v46 = vld [vmem:[%s2467_s1 + $0x138] sm:$0xff]  ;;  %v557_v50 = vld [vmem:[%s2467_s1 + $0x1c0] sm:$0xff]  ;;  %v558_v51 = vld [vmem:[%s2467_s1 + $0x1c8] sm:$0xff]  ;;  %v1624_v52 = vpack.c.bf16 %v508_v43, %v507_v42  ;;  %1623 = vmatprep.subr.bf16.mxu0 %v1622_v40  ;;  %v1626_v54 = vpack.c.bf16 %v526_v49, %v525_v47  ;;  %s2015_s29 = scalar_lea.vmem %s2466_s0, %s1316_s8  ;;  %s2449_s13 = scalar_lea.vmem %s2469_s3, %s1316_s8 }
  0x15   : > { %v1656_v53 = vpack.c.bf16 %v540_v46, %v539_v45  ;;  %v509_v55 = vld [vmem:[%s2467_s1 + $0x40] sm:$0xff]  ;;  %v510_v56 = vld [vmem:[%s2467_s1 + $0x48] sm:$0xff]  ;;  %1655 = vmatprep.subr.bf16.mxu1 %v1654_v44  ;;  %v1658_v58 = vpack.c.bf16 %v558_v51, %v557_v50  ;;  %v527_v60 = vld [vmem:[%s2467_s1 + $0xd0] sm:$0xff]  ;;  %s1313_s8 = sshll.u32 %s2473_s16, 1 }
  0x16   : > { %v541_v57 = vld [vmem:[%s2467_s1 + $0x140] sm:$0xff]  ;;  %v542_v59 = vld [vmem:[%s2467_s1 + $0x148] sm:$0xff]  ;;  %v528_v61 = vld [vmem:[%s2467_s1 + $0xd8] sm:$0xff]  ;;  %1625 = vmatpush3.bf16.msra.mxu0 %v1624_v52  ;;  %v1628_v1 = vpack.c.bf16 %v510_v56, %v509_v55  ;;  %s208_s18 = scalar_lea.vmem %s2470_s4, %s1313_s8 }
  0x17   : > { %v559_v63 = vld [vmem:[%s2467_s1 + $0x1d0] sm:$0xff]  ;;  %v560_v0 = vld [vmem:[%s2467_s1 + $0x1d8] sm:$0xff]  ;;  %1657 = vmatpush3.bf16.msra.mxu1 %v1656_v53  ;;  %1627 = vmatprep.subr.bf16.mxu0 %v1626_v54  ;;  %v1660_v2 = vpack.c.bf16 %v542_v59, %v541_v57  ;;  %v1630_v3 = vpack.c.bf16 %v528_v61, %v527_v60  ;;  %v529_v9 = vld [vmem:[%s2467_s1 + $0xe0] sm:$0xff] }
  0x18   : > { %v511_v4 = vld [vmem:[%s2467_s1 + $0x50] sm:$0xff]  ;;  %v512_v5 = vld [vmem:[%s2467_s1 + $0x58] sm:$0xff]  ;;  %1659 = vmatprep.subr.bf16.mxu1 %v1658_v58  ;;  %v1662_v7 = vpack.c.bf16 %v560_v0, %v559_v63  ;;  %v530_v10 = vld [vmem:[%s2467_s1 + $0xe8] sm:$0xff] }
  0x19   : > { %v543_v6 = vld [vmem:[%s2467_s1 + $0x150] sm:$0xff]  ;;  %v544_v8 = vld [vmem:[%s2467_s1 + $0x158] sm:$0xff]  ;;  %v561_v13 = vld [vmem:[%s2467_s1 + $0x1e0] sm:$0xff]  ;;  %v1632_v15 = vpack.c.bf16 %v512_v5, %v511_v4  ;;  %v1634_v20 = vpack.c.bf16 %v530_v10, %v529_v9 }
  0x1a   : > { %v562_v14 = vld [vmem:[%s2467_s1 + $0x1e8] sm:$0xff]  ;;  %1629 = vmatpush3.bf16.msra.mxu0 %v1628_v1  ;;  %v513_v16 = vld [vmem:[%s2467_s1 + $0x60] sm:$0xff]  ;;  %v1664_v19 = vpack.c.bf16 %v544_v8, %v543_v6  ;;  %v531_v25 = vld [vmem:[%s2467_s1 + $0xf0] sm:$0xff] }
  0x1b   : > { %v514_v17 = vld [vmem:[%s2467_s1 + $0x68] sm:$0xff]  ;;  %v545_v18 = vld [vmem:[%s2467_s1 + $0x160] sm:$0xff]  ;;  %1661 = vmatpush3.bf16.msra.mxu1 %v1660_v2  ;;  %1631 = vmatprep.subr.bf16.mxu0 %v1630_v3  ;;  %v1666_v24 = vpack.c.bf16 %v562_v14, %v561_v13  ;;  %v532_v26 = vld [vmem:[%s2467_s1 + $0xf8] sm:$0xff] }
  0x1c   : > { %v546_v21 = vld [vmem:[%s2467_s1 + $0x168] sm:$0xff]  ;;  %v2032_v23 = vld [vmem:[%s2468_s2] sm:$0xff]  ;;  %1663 = vmatprep.subr.bf16.mxu1 %v1662_v7  ;;  %v563_v30 = vld [vmem:[%s2467_s1 + $0x1f0] sm:$0xff]  ;;  %v1636_v32 = vpack.c.bf16 %v514_v17, %v513_v16  ;;  %v1638_v36 = vpack.c.bf16 %v532_v26, %v531_v25 }
  0x1d   : > { %v300_v22 = vld [vmem:[#allocation2 + $0x1] sm:$0xff]  ;;  %v2042_v28 = vrot.slane %v2032_v23, %v220_v11  ;;  %v2045_v29 = vrot.slane %v2032_v23, %v232_v12  ;;  %v564_v31 = vld [vmem:[%s2467_s1 + $0x1f8] sm:$0xff]  ;;  %v515_v33 = vld [vmem:[%s2467_s1 + $0x70] sm:$0xff]  ;;  %v1668_v35 = vpack.c.bf16 %v546_v21, %v545_v18 }
  0x1e   : > { %713 = vmatprep.mubr.f32.mxu0 %v300_v22  ;;  %v210_v27 = vld [vmem:[%s2015_s29] sm:$0xff]  ;;  %1633 = vmatpush3.bf16.msra.mxu0 %v1632_v15  ;;  %v516_v37 = vld [vmem:[%s2467_s1 + $0x78] sm:$0xff]  ;;  %v547_v38 = vld [vmem:[%s2467_s1 + $0x170] sm:$0xff]  ;;  %v1670_v40 = vpack.c.bf16 %v564_v31, %v563_v30 }
  0x1f   : > { %v222_v34 = vmul.f32 %v2042_v28, %v210_v27  ;;  %1665 = vmatpush3.bf16.msra.mxu1 %v1664_v19  ;;  %1635 = vmatprep.subr.bf16.mxu0 %v1634_v20  ;;  %v211_v39 = vld [vmem:[%s2015_s29 + $0x8] sm:$0xff]  ;;  %v548_v41 = vld [vmem:[%s2467_s1 + $0x178] sm:$0xff]  ;;  %v581_v43 = vld [vmem:[%s2467_s1 + $0x280] sm:$0xff]  ;;  %v1640_v48 = vpack.c.bf16 %v516_v37, %v515_v33 }
  0x20   : > { %1667 = vmatprep.subr.bf16.mxu1 %v1666_v24  ;;  %v582_v44 = vld [vmem:[%s2467_s1 + $0x288] sm:$0xff]  ;;  %v223_v45 = vmul.f32 %v2042_v28, %v211_v39  ;;  %v613_v46 = vld [vmem:[%s2467_s1 + $0x380] sm:$0xff]  ;;  %v212_v51 = vld [vmem:[%s2015_s29 + $0x10] sm:$0xff]  ;;  %v1672_v52 = vpack.c.bf16 %v548_v41, %v547_v38 }
  0x21   : > { %v234_v42 = vadd.f32 %v2045_v29, %v222_v34  ;;  %v614_v47 = vld [vmem:[%s2467_s1 + $0x388] sm:$0xff]  ;;  %v1674_v53 = vpack.c.bf16 %v582_v44, %v581_v43  ;;  %v565_v54 = vld [vmem:[%s2467_s1 + $0x200] sm:$0xff]  ;;  %v224_v56 = vmul.f32 %v2042_v28, %v212_v51  ;;  %v583_v59 = vld [vmem:[%s2467_s1 + $0x290] sm:$0xff] }
  0x22   : > { %1637 = vmatpush3.bf16.msra.mxu0 %v1636_v32  ;;  %v235_v50 = vadd.f32 %v2045_v29, %v223_v45  ;;  %v566_v55 = vld [vmem:[%s2467_s1 + $0x208] sm:$0xff]  ;;  %v1706_v57 = vpack.c.bf16 %v614_v47, %v613_v46  ;;  %v584_v60 = vld [vmem:[%s2467_s1 + $0x298] sm:$0xff]  ;;  %v284_v0 = vld [vmem:[#allocation2] sm:$0xff] }
  0x23   : > { %v2081_v49 = vmax.f32 %v234_v42, 0.0  ;;  %1669 = vmatpush3.bf16.msra.mxu1 %v1668_v35  ;;  %1639 = vmatprep.subr.bf16.mxu0 %v1638_v36  ;;  %v236_v61 = vadd.f32 %v2045_v29, %v224_v56  ;;  %v213_v63 = vld [vmem:[%s2015_s29 + $0x18] sm:$0xff]  ;;  %v1676_v1 = vpack.c.bf16 %v566_v55, %v565_v54  ;;  %v597_v2 = vld [vmem:[%s2467_s1 + $0x300] sm:$0xff]  ;;  %v598_v4 = vld [vmem:[%s2467_s1 + $0x308] sm:$0xff]  ;;  %v1678_v5 = vpack.c.bf16 %v584_v60, %v583_v59 }
  0x24   : > { %1671 = vmatprep.subr.bf16.mxu1 %v1670_v40  ;;  %v2093_v58 = vmax.f32 %v235_v50, 0.0  ;;  %v225_v3 = vmul.f32 %v2042_v28, %v213_v63  ;;  %v615_v6 = vld [vmem:[%s2467_s1 + $0x390] sm:$0xff]  ;;  %v616_v7 = vld [vmem:[%s2467_s1 + $0x398] sm:$0xff]  ;;  %v214_v12 = vld [vmem:[%s2015_s29 + $0x20] sm:$0xff]  ;;  %v1708_v17 = vpack.c.bf16 %v598_v4, %v597_v2 }
  0x25   : > { %276 = vst [vmem:[#allocation2 + $0x11] sm:$0xff] %v2081_v49  ;;  %v2117_v8 = vmax.f32 %v236_v61, 0.0  ;;  %v567_v9 = vld [vmem:[%s2467_s1 + $0x210] sm:$0xff]  ;;  %v568_v10 = vld [vmem:[%s2467_s1 + $0x218] sm:$0xff]  ;;  %v585_v13 = vld [vmem:[%s2467_s1 + $0x2a0] sm:$0xff]  ;;  %v226_v15 = vmul.f32 %v2042_v28, %v214_v12  ;;  %v1710_v22 = vpack.c.bf16 %v616_v7, %v615_v6 }
  0x26   : > { %1641 = vmatpush3.bf16.msra.mxu0 %v1640_v48  ;;  %277 = vst [vmem:[#allocation2 + $0x21] sm:$0xff] %v2093_v58  ;;  %v237_v11 = vadd.f32 %v2045_v29, %v225_v3  ;;  %v586_v14 = vld [vmem:[%s2467_s1 + $0x2a8] sm:$0xff]  ;;  %v599_v18 = vld [vmem:[%s2467_s1 + $0x310] sm:$0xff]  ;;  %v600_v19 = vld [vmem:[%s2467_s1 + $0x318] sm:$0xff]  ;;  %v1680_v24 = vpack.c.bf16 %v568_v10, %v567_v9 }
  0x27   : > { %1673 = vmatpush3.bf16.msra.mxu1 %v1672_v52  ;;  %1675 = vmatprep.subr.bf16.mxu0 %v1674_v53  ;;  %278 = vst [vmem:[#allocation2 + $0x31] sm:$0xff] %v2117_v8  ;;  %v316_v16 = vld [vmem:[#allocation2 + $0x2] sm:$0xff]  ;;  %v238_v27 = vadd.f32 %v2045_v29, %v226_v15  ;;  %v1682_v30 = vpack.c.bf16 %v586_v14, %v585_v13  ;;  %v587_v35 = vld [vmem:[%s2467_s1 + $0x2b0] sm:$0xff]  ;;  %v588_v36 = vld [vmem:[%s2467_s1 + $0x2b8] sm:$0xff] }
  0x28   : > { %1707 = vmatprep.subr.bf16.mxu1 %v1706_v57  ;;  %v2142_v20 = vmax.f32 %v237_v11, 0.0  ;;  %v617_v25 = vld [vmem:[%s2467_s1 + $0x3a0] sm:$0xff]  ;;  %v618_v26 = vld [vmem:[%s2467_s1 + $0x3a8] sm:$0xff]  ;;  %v1712_v40 = vpack.c.bf16 %v600_v19, %v599_v18  ;;  %v619_v45 = vld [vmem:[%s2467_s1 + $0x3b0] sm:$0xff]  ;;  %v1686_v51 = vpack.c.bf16 %v588_v36, %v587_v35 }
  0x29   : > { %714 = vmatmul.mubr.f32.vlgmr.msra.gmra.mrb[0].mxu0 %v284_v0  ;;  %v569_v31 = vld [vmem:[%s2467_s1 + $0x220] sm:$0xff]  ;;  %v570_v32 = vld [vmem:[%s2467_s1 + $0x228] sm:$0xff]  ;;  %v2167_v37 = vmax.f32 %v238_v27, 0.0  ;;  %v1714_v43 = vpack.c.bf16 %v618_v26, %v617_v25  ;;  %v620_v46 = vld [vmem:[%s2467_s1 + $0x3b8] sm:$0xff] }
  0x2a   : > { %1677 = vmatpush3.bf16.msra.mxu0 %v1676_v1  ;;  %718 = vmatprep.mubr.f32.mxu0 %v2081_v49  ;;  %279 = vst [vmem:[#allocation2 + $0x41] sm:$0xff] %v2142_v20  ;;  %v215_v33 = vld [vmem:[%s2015_s29 + $0x28] sm:$0xff]  ;;  %v601_v41 = vld [vmem:[%s2467_s1 + $0x320] sm:$0xff]  ;;  %v1684_v44 = vpack.c.bf16 %v570_v32, %v569_v31  ;;  %v571_v47 = vld [vmem:[%s2467_s1 + $0x230] sm:$0xff]  ;;  %v1718_v1 = vpack.c.bf16 %v620_v46, %v619_v45 }
  0x2b   : > { %1679 = vmatprep.subr.bf16.mxu0 %v1678_v5  ;;  %v227_v38 = vmul.f32 %v2042_v28, %v215_v33  ;;  %v602_v42 = vld [vmem:[%s2467_s1 + $0x328] sm:$0xff]  ;;  %280 = vst [vmem:[#allocation2 + $0x51] sm:$0xff] %v2167_v37  ;;  %v572_v52 = vld [vmem:[%s2467_s1 + $0x238] sm:$0xff]  ;;  %v216_v53 = vld [vmem:[%s2015_s29 + $0x30] sm:$0xff] }
  0x2c   : > { %v332_v21 = vld [vmem:[#allocation2 + $0x10] sm:$0xff]  ;;  %v589_v54 = vld [vmem:[%s2467_s1 + $0x2c0] sm:$0xff]  ;;  %v590_v55 = vld [vmem:[%s2467_s1 + $0x2c8] sm:$0xff]  ;;  %v228_v57 = vmul.f32 %v2042_v28, %v216_v53  ;;  %v1716_v60 = vpack.c.bf16 %v602_v42, %v601_v41  ;;  %v1688_v2 = vpack.c.bf16 %v572_v52, %v571_v47 }
  0x2d   : > { %818 = vmatprep.mubr.f32.mxu1 %v332_v21  ;;  %v2159_v34 = vld [vmem:[#allocation2 + $0x20] sm:$0xff]  ;;  %719 = vmatmul.mubr.f32.gmra.mrb[2].mxu0 %v332_v21  ;;  %v2171_v39 = vld [vmem:[#allocation2 + $0x12] sm:$0xff]  ;;  %v239_v48 = vadd.f32 %v2045_v29, %v227_v38  ;;  %v622_v4 = vld [vmem:[%s2467_s1 + $0x3c8] sm:$0xff]  ;;  %v1690_v6 = vpack.c.bf16 %v590_v55, %v589_v54 }
  0x2e   : > { %819 = vmatmul.mubr.f32.vlgmr.msra.gmra.mrb[0].mxu1 %v316_v16  ;;  %1681 = vmatpush3.bf16.msra.mxu0 %v1680_v24  ;;  %v2191_v50 = vld [vmem:[#allocation2 + $0x30] sm:$0xff]  ;;  %v2209_v59 = vld [vmem:[#allocation2 + $0x22] sm:$0xff]  ;;  %v604_v63 = vld [vmem:[%s2467_s1 + $0x338] sm:$0xff]  ;;  %v240_v5 = vadd.f32 %v2045_v29, %v228_v57 }
  0x2f   : > { %1709 = vmatpush3.bf16.msra.mxu1 %v1708_v17  ;;  %823 = vmatprep.mubr.f32.mxu1 %v2159_v34  ;;  %v2205_v56 = vmax.f32 %v239_v48, 0.0  ;;  %v603_v61 = vld [vmem:[%s2467_s1 + $0x330] sm:$0xff]  ;;  %v621_v3 = vld [vmem:[%s2467_s1 + $0x3c0] sm:$0xff]  ;;  %v574_v9 = vld [vmem:[%s2467_s1 + $0x248] sm:$0xff] }
  0x30   : > { %1711 = vmatprep.subr.bf16.mxu1 %v1710_v22  ;;  %723 = vmatprep.mubr.f32.mxu0 %v2093_v58  ;;  %v573_v7 = vld [vmem:[%s2467_s1 + $0x240] sm:$0xff]  ;;  %v217_v10 = vld [vmem:[%s2015_s29 + $0x38] sm:$0xff]  ;;  %v591_v11 = vld [vmem:[%s2467_s1 + $0x2d0] sm:$0xff]  ;;  %v2243_v13 = vmax.f32 %v240_v5, 0.0  ;;  %v1720_v16 = vpack.c.bf16 %v604_v63, %v603_v61  ;;  %v1722_v19 = vpack.c.bf16 %v622_v4, %v621_v3 }
  0x31   : > { %1683 = vmatprep.subr.bf16.mxu0 %v1682_v30  ;;  %724 = vmatmul.mubr.f32.gmra.mrb[4].mxu0 %v2159_v34  ;;  %v2217_v0 = vld [vmem:[#allocation2 + $0x40] sm:$0xff]  ;;  %281 = vst [vmem:[#allocation2 + $0x61] sm:$0xff] %v2205_v56  ;;  %v592_v12 = vld [vmem:[%s2467_s1 + $0x2d8] sm:$0xff]  ;;  %v229_v14 = vmul.f32 %v2042_v28, %v217_v10  ;;  %v1692_v21 = vpack.c.bf16 %v574_v9, %v573_v7  ;;  %v606_v28 = vld [vmem:[%s2467_s1 + $0x348] sm:$0xff] }
  0x32   : > { %824 = vmatmul.mubr.f32.gmra.mrb[2].mxu1 %v2171_v39  ;;  %1685 = vmatpush3.bf16.msra.mxu0 %v1684_v44  ;;  %v2247_v15 = vld [vmem:[#allocation2 + $0x32] sm:$0xff]  ;;  %v605_v17 = vld [vmem:[%s2467_s1 + $0x340] sm:$0xff]  ;;  %282 = vst [vmem:[#allocation2 + $0x71] sm:$0xff] %v2243_v13  ;;  %v1694_v25 = vpack.c.bf16 %v592_v12, %v591_v11  ;;  %v594_v31 = vld [vmem:[%s2467_s1 + $0x2e8] sm:$0xff] }
  0x33   : > { %1713 = vmatpush3.bf16.msra.mxu1 %v1712_v40  ;;  %828 = vmatprep.mubr.f32.mxu1 %v2191_v50  ;;  %v2252_v18 = vld [vmem:[#allocation2 + $0x50] sm:$0xff]  ;;  %v241_v24 = vadd.f32 %v2045_v29, %v229_v14  ;;  %v624_v26 = vld [vmem:[%s2467_s1 + $0x3d8] sm:$0xff]  ;;  %v593_v29 = vld [vmem:[%s2467_s1 + $0x2e0] sm:$0xff]  ;;  %v1724_v35 = vpack.c.bf16 %v606_v28, %v605_v17 }
  0x34   : > { %1715 = vmatprep.subr.bf16.mxu1 %v1714_v43  ;;  %728 = vmatprep.mubr.f32.mxu0 %v2117_v8  ;;  %v623_v22 = vld [vmem:[%s2467_s1 + $0x3d0] sm:$0xff]  ;;  %v576_v30 = vld [vmem:[%s2467_s1 + $0x258] sm:$0xff]  ;;  %v2283_v33 = vld [vmem:[#allocation2 + $0x42] sm:$0xff]  ;;  %v1698_v44 = vpack.c.bf16 %v594_v31, %v593_v29 }
  0x35   : > { %1687 = vmatprep.subr.bf16.mxu0 %v1686_v51  ;;  %729 = vmatmul.mubr.f32.gmra.mrb[6].mxu0 %v2191_v50  ;;  %v575_v27 = vld [vmem:[%s2467_s1 + $0x250] sm:$0xff]  ;;  %v2280_v32 = vmax.f32 %v241_v24, 0.0  ;;  %v1726_v40 = vpack.c.bf16 %v624_v26, %v623_v22  ;;  %v608_v42 = vld [vmem:[%s2467_s1 + $0x358] sm:$0xff]  ;;  %v625_v43 = vld [vmem:[%s2467_s1 + $0x3e0] sm:$0xff] }
  0x36   : > { %829 = vmatmul.mubr.f32.gmra.mrb[4].mxu1 %v2209_v59  ;;  %1689 = vmatpush3.bf16.msra.mxu0 %v1688_v2  ;;  %v607_v36 = vld [vmem:[%s2467_s1 + $0x350] sm:$0xff]  ;;  %v1696_v41 = vpack.c.bf16 %v576_v30, %v575_v27  ;;  %v626_v45 = vld [vmem:[%s2467_s1 + $0x3e8] sm:$0xff]  ;;  %v577_v46 = vld [vmem:[%s2467_s1 + $0x260] sm:$0xff] }
  0x37   : > { %1717 = vmatpush3.bf16.msra.mxu1 %v1716_v60  ;;  %833 = vmatprep.mubr.f32.mxu1 %v2217_v0  ;;  %283 = vst [vmem:[#allocation2 + $0x81] sm:$0xff] %v2280_v32  ;;  %v578_v47 = vld [vmem:[%s2467_s1 + $0x268] sm:$0xff]  ;;  %v595_v48 = vld [vmem:[%s2467_s1 + $0x2f0] sm:$0xff]  ;;  %v596_v51 = vld [vmem:[%s2467_s1 + $0x2f8] sm:$0xff]  ;;  %v1728_v53 = vpack.c.bf16 %v608_v42, %v607_v36  ;;  %v1730_v57 = vpack.c.bf16 %v626_v45, %v625_v43 }
  0x38   : > { %1719 = vmatprep.subr.bf16.mxu1 %v1718_v1  ;;  %733 = vmatprep.mubr.f32.mxu0 %v2142_v20  ;;  %v2288_v38 = vld [vmem:[#allocation2 + $0x60] sm:$0xff]  ;;  %v2316_v52 = vld [vmem:[#allocation2 + $0x52] sm:$0xff]  ;;  %v1700_v60 = vpack.c.bf16 %v578_v47, %v577_v46  ;;  %v610_v61 = vld [vmem:[%s2467_s1 + $0x368] sm:$0xff]  ;;  %v1702_v1 = vpack.c.bf16 %v596_v51, %v595_v48 }
  0x39   : > { %1691 = vmatprep.subr.bf16.mxu0 %v1690_v6  ;;  %734 = vmatmul.mubr.f32.gmra.mrb[8].mxu0 %v2217_v0  ;;  %v609_v54 = vld [vmem:[%s2467_s1 + $0x360] sm:$0xff]  ;;  %v2321_v55 = vld [vmem:[#allocation2 + $0x70] sm:$0xff]  ;;  %v628_v2 = vld [vmem:[%s2467_s1 + $0x3f8] sm:$0xff] }
  0x3a   : > { %834 = vmatmul.mubr.f32.gmra.mrb[6].mxu1 %v2247_v15  ;;  %1693 = vmatpush3.bf16.msra.mxu0 %v1692_v21  ;;  %v627_v63 = vld [vmem:[%s2467_s1 + $0x3f0] sm:$0xff]  ;;  %v580_v4 = vld [vmem:[%s2467_s1 + $0x278] sm:$0xff]  ;;  %v629_v5 = vld [vmem:[%s2467_s1 + $0x400] sm:$0xff]  ;;  %v1732_v9 = vpack.c.bf16 %v610_v61, %v609_v54 }
  0x3b   : > { %1721 = vmatpush3.bf16.msra.mxu1 %v1720_v16  ;;  %838 = vmatprep.mubr.f32.mxu1 %v2252_v18  ;;  %v579_v3 = vld [vmem:[%s2467_s1 + $0x270] sm:$0xff]  ;;  %v630_v6 = vld [vmem:[%s2467_s1 + $0x408] sm:$0xff]  ;;  %v1734_v11 = vpack.c.bf16 %v628_v2, %v627_v63  ;;  %v612_v16 = vld [vmem:[%s2467_s1 + $0x378] sm:$0xff] }
  0x3c   : > { %1723 = vmatprep.subr.bf16.mxu1 %v1722_v19  ;;  %738 = vmatprep.mubr.f32.mxu0 %v2167_v37  ;;  %v2348_v7 = vld [vmem:[#allocation2 + $0x62] sm:$0xff]  ;;  %v1704_v12 = vpack.c.bf16 %v580_v4, %v579_v3  ;;  %v611_v14 = vld [vmem:[%s2467_s1 + $0x370] sm:$0xff]  ;;  %v1738_v17 = vpack.c.bf16 %v630_v6, %v629_v5  ;;  %v632_v22 = vld [vmem:[%s2467_s1 + $0x418] sm:$0xff] }
  0x3d   : > { %1695 = vmatprep.subr.bf16.mxu0 %v1694_v25  ;;  %739 = vmatmul.mubr.f32.gmra.mrb[10].mxu0 %v2252_v18  ;;  %v2362_v19 = vld [vmem:[#allocation2 + $0x72] sm:$0xff]  ;;  %v1736_v21 = vpack.c.bf16 %v612_v16, %v611_v14  ;;  %v633_v25 = vld [vmem:[%s2467_s1 + $0x420] sm:$0xff]  ;;  %v634_v26 = vld [vmem:[%s2467_s1 + $0x428] sm:$0xff] }
  0x3e   : > { %839 = vmatmul.mubr.f32.gmra.mrb[8].mxu1 %v2283_v33  ;;  %1697 = vmatpush3.bf16.msra.mxu0 %v1696_v41  ;;  %v2350_v10 = vld [vmem:[#allocation2 + $0x80] sm:$0xff]  ;;  %v631_v28 = vld [vmem:[%s2467_s1 + $0x410] sm:$0xff]  ;;  %v636_v30 = vld [vmem:[%s2467_s1 + $0x438] sm:$0xff] }
  0x3f   : > { %1725 = vmatpush3.bf16.msra.mxu1 %v1724_v35  ;;  %843 = vmatprep.mubr.f32.mxu1 %v2288_v38  ;;  %v1742_v24 = vpack.c.bf16 %v632_v22, %v631_v28  ;;  %v635_v27 = vld [vmem:[%s2467_s1 + $0x430] sm:$0xff]  ;;  %v638_v29 = vld [vmem:[%s2467_s1 + $0x448] sm:$0xff]  ;;  %v640_v31 = vld [vmem:[%s2467_s1 + $0x458] sm:$0xff] }
  0x40   : > { %1727 = vmatprep.subr.bf16.mxu1 %v1726_v40  ;;  %743 = vmatprep.mubr.f32.mxu0 %v2205_v56  ;;  %v642_v35 = vld [vmem:[%s2467_s1 + $0x468] sm:$0xff]  ;;  %v644_v36 = vld [vmem:[%s2467_s1 + $0x478] sm:$0xff] }
  0x41   : > { %1699 = vmatprep.subr.bf16.mxu0 %v1698_v44  ;;  %744 = vmatmul.mubr.f32.gmra.mrb[12].mxu0 %v2288_v38  ;;  %v404_v40 = vld [vmem:[#allocation2 + $0x91] sm:$0xff] }
  0x42   : > { %844 = vmatmul.mubr.f32.gmra.mrb[10].mxu1 %v2316_v52  ;;  %1701 = vmatpush3.bf16.msra.mxu0 %v1700_v60 }
  0x43   : > { %1729 = vmatpush3.bf16.msra.mxu1 %v1728_v53  ;;  %848 = vmatprep.mubr.f32.mxu1 %v2321_v55 }
  0x44   : > { %1731 = vmatprep.subr.bf16.mxu1 %v1730_v57  ;;  %748 = vmatprep.mubr.f32.mxu0 %v2243_v13 }
  0x45   : > { %1703 = vmatprep.subr.bf16.mxu0 %v1702_v1  ;;  %749 = vmatmul.mubr.f32.gmra.mrb[14].mxu0 %v2321_v55 }
  0x46   : > { %849 = vmatmul.mubr.f32.gmra.mrb[12].mxu1 %v2348_v7  ;;  %1705 = vmatpush3.bf16.msra.mxu0 %v1704_v12 }
  0x47   : > { %1733 = vmatpush3.bf16.msra.mxu1 %v1732_v9  ;;  %853 = vmatprep.mubr.f32.mxu1 %v2350_v10 }
  0x48   : > { %1735 = vmatprep.subr.bf16.mxu1 %v1734_v11  ;;  %923 = vmatprep.mubr.f32.mxu0 %v2171_v39  ;;  %v1746_v39 = vpack.c.bf16 %v634_v26, %v633_v25 }
  0x49   : > { %1739 = vmatprep.subr.bf16.mxu0 %v1738_v17  ;;  %924 = vmatmul.mubr.f32.vlgmr.msra.gmra.mrb[16].mxu0 %v2081_v49  ;;  %v1750_v49 = vpack.c.bf16 %v636_v30, %v635_v27 }
  0x4a   : > { %854 = vmatmul.mubr.f32.gmra.mrb[14].mxu1 %v2362_v19  ;;  %1741 = vmatpush3.bf16.msra.mxu0 %v1738_v17 }
  0x4b   : > { %1737 = vmatpush3.bf16.msra.mxu1 %v1736_v21  ;;  %1028 = vmatprep.mubr.f32.mxu1 %v2093_v58 }
  0x4c   : > { %1770 = vmatprep.subr.bf16.mxu1 %v1738_v17  ;;  %928 = vmatprep.mubr.f32.mxu0 %v2209_v59 }
  0x4d   : > { %1743 = vmatprep.subr.bf16.mxu0 %v1742_v24  ;;  %929 = vmatmul.mubr.f32.gmra.mrb[18].mxu0 %v2093_v58 }
  0x4e   : > { %1029 = vmatmul.mubr.f32.vlgmr.msra.gmra.mrb[16].mxu1 %v2159_v34  ;;  %1745 = vmatpush3.bf16.msra.mxu0 %v1742_v24  ;;  %v637_v34 = vld [vmem:[%s2467_s1 + $0x440] sm:$0xff] }
  0x4f   : > { %1778 = vmatpush3.bf16.msra.mxu1 %v1738_v17  ;;  %1033 = vmatprep.mubr.f32.mxu1 %v2117_v8  ;;  %v1754_v58 = vpack.c.bf16 %v638_v29, %v637_v34 }
  0x50   : > { %1771 = vmatprep.subr.bf16.mxu1 %v1742_v24  ;;  %933 = vmatprep.mubr.f32.mxu0 %v2247_v15 }
  0x51   : > { %1747 = vmatprep.subr.bf16.mxu0 %v1746_v39  ;;  %934 = vmatmul.mubr.f32.gmra.mrb[20].mxu0 %v2117_v8 }
  0x52   : > { %1034 = vmatmul.mubr.f32.gmra.mrb[18].mxu1 %v2191_v50  ;;  %1749 = vmatpush3.bf16.msra.mxu0 %v1746_v39  ;;  %v639_v50 = vld [vmem:[%s2467_s1 + $0x450] sm:$0xff] }
  0x53   : > { %1779 = vmatpush3.bf16.msra.mxu1 %v1742_v24  ;;  %1038 = vmatprep.mubr.f32.mxu1 %v2142_v20  ;;  %v1758_v8 = vpack.c.bf16 %v640_v31, %v639_v50 }
  0x54   : > { %1772 = vmatprep.subr.bf16.mxu1 %v1746_v39  ;;  %938 = vmatprep.mubr.f32.mxu0 %v2283_v33 }
  0x55   : > { %1751 = vmatprep.subr.bf16.mxu0 %v1750_v49  ;;  %939 = vmatmul.mubr.f32.gmra.mrb[22].mxu0 %v2142_v20 }
  0x56   : > { %1039 = vmatmul.mubr.f32.gmra.mrb[20].mxu1 %v2217_v0  ;;  %1753 = vmatpush3.bf16.msra.mxu0 %v1750_v49  ;;  %v641_v0 = vld [vmem:[%s2467_s1 + $0x460] sm:$0xff] }
  0x57   : > { %1780 = vmatpush3.bf16.msra.mxu1 %v1746_v39  ;;  %1043 = vmatprep.mubr.f32.mxu1 %v2167_v37  ;;  %v1762_v20 = vpack.c.bf16 %v642_v35, %v641_v0 }
  0x58   : > { %1773 = vmatprep.subr.bf16.mxu1 %v1750_v49  ;;  %943 = vmatprep.mubr.f32.mxu0 %v2316_v52 }
  0x59   : > { %1755 = vmatprep.subr.bf16.mxu0 %v1754_v58  ;;  %944 = vmatmul.mubr.f32.gmra.mrb[24].mxu0 %v2167_v37  ;;  %v371_v37 = vld [vmem:[#allocation2 + $0x82] sm:$0xff] }
  0x5a   : > { %1044 = vmatmul.mubr.f32.gmra.mrb[22].mxu1 %v2252_v18  ;;  %1757 = vmatpush3.bf16.msra.mxu0 %v1754_v58  ;;  %v643_v18 = vld [vmem:[%s2467_s1 + $0x470] sm:$0xff] }
  0x5b   : > { %1781 = vmatpush3.bf16.msra.mxu1 %v1750_v49  ;;  %1048 = vmatprep.mubr.f32.mxu1 %v2205_v56 }
  0x5c   : > { %1774 = vmatprep.subr.bf16.mxu1 %v1754_v58  ;;  %948 = vmatprep.mubr.f32.mxu0 %v2348_v7 }
  0x5d   : > { %1759 = vmatprep.subr.bf16.mxu0 %v1758_v8  ;;  %949 = vmatmul.mubr.f32.gmra.mrb[26].mxu0 %v2205_v56  ;;  %v388_v56 = vld [vmem:[#allocation2 + $0x90] sm:$0xff] }
  0x5e   : > { %1049 = vmatmul.mubr.f32.gmra.mrb[24].mxu1 %v2288_v38  ;;  %1761 = vmatpush3.bf16.msra.mxu0 %v1758_v8  ;;  %v1766_v38 = vpack.c.bf16 %v644_v36, %v643_v18 }
  0x5f   : > { %1782 = vmatpush3.bf16.msra.mxu1 %v1754_v58  ;;  %1053 = vmatprep.mubr.f32.mxu1 %v2243_v13 }
  0x60   : > { %1775 = vmatprep.subr.bf16.mxu1 %v1758_v8  ;;  %953 = vmatprep.mubr.f32.mxu0 %v2362_v19 }
  0x61   : > { %1763 = vmatprep.subr.bf16.mxu0 %v1762_v20  ;;  %954 = vmatmul.mubr.f32.gmra.mrb[28].mxu0 %v2243_v13  ;;  %v420_v13 = vld [vmem:[#allocation2 + $0x92] sm:$0xff] }
  0x62   : > { %1054 = vmatmul.mubr.f32.gmra.mrb[26].mxu1 %v2321_v55  ;;  %1765 = vmatpush3.bf16.msra.mxu0 %v1762_v20 }
  0x63   : > { %1783 = vmatpush3.bf16.msra.mxu1 %v1758_v8  ;;  %1058 = vmatprep.mubr.f32.mxu1 %v2280_v32 }
  0x64   : > { %1776 = vmatprep.subr.bf16.mxu1 %v1762_v20  ;;  %958 = vmatprep.mubr.f32.mxu0 %v371_v37 }
  0x65   : > { %1767 = vmatprep.subr.bf16.mxu0 %v1766_v38  ;;  %959 = vmatmul.mubr.f32.gmra.mrb[30].mxu0 %v2280_v32  ;;  %v647_v32 = vsub.s32 2, %v1975_v62 }
  0x66   : > { %1059 = vmatmul.mubr.f32.gmra.mrb[28].mxu1 %v2350_v10  ;;  %1769 = vmatpush3.bf16.msra.mxu0 %v1766_v38 }
  0x67   : > { %1784 = vmatpush3.bf16.msra.mxu1 %v1762_v20  ;;  %1063 = vmatprep.mubr.f32.mxu1 %v404_v40 }
  0x68   : > { %1777 = vmatprep.subr.bf16.mxu1 %v1766_v38  ;;  %1598 = vmatprep.mubr.f32.mxu0 %v2209_v59  ;;  %v648_v59 = vrot.slane %v2032_v23, %v647_v32 }
  0x69   : > { %1599 = vmatmul.mubr.f32.vlgmr.msra.gmra.mrb[32].mxu0 %v2247_v15 }
  0x6a   : > { %1064 = vmatmul.mubr.f32.gmra.mrb[30].mxu1 %v388_v56  ;;  %1601 = vmatprep.mubr.f32.mxu0 %v2283_v33 }
  0x6b   : > { %1785 = vmatpush3.bf16.msra.mxu1 %v1766_v38  ;;  %1604 = vmatprep.mubr.f32.mxu1 %v2348_v7 }
  0x6d   : > { %1602 = vmatmul.mubr.f32.gmra.mrb[34].mxu0 %v2316_v52 }
  0x6e   : > { %1605 = vmatmul.mubr.f32.vlgmr.msra.gmra.mrb[32].mxu1 %v2362_v19 }
  0x6f   : > { %1607 = vmatprep.mubr.f32.mxu1 %v371_v37 }
  0x72   : > { %1608 = vmatmul.mubr.f32.gmra.mrb[34].mxu1 %v420_v13 }
  0xfc   : > { %v1350_v41 = vpop.f32.mrb[0].mxu0 }
  0xfd   : > { %v1351_v42 = vpop.f32.mrb[1].mxu0 }
  0xfe   : > { %v1352_v43 = vadd.f32 %v1351_v42, %v1350_v41 }
 0x100   : > { %v716_v44 = vadd.f32 %v1352_v43, %v648_v59  ;;  %v1353_v46 = vpop.f32.mrb[2].mxu0 }
 0x101   : > { %v1406_v45 = vpop.f32.mrb[0].mxu1  ;;  %v1354_v47 = vpop.f32.mrb[3].mxu0 }
 0x102   : > { %v1407_v15 = vpop.f32.mrb[1].mxu1  ;;  %v1355_v48 = vadd.f32 %v1354_v47, %v1353_v46 }
 0x103   : > { %v1408_v33 = vadd.f32 %v1407_v15, %v1406_v45 }
 0x104   : > { %v721_v53 = vadd.f32 %v1355_v48, %v648_v59  ;;  %v1356_v55 = vpop.f32.mrb[4].mxu0 }
 0x105   : > { %v821_v51 = vadd.f32 %v1408_v33, %v716_v44  ;;  %v1409_v54 = vpop.f32.mrb[2].mxu1  ;;  %v1357_v57 = vpop.f32.mrb[5].mxu0 }
 0x106   : > { %v1410_v52 = vpop.f32.mrb[3].mxu1  ;;  %v1358_v62 = vadd.f32 %v1357_v57, %v1356_v55 }
 0x107   : > { %v1411_v60 = vadd.f32 %v1410_v52, %v1409_v54 }
 0x108   : > { %v726_v63 = vadd.f32 %v1358_v62, %v648_v59  ;;  %v1359_v1 = vpop.f32.mrb[6].mxu0 }
 0x109   : > { %v826_v61 = vadd.f32 %v1411_v60, %v721_v53  ;;  %v1412_v23 = vpop.f32.mrb[4].mxu1  ;;  %v1360_v3 = vpop.f32.mrb[7].mxu0 }
 0x10a   : > { %v1413_v2 = vpop.f32.mrb[5].mxu1  ;;  %v1361_v5 = vadd.f32 %v1360_v3, %v1359_v1 }
 0x10b   : > { %v1414_v4 = vadd.f32 %v1413_v2, %v1412_v23 }
 0x10c   : > { %v731_v7 = vadd.f32 %v1361_v5, %v648_v59  ;;  %v1362_v10 = vpop.f32.mrb[8].mxu0 }
 0x10d   : > { %v831_v6 = vadd.f32 %v1414_v4, %v726_v63  ;;  %v1415_v9 = vpop.f32.mrb[6].mxu1  ;;  %v1363_v12 = vpop.f32.mrb[9].mxu0 }
 0x10e   : > { %v1416_v11 = vpop.f32.mrb[7].mxu1  ;;  %v1364_v16 = vadd.f32 %v1363_v12, %v1362_v10 }
 0x10f   : > { %v1417_v14 = vadd.f32 %v1416_v11, %v1415_v9 }
 0x110   : > { %v736_v19 = vadd.f32 %v1364_v16, %v648_v59  ;;  %v1365_v28 = vpop.f32.mrb[10].mxu0 }
 0x111   : > { %v836_v17 = vadd.f32 %v1417_v14, %v731_v7  ;;  %v1418_v21 = vpop.f32.mrb[8].mxu1  ;;  %v1366_v24 = vpop.f32.mrb[11].mxu0 }
 0x112   : > { %v1419_v22 = vpop.f32.mrb[9].mxu1  ;;  %v1367_v26 = vadd.f32 %v1366_v24, %v1365_v28 }
 0x113   : > { %v1420_v25 = vadd.f32 %v1419_v22, %v1418_v21 }
 0x114   : > { %v741_v27 = vadd.f32 %v1367_v26, %v648_v59  ;;  %v1368_v49 = vpop.f32.mrb[12].mxu0 }
 0x115   : > { %v841_v39 = vadd.f32 %v1420_v25, %v736_v19  ;;  %v1421_v30 = vpop.f32.mrb[10].mxu1  ;;  %v1369_v29 = vpop.f32.mrb[13].mxu0 }
 0x116   : > { %v1422_v34 = vpop.f32.mrb[11].mxu1  ;;  %v1370_v50 = vadd.f32 %v1369_v29, %v1368_v49 }
 0x117   : > { %v1423_v58 = vadd.f32 %v1422_v34, %v1421_v30 }
 0x118   : > { %v746_v8 = vadd.f32 %v1370_v50, %v648_v59  ;;  %v1371_v35 = vpop.f32.mrb[14].mxu0 }
 0x119   : > { %v846_v31 = vadd.f32 %v1423_v58, %v741_v27  ;;  %v1424_v0 = vpop.f32.mrb[12].mxu1  ;;  %v1372_v18 = vpop.f32.mrb[15].mxu0 }
 0x11a   : > { %v1425_v20 = vpop.f32.mrb[13].mxu1  ;;  %v1373_v37 = vadd.f32 %v1372_v18, %v1371_v35 }
 0x11b   : > { %v1426_v36 = vadd.f32 %v1425_v20, %v1424_v0 }
 0x11c   : > { %v751_v40 = vadd.f32 %v1373_v37, %v648_v59  ;;  %v1462_v41 = vpop.f32.mrb[16].mxu0 }
 0x11d   : > { %v851_v38 = vadd.f32 %v1426_v36, %v746_v8  ;;  %v1427_v56 = vpop.f32.mrb[14].mxu1  ;;  %v1463_v42 = vpop.f32.mrb[17].mxu0 }
 0x11e   : > { %v1428_v13 = vpop.f32.mrb[15].mxu1  ;;  %v1464_v44 = vadd.f32 %v1463_v42, %v1462_v41 }
 0x11f   : > { %v1429_v32 = vadd.f32 %v1428_v13, %v1427_v56 }
 0x120   : > { %v926_v15 = vadd.f32 %v1464_v44, %v821_v51  ;;  %v1465_v33 = vpop.f32.mrb[18].mxu0 }
 0x121   : > { %v856_v43 = vadd.f32 %v1429_v32, %v751_v40  ;;  %v1518_v45 = vpop.f32.mrb[16].mxu1  ;;  %v1466_v48 = vpop.f32.mrb[19].mxu0 }
 0x122   : > { %v1519_v46 = vpop.f32.mrb[17].mxu1  ;;  %v1467_v53 = vadd.f32 %v1466_v48, %v1465_v33 }
 0x123   : > { %v1520_v47 = vadd.f32 %v1519_v46, %v1518_v45 }
 0x124   : > { %v931_v57 = vadd.f32 %v1467_v53, %v826_v61  ;;  %v1468_v59 = vpop.f32.mrb[20].mxu0 }
 0x125   : > { %v1521_v54 = vpop.f32.mrb[18].mxu1  ;;  %v1031_v55 = vadd.f32 %v1520_v47, %v926_v15  ;;  %v1469_v62 = vpop.f32.mrb[21].mxu0 }
 0x126   : > { %v1522_v52 = vpop.f32.mrb[19].mxu1  ;;  %v1470_v63 = vadd.f32 %v1469_v62, %v1468_v59 }
 0x127   : > { %v1523_v60 = vadd.f32 %v1522_v52, %v1521_v54 }
 0x128   : > { %v936_v3 = vadd.f32 %v1470_v63, %v831_v6  ;;  %v1471_v5 = vpop.f32.mrb[22].mxu0 }
 0x129   : > { %v1524_v23 = vpop.f32.mrb[20].mxu1  ;;  %v1036_v1 = vadd.f32 %v1523_v60, %v931_v57  ;;  %v1472_v7 = vpop.f32.mrb[23].mxu0 }
 0x12a   : > { %v1525_v2 = vpop.f32.mrb[21].mxu1  ;;  %v1473_v51 = vadd.f32 %v1472_v7, %v1471_v5 }
 0x12b   : > { %v1526_v4 = vadd.f32 %v1525_v2, %v1524_v23 }
 0x12c   : > { %v941_v12 = vadd.f32 %v1473_v51, %v836_v17  ;;  %v1474_v16 = vpop.f32.mrb[24].mxu0 }
 0x12d   : > { %v1527_v9 = vpop.f32.mrb[22].mxu1  ;;  %v1041_v10 = vadd.f32 %v1526_v4, %v936_v3  ;;  %v1475_v19 = vpop.f32.mrb[25].mxu0 }
 0x12e   : > { %v1528_v11 = vpop.f32.mrb[23].mxu1  ;;  %v1476_v61 = vadd.f32 %v1475_v19, %v1474_v16 }
 0x12f   : > { %v1529_v14 = vadd.f32 %v1528_v11, %v1527_v9 }
 0x130   : > { %v946_v24 = vadd.f32 %v1476_v61, %v841_v39  ;;  %v1477_v26 = vpop.f32.mrb[26].mxu0 }
 0x131   : > { %v1530_v21 = vpop.f32.mrb[24].mxu1  ;;  %v1046_v28 = vadd.f32 %v1529_v14, %v941_v12  ;;  %v1478_v27 = vpop.f32.mrb[27].mxu0 }
 0x132   : > { %v1531_v22 = vpop.f32.mrb[25].mxu1  ;;  %v1479_v6 = vadd.f32 %v1478_v27, %v1477_v26 }
 0x133   : > { %v1532_v25 = vadd.f32 %v1531_v22, %v1530_v21 }
 0x134   : > { %v951_v29 = vadd.f32 %v1479_v6, %v846_v31  ;;  %v1480_v50 = vpop.f32.mrb[28].mxu0 }
 0x135   : > { %v1533_v30 = vpop.f32.mrb[26].mxu1  ;;  %v1051_v49 = vadd.f32 %v1532_v25, %v946_v24  ;;  %v1481_v17 = vpop.f32.mrb[29].mxu0 }
 0x136   : > { %v1534_v34 = vpop.f32.mrb[27].mxu1  ;;  %v1482_v8 = vadd.f32 %v1481_v17, %v1480_v50 }
 0x137   : > { %v1535_v58 = vadd.f32 %v1534_v34, %v1533_v30 }
 0x138   : > { %v956_v18 = vadd.f32 %v1482_v8, %v851_v38  ;;  %v1483_v37 = vpop.f32.mrb[30].mxu0 }
 0x139   : > { %v1536_v0 = vpop.f32.mrb[28].mxu1  ;;  %v1056_v35 = vadd.f32 %v1535_v58, %v951_v29  ;;  %v1484_v39 = vpop.f32.mrb[31].mxu0 }
 0x13a   : > { %v1537_v20 = vpop.f32.mrb[29].mxu1  ;;  %v1485_v40 = vadd.f32 %v1484_v39, %v1483_v37 }
 0x13b   : > { %v1538_v36 = vadd.f32 %v1537_v20, %v1536_v0 }
 0x13c   : > { %v961_v41 = vadd.f32 %v1485_v40, %v856_v43  ;;  %v1600_v31 = vpop.f32.mrb[32].mxu0 }
 0x13d   : > { %v1539_v56 = vpop.f32.mrb[30].mxu1  ;;  %v1061_v13 = vadd.f32 %v1538_v36, %v956_v18  ;;  %v1141_v38 = vadd.f32 %v1600_v31, %v1036_v1  ;;  %v1135_v44 = vpop.f32.mrb[33].mxu0 }
 0x13e   : > { %v1540_v32 = vpop.f32.mrb[31].mxu1  ;;  %v1136_v46 = vadd.f32 %v1135_v44, %v1031_v55 }
 0x13f   : > { %v1541_v42 = vadd.f32 %v1540_v32, %v1539_v56  ;;  %1175 = vst [vmem:[%s2449_s13 + $0x8] sm:$0xff] %v1141_v38  ;;  %v1197_v43 = vmul.f32 %v1141_v38, %v1141_v38 }
 0x140   : > { %1174 = vst [vmem:[%s2449_s13] sm:$0xff] %v1136_v46  ;;  %v1182_v48 = vadd.f32 %v1141_v38, %v1136_v46  ;;  %v1196_v53 = vmul.f32 %v1136_v46, %v1136_v46  ;;  %v1603_v52 = vpop.f32.mrb[34].mxu0 }
 0x141   : > { %v1606_v45 = vpop.f32.mrb[32].mxu1  ;;  %v1066_v15 = vadd.f32 %v1541_v42, %v961_v41  ;;  %v1151_v57 = vadd.f32 %v1603_v52, %v1046_v28  ;;  %v1145_v60 = vpop.f32.mrb[35].mxu0 }
 0x142   : > { %v1161_v47 = vadd.f32 %v1606_v45, %v1056_v35  ;;  %v1155_v33 = vpop.f32.mrb[33].mxu1  ;;  %v1204_v59 = vadd.f32 %v1197_v43, %v1196_v53  ;;  %v1146_v62 = vadd.f32 %v1145_v60, %v1041_v10 }
 0x143   : > { %v1156_v54 = vadd.f32 %v1155_v33, %v1051_v49  ;;  %1177 = vst [vmem:[%s2449_s13 + $0x18] sm:$0xff] %v1151_v57  ;;  %v1199_v4 = vmul.f32 %v1151_v57, %v1151_v57 }
 0x144   : > { %1179 = vst [vmem:[%s2449_s13 + $0x28] sm:$0xff] %v1161_v47  ;;  %1176 = vst [vmem:[%s2449_s13 + $0x10] sm:$0xff] %v1146_v62  ;;  %v1183_v1 = vadd.f32 %v1182_v48, %v1146_v62  ;;  %v1198_v2 = vmul.f32 %v1146_v62, %v1146_v62  ;;  %v1201_v12 = vmul.f32 %v1161_v47, %v1161_v47 }
 0x145   : > { %1178 = vst [vmem:[%s2449_s13 + $0x20] sm:$0xff] %v1156_v54  ;;  %v1609_v55 = vpop.f32.mrb[34].mxu1  ;;  %v1200_v51 = vmul.f32 %v1156_v54, %v1156_v54 }
 0x146   : > { %v1171_v63 = vadd.f32 %v1609_v55, %v1066_v15  ;;  %v1165_v23 = vpop.f32.mrb[35].mxu1  ;;  %v1184_v5 = vadd.f32 %v1183_v1, %v1151_v57  ;;  %v1205_v7 = vadd.f32 %v1204_v59, %v1198_v2 }
 0x147   : > { %v1166_v3 = vadd.f32 %v1165_v23, %v1061_v13 }
 0x148   : > { %1181 = vst [vmem:[%s2449_s13 + $0x38] sm:$0xff] %v1171_v63  ;;  %v1206_v9 = vadd.f32 %v1205_v7, %v1199_v4  ;;  %v1185_v11 = vadd.f32 %v1184_v5, %v1156_v54  ;;  %v1203_v21 = vmul.f32 %v1171_v63, %v1171_v63 }
 0x149   : > { %1180 = vst [vmem:[%s2449_s13 + $0x30] sm:$0xff] %v1166_v3  ;;  %v1202_v19 = vmul.f32 %v1166_v3, %v1166_v3 }
 0x14a   : > { %v1186_v14 = vadd.f32 %v1185_v11, %v1161_v47  ;;  %v1207_v16 = vadd.f32 %v1206_v9, %v1200_v51 }
 0x14c   : > { %v1187_v10 = vadd.f32 %v1186_v14, %v1166_v3  ;;  %v1208_v61 = vadd.f32 %v1207_v16, %v1201_v12 }
 0x14e   : > { %v1188_v28 = vadd.f32 %v1187_v10, %v1171_v63  ;;  %v1209_v22 = vadd.f32 %v1208_v61, %v1202_v19 }
 0x150   : > { %v1189_v24 = vrot.slane %v1188_v28, 4  ;;  %v1210_v25 = vadd.f32 %v1209_v22, %v1203_v21 }
 0x152   : > { %v1190_v26 = vadd.f32 %v1189_v24, %v1188_v28  ;;  %v1211_v27 = vrot.slane %v1210_v25, 4 }
 0x154   : > { %v1191_v6 = vrot.slane %v1190_v26, 2  ;;  %v1212_v30 = vadd.f32 %v1211_v27, %v1210_v25 }
 0x156   : > { %v1192_v49 = vadd.f32 %v1191_v6, %v1190_v26  ;;  %v1213_v34 = vrot.slane %v1212_v30, 2 }
 0x158   : > { %v1193_v29 = vrot.slane %v1192_v49, 1  ;;  %v1214_v58 = vadd.f32 %v1213_v34, %v1212_v30 }
 0x15a   : > { %v1194_v50 = vadd.f32 %v1193_v29, %v1192_v49  ;;  %v1215_v17 = vrot.slane %v1214_v58, 1 }
 0x15c   : > { %1195 = vst [vmem:[%s208_s18] sm:$0x1] %v1194_v50  ;;  %v1216_v8 = vadd.f32 %v1215_v17, %v1214_v58 }
 0x15e   : > { %1217 = vst [vmem:[%s208_s18 + $0x1] sm:$0x1] %v1216_v8 }
 0x15f PF: > { %s15_s15 = sadd.s32 1, %s1801_s15  }
 0x160   : > { %p12_p4 = scmp.ge.s32.totalorder %s15_s15, 4  }
 0x162   :  { %14 = sbr.rel (!%p12_p4) target bundleno = 1 (0x1), region = 77 }

// kernel: _lambda_.3
= control target key start
LH: loop header
LB: loop body
LE: loop exit
PB: predicated region body
PF: predicated region fallthrough
CT: control target
= control target key end

     0   :  { %s2045_s15 = smov 0   ;;  %s2047_s16 = smov 0   ;;  %s2767_s0 = inlined_call_operand.vmem [shape: f32[4,2,8,8,128], index: 0, kind: input, shape index: {}]   ;;  %s2768_s1 = inlined_call_operand.vmem [shape: f32[1152,128], index: 1, kind: input, shape index: {}]   ;;  %s2769_s2 = inlined_call_operand.vmem [shape: f32[8,128], index: 2, kind: input, shape index: {}]   ;;  %s2770_s3 = inlined_call_operand.vmem [shape: f32[2,64,128], index: 3, kind: output, shape index: {0}]   ;;  %s2771_s4 = inlined_call_operand.vmem [shape: f32[2,2,128], index: 4, kind: output, shape index: {1}]  }
   0x1   :  { %s2049_s17 = smov 0  }
   0x2 LB: > { %s1485_s18 = sadd.s32 4294967295, %s2017_s17   ;;  %s2062_s19 = sadd.s32 1, %s2017_s17   ;;  %s2017_s17 = sphi %s2049_s17, %s2774_s17   ;;  %s2013_s16 = sphi %s2047_s16, %s2773_s16   ;;  %s2009_s15 = sphi %s2045_s15, %s2772_s15  }
   0x3   : > { %s19_s20 = ssub.s32 %s2017_s17, %s2062_s19  ;;  %s22_s21 = sadd.s32 1, %s2013_s16 }
   0x4   : > { %p20_p0 = scmp.eq.s32.totalorder %s19_s20, 0  ;;  %p29_p1 = scmp.ne.s32.totalorder %s2013_s16, %s2009_s15 }
   0x5   : > { %p30_p2 = scmp.eq.s32.totalorder %s2017_s17, 0  ;;  %p1488_p4 = scmp.ge.s32.totalorder %s2017_s17, 2 }
   0x6   : > { %s2071_s22 = scalar_select %p20_p0, %s2013_s16, %s22_s21  }
   0x7   : > { %p31_p3 = por %p30_p2, %p29_p1  ;;  %155 = sbr.rel (%p1488_p4) target bundleno = 34 (0x22), region = 24 }
   0xe   : > { %158 = sbr.rel (!%p31_p3) target bundleno = 34 (0x22), region = 28  ;;  %s160_s23 = sand.u32 (%p31_p3), 1, %s2013_s16  }
   0xf   : > { %s1500_s24 = sshll.u32 (%p31_p3), %s2017_s17, 6  ;;  %s1489_s25 = sshll.u32 (%p31_p3), %s160_s23, 8 }
  0x10   : > { %s2079_s28 = scalar_lea.vmem (%p31_p3), %s2767_s0, %s1500_s24  ;;  %s2084_s29 = scalar_lea.vmem (%p31_p3), [#allocation4], %s1489_s25 }
  0x11   : > { %v255_v0 = vld [vmem:[%s2079_s28] sm:$0xff] (%p31_p3)  ;;  %v257_v1 = vld [vmem:[%s2079_s28 + $0x8] sm:$0xff] (%p31_p3)  ;;  %v259_v2 = vld [vmem:[%s2079_s28 + $0x10] sm:$0xff] (%p31_p3) }
  0x12   : > { %256 = vst [vmem:[%s2084_s29] sm:$0xff] (%p31_p3), %v255_v0  ;;  %258 = vst [vmem:[%s2084_s29 + $0x8] sm:$0xff] (%p31_p3), %v257_v1  ;;  %v261_v3 = vld [vmem:[%s2079_s28 + $0x18] sm:$0xff] (%p31_p3)  ;;  %v263_v4 = vld [vmem:[%s2079_s28 + $0x20] sm:$0xff] (%p31_p3) }
  0x13   : > { %260 = vst [vmem:[%s2084_s29 + $0x10] sm:$0xff] (%p31_p3), %v259_v2  ;;  %v265_v5 = vld [vmem:[%s2079_s28 + $0x28] sm:$0xff] (%p31_p3)  ;;  %262 = vst [vmem:[%s2084_s29 + $0x18] sm:$0xff] (%p31_p3), %v261_v3  ;;  %v267_v6 = vld [vmem:[%s2079_s28 + $0x30] sm:$0xff] (%p31_p3) }
  0x14   : > { %264 = vst [vmem:[%s2084_s29 + $0x20] sm:$0xff] (%p31_p3), %v263_v4  ;;  %266 = vst [vmem:[%s2084_s29 + $0x28] sm:$0xff] (%p31_p3), %v265_v5  ;;  %v269_v7 = vld [vmem:[%s2079_s28 + $0x38] sm:$0xff] (%p31_p3)  ;;  %v271_v8 = vld [vmem:[%s2079_s28 + $0x80] sm:$0xff] (%p31_p3) }
  0x15   : > { %268 = vst [vmem:[%s2084_s29 + $0x30] sm:$0xff] %v267_v6  ;;  %270 = vst [vmem:[%s2084_s29 + $0x38] sm:$0xff] %v269_v7  ;;  %v273_v9 = vld [vmem:[%s2079_s28 + $0x88] sm:$0xff]  ;;  %v275_v10 = vld [vmem:[%s2079_s28 + $0x90] sm:$0xff] }
  0x16   : > { %272 = vst [vmem:[%s2084_s29 + $0x40] sm:$0xff] %v271_v8  ;;  %v277_v11 = vld [vmem:[%s2079_s28 + $0x98] sm:$0xff]  ;;  %274 = vst [vmem:[%s2084_s29 + $0x48] sm:$0xff] %v273_v9  ;;  %v279_v12 = vld [vmem:[%s2079_s28 + $0xa0] sm:$0xff] }
  0x17   : > { %276 = vst [vmem:[%s2084_s29 + $0x50] sm:$0xff] %v275_v10  ;;  %278 = vst [vmem:[%s2084_s29 + $0x58] sm:$0xff] %v277_v11  ;;  %v281_v13 = vld [vmem:[%s2079_s28 + $0xa8] sm:$0xff]  ;;  %v283_v14 = vld [vmem:[%s2079_s28 + $0xb0] sm:$0xff] }
  0x18   : > { %280 = vst [vmem:[%s2084_s29 + $0x60] sm:$0xff] %v279_v12  ;;  %282 = vst [vmem:[%s2084_s29 + $0x68] sm:$0xff] %v281_v13  ;;  %v285_v15 = vld [vmem:[%s2079_s28 + $0xb8] sm:$0xff]  ;;  %v287_v16 = vld [vmem:[%s2079_s28 + $0x100] sm:$0xff] }
  0x19   : > { %284 = vst [vmem:[%s2084_s29 + $0x70] sm:$0xff] %v283_v14  ;;  %v289_v17 = vld [vmem:[%s2079_s28 + $0x108] sm:$0xff]  ;;  %286 = vst [vmem:[%s2084_s29 + $0x78] sm:$0xff] %v285_v15  ;;  %v291_v18 = vld [vmem:[%s2079_s28 + $0x110] sm:$0xff] }
  0x1a   : > { %288 = vst [vmem:[%s2084_s29 + $0x80] sm:$0xff] %v287_v16  ;;  %290 = vst [vmem:[%s2084_s29 + $0x88] sm:$0xff] %v289_v17  ;;  %v293_v19 = vld [vmem:[%s2079_s28 + $0x118] sm:$0xff]  ;;  %v295_v20 = vld [vmem:[%s2079_s28 + $0x120] sm:$0xff] }
  0x1b   : > { %292 = vst [vmem:[%s2084_s29 + $0x90] sm:$0xff] %v291_v18  ;;  %294 = vst [vmem:[%s2084_s29 + $0x98] sm:$0xff] %v293_v19  ;;  %v297_v21 = vld [vmem:[%s2079_s28 + $0x128] sm:$0xff]  ;;  %v299_v22 = vld [vmem:[%s2079_s28 + $0x130] sm:$0xff] }
  0x1c   : > { %296 = vst [vmem:[%s2084_s29 + $0xa0] sm:$0xff] %v295_v20  ;;  %v301_v23 = vld [vmem:[%s2079_s28 + $0x138] sm:$0xff]  ;;  %298 = vst [vmem:[%s2084_s29 + $0xa8] sm:$0xff] %v297_v21  ;;  %v303_v24 = vld [vmem:[%s2079_s28 + $0x180] sm:$0xff] }
  0x1d   : > { %300 = vst [vmem:[%s2084_s29 + $0xb0] sm:$0xff] %v299_v22  ;;  %302 = vst [vmem:[%s2084_s29 + $0xb8] sm:$0xff] %v301_v23  ;;  %v305_v25 = vld [vmem:[%s2079_s28 + $0x188] sm:$0xff]  ;;  %v307_v26 = vld [vmem:[%s2079_s28 + $0x190] sm:$0xff] }
  0x1e   : > { %304 = vst [vmem:[%s2084_s29 + $0xc0] sm:$0xff] %v303_v24  ;;  %306 = vst [vmem:[%s2084_s29 + $0xc8] sm:$0xff] %v305_v25  ;;  %v309_v27 = vld [vmem:[%s2079_s28 + $0x198] sm:$0xff]  ;;  %v311_v28 = vld [vmem:[%s2079_s28 + $0x1a0] sm:$0xff] }
  0x1f   : > { %308 = vst [vmem:[%s2084_s29 + $0xd0] sm:$0xff] %v307_v26  ;;  %v313_v29 = vld [vmem:[%s2079_s28 + $0x1a8] sm:$0xff]  ;;  %310 = vst [vmem:[%s2084_s29 + $0xd8] sm:$0xff] %v309_v27  ;;  %v315_v30 = vld [vmem:[%s2079_s28 + $0x1b0] sm:$0xff] }
  0x20   : > { %312 = vst [vmem:[%s2084_s29 + $0xe0] sm:$0xff] %v311_v28  ;;  %314 = vst [vmem:[%s2084_s29 + $0xe8] sm:$0xff] %v313_v29  ;;  %v317_v31 = vld [vmem:[%s2079_s28 + $0x1b8] sm:$0xff] }
  0x21   : > { %316 = vst [vmem:[%s2084_s29 + $0xf0] sm:$0xff] %v315_v30  ;;  %318 = vst [vmem:[%s2084_s29 + $0xf8] sm:$0xff] %v317_v31 }
  0x22 PF: > { %p1492_p5 = scmp.ge.s32.totalorder %s2017_s17, 1  ;;  %p323_p6 = scmp.lt.s32.totalorder %s2017_s17, 3 }
  0x24   : > { %p324_p7 = pnand %p1492_p5, %p323_p6 }
  0x25   : > { %v692_v32 = vld [vmem:[%s2768_s1 + $0x80] sm:$0xff] (!%p324_p7)  ;;  %v693_v33 = vld [vmem:[%s2768_s1 + $0x88] sm:$0xff] (!%p324_p7)  ;;  %v2019_v39 = vmov (!%p324_p7), 0.0   ;;  %v694_v44 = vld [vmem:[%s2768_s1 + $0x90] sm:$0xff] (!%p324_p7)  ;;  %s330_s21 = sand.u32 (!%p324_p7), 1, %s2009_s15   ;;  %p359_p8 = scmp.lt.s32.totalorder (!%p324_p7), %s1485_s18, 1 }
  0x26   : > { %327 = sbr.rel (%p324_p7) target bundleno = 387 (0x183), region = 66  ;;  %v724_v34 = vld [vmem:[%s2768_s1 + $0x180] sm:$0xff] (!%p324_p7)  ;;  %v1794_v35 = vpack.c.bf16 (!%p324_p7), %v693_v33, %v692_v32  ;;  %v725_v36 = vld [vmem:[%s2768_s1 + $0x188] sm:$0xff] (!%p324_p7)  ;;  %425 = vst [vmem:[#allocation2] sm:$0xff] (!%p324_p7), %v2019_v39  ;;  %426 = vst [vmem:[#allocation2 + $0x8] sm:$0x3] (!%p324_p7), %v2019_v39 }
  0x27   : > { %v676_v37 = vld [vmem:[%s2768_s1] sm:$0xff] (!%p324_p7)  ;;  %v677_v38 = vld [vmem:[%s2768_s1 + $0x8] sm:$0xff] (!%p324_p7)  ;;  %428 = vst [vmem:[#allocation2 + $0x90] sm:$0xff] (!%p324_p7), %v2019_v39  ;;  %429 = vst [vmem:[#allocation2 + $0x98] sm:$0x3] (!%p324_p7), %v2019_v39  ;;  %v1826_v40 = vpack.c.bf16 (!%p324_p7), %v725_v36, %v724_v34  ;;  %s1493_s12 = sshll.u32 (!%p324_p7), %s330_s21, 8 }
  0x28   : > { %431 = vst [vmem:[#allocation2 + $0x10] sm:$0x1] (!%p324_p7), %v2019_v39  ;;  %432 = vst [vmem:[#allocation2 + $0x20] sm:$0x1] (!%p324_p7), %v2019_v39  ;;  %v1796_v41 = vpack.c.bf16 (!%p324_p7), %v677_v38, %v676_v37  ;;  %v708_v42 = vld [vmem:[%s2768_s1 + $0x100] sm:$0xff] (!%p324_p7)  ;;  %v709_v43 = vld [vmem:[%s2768_s1 + $0x108] sm:$0xff] (!%p324_p7)  ;;  %1795 = vmatprep.subr.bf16.mxu0 (!%p324_p7), %v1794_v35 }
  0x29   : > { %433 = vst [vmem:[#allocation2 + $0x30] sm:$0x1] (!%p324_p7), %v2019_v39  ;;  %434 = vst [vmem:[#allocation2 + $0x40] sm:$0x1] (!%p324_p7), %v2019_v39  ;;  %v1828_v45 = vpack.c.bf16 (!%p324_p7), %v709_v43, %v708_v42  ;;  %v695_v46 = vld [vmem:[%s2768_s1 + $0x98] sm:$0xff] (!%p324_p7)  ;;  %v726_v47 = vld [vmem:[%s2768_s1 + $0x190] sm:$0xff] (!%p324_p7)  ;;  %1827 = vmatprep.subr.bf16.mxu1 (!%p324_p7), %v1826_v40 }
  0x2a   : > { %435 = vst [vmem:[#allocation2 + $0x50] sm:$0x1] (!%p324_p7), %v2019_v39  ;;  %436 = vst [vmem:[#allocation2 + $0x60] sm:$0x1] (!%p324_p7), %v2019_v39  ;;  %v727_v48 = vld [vmem:[%s2768_s1 + $0x198] sm:$0xff] (!%p324_p7)  ;;  %1797 = vmatpush3.bf16.msra.mxu0 (!%p324_p7), %v1796_v41  ;;  %v1798_v49 = vpack.c.bf16 (!%p324_p7), %v695_v46, %v694_v44  ;;  %v678_v51 = vld [vmem:[%s2768_s1 + $0x10] sm:$0xff] (!%p324_p7) }
  0x2b   : > { %437 = vst [vmem:[#allocation2 + $0x70] sm:$0x1] (!%p324_p7), %v2019_v39  ;;  %438 = vst [vmem:[#allocation2 + $0x80] sm:$0x1] (!%p324_p7), %v2019_v39  ;;  %v1830_v50 = vpack.c.bf16 (!%p324_p7), %v727_v48, %v726_v47  ;;  %v679_v52 = vld [vmem:[%s2768_s1 + $0x18] sm:$0xff] (!%p324_p7)  ;;  %v710_v53 = vld [vmem:[%s2768_s1 + $0x110] sm:$0xff] (!%p324_p7)  ;;  %1829 = vmatpush3.bf16.msra.mxu1 (!%p324_p7), %v1828_v45 }
  0x2c   : > { %441 = vst [vmem:[#allocation2 + $0x19] sm:$0x1] (!%p324_p7), %v2019_v39  ;;  %442 = vst [vmem:[#allocation2 + $0x29] sm:$0x1] (!%p324_p7), %v2019_v39  ;;  %v1800_v54 = vpack.c.bf16 (!%p324_p7), %v679_v52, %v678_v51  ;;  %v711_v55 = vld [vmem:[%s2768_s1 + $0x118] sm:$0xff] (!%p324_p7)  ;;  %v696_v56 = vld [vmem:[%s2768_s1 + $0xa0] sm:$0xff] (!%p324_p7)  ;;  %1799 = vmatprep.subr.bf16.mxu0 (!%p324_p7), %v1798_v49 }
  0x2d   : > { %443 = vst [vmem:[#allocation2 + $0x39] sm:$0x1] %v2019_v39  ;;  %444 = vst [vmem:[#allocation2 + $0x49] sm:$0x1] %v2019_v39  ;;  %v697_v57 = vld [vmem:[%s2768_s1 + $0xa8] sm:$0xff]  ;;  %1831 = vmatprep.subr.bf16.mxu1 %v1830_v50  ;;  %v1832_v58 = vpack.c.bf16 %v711_v55, %v710_v53  ;;  %v728_v60 = vld [vmem:[%s2768_s1 + $0x1a0] sm:$0xff] }
  0x2e   : > { %445 = vst [vmem:[#allocation2 + $0x59] sm:$0x1] %v2019_v39  ;;  %446 = vst [vmem:[#allocation2 + $0x69] sm:$0x1] %v2019_v39  ;;  %v1802_v59 = vpack.c.bf16 %v697_v57, %v696_v56  ;;  %v729_v61 = vld [vmem:[%s2768_s1 + $0x1a8] sm:$0xff]  ;;  %v680_v62 = vld [vmem:[%s2768_s1 + $0x20] sm:$0xff]  ;;  %1801 = vmatpush3.bf16.msra.mxu0 %v1800_v54 }
  0x2f   : > { %447 = vst [vmem:[#allocation2 + $0x79] sm:$0x1] %v2019_v39  ;;  %448 = vst [vmem:[#allocation2 + $0x89] sm:$0x1] %v2019_v39  ;;  %v1834_v63 = vpack.c.bf16 %v729_v61, %v728_v60  ;;  %v681_v0 = vld [vmem:[%s2768_s1 + $0x28] sm:$0xff]  ;;  %v712_v1 = vld [vmem:[%s2768_s1 + $0x120] sm:$0xff]  ;;  %1833 = vmatpush3.bf16.msra.mxu1 %v1832_v58 }
  0x30   : > { %430 = vst [vmem:[#allocation2] sm:$0x1] %v2019_v39  ;;  %440 = vst [vmem:[#allocation2 + $0x9] sm:$0x1] %v2019_v39  ;;  %v713_v2 = vld [vmem:[%s2768_s1 + $0x128] sm:$0xff]  ;;  %v1804_v3 = vpack.c.bf16 %v681_v0, %v680_v62  ;;  %v698_v4 = vld [vmem:[%s2768_s1 + $0xb0] sm:$0xff]  ;;  %1803 = vmatprep.subr.bf16.mxu0 %v1802_v59 }
  0x31   : > { %439 = vst [vmem:[#allocation2 + $0x90] sm:$0x1] %v2019_v39  ;;  %449 = vst [vmem:[#allocation2 + $0x99] sm:$0x1] %v2019_v39  ;;  %v699_v5 = vld [vmem:[%s2768_s1 + $0xb8] sm:$0xff]  ;;  %v730_v6 = vld [vmem:[%s2768_s1 + $0x1b0] sm:$0xff]  ;;  %v1836_v7 = vpack.c.bf16 %v713_v2, %v712_v1  ;;  %1835 = vmatprep.subr.bf16.mxu1 %v1834_v63 }
  0x32   : > { %v1806_v8 = vpack.c.bf16 %v699_v5, %v698_v4  ;;  %v731_v9 = vld [vmem:[%s2768_s1 + $0x1b8] sm:$0xff]  ;;  %v682_v10 = vld [vmem:[%s2768_s1 + $0x30] sm:$0xff]  ;;  %v700_v15 = vld [vmem:[%s2768_s1 + $0xc0] sm:$0xff]  ;;  %1805 = vmatpush3.bf16.msra.mxu0 %v1804_v3  ;;  %s2324_s27 = scalar_lea.vmem [#allocation4], %s1493_s12  ;;  %s2776_s18 = smov (!%p359_p8, %s1485_s18), 1 }
  0x33   : > { %v683_v11 = vld [vmem:[%s2768_s1 + $0x38] sm:$0xff]  ;;  %v1838_v12 = vpack.c.bf16 %v731_v9, %v730_v6  ;;  %v714_v13 = vld [vmem:[%s2768_s1 + $0x130] sm:$0xff]  ;;  %v701_v16 = vld [vmem:[%s2768_s1 + $0xc8] sm:$0xff]  ;;  %1837 = vmatpush3.bf16.msra.mxu1 %v1836_v7  ;;  %s1501_s11 = sshll.u32 %s2776_s18, 6  ;;  %s1496_s20 = sshll.u32 %s2776_s18, 1 }
  0x34   : > { %v715_v14 = vld [vmem:[%s2768_s1 + $0x138] sm:$0xff]  ;;  %v732_v17 = vld [vmem:[%s2768_s1 + $0x1c0] sm:$0xff]  ;;  %v733_v18 = vld [vmem:[%s2768_s1 + $0x1c8] sm:$0xff]  ;;  %v1808_v19 = vpack.c.bf16 %v683_v11, %v682_v10  ;;  %1807 = vmatprep.subr.bf16.mxu0 %v1806_v8  ;;  %v1810_v21 = vpack.c.bf16 %v701_v16, %v700_v15  ;;  %s2743_s17 = scalar_lea.vmem %s2770_s3, %s1501_s11  ;;  %s367_s25 = scalar_lea.vmem %s2771_s4, %s1496_s20 }
  0x35   : > { %v1840_v20 = vpack.c.bf16 %v715_v14, %v714_v13  ;;  %v684_v22 = vld [vmem:[%s2768_s1 + $0x40] sm:$0xff]  ;;  %v685_v23 = vld [vmem:[%s2768_s1 + $0x48] sm:$0xff]  ;;  %1839 = vmatprep.subr.bf16.mxu1 %v1838_v12  ;;  %v1842_v25 = vpack.c.bf16 %v733_v18, %v732_v17  ;;  %v702_v27 = vld [vmem:[%s2768_s1 + $0xd0] sm:$0xff] }
  0x36   : > { %v716_v24 = vld [vmem:[%s2768_s1 + $0x140] sm:$0xff]  ;;  %v717_v26 = vld [vmem:[%s2768_s1 + $0x148] sm:$0xff]  ;;  %v703_v28 = vld [vmem:[%s2768_s1 + $0xd8] sm:$0xff]  ;;  %1809 = vmatpush3.bf16.msra.mxu0 %v1808_v19  ;;  %v1812_v31 = vpack.c.bf16 %v685_v23, %v684_v22 }
  0x37   : > { %v734_v29 = vld [vmem:[%s2768_s1 + $0x1d0] sm:$0xff]  ;;  %v735_v30 = vld [vmem:[%s2768_s1 + $0x1d8] sm:$0xff]  ;;  %1841 = vmatpush3.bf16.msra.mxu1 %v1840_v20  ;;  %1811 = vmatprep.subr.bf16.mxu0 %v1810_v21  ;;  %v1844_v33 = vpack.c.bf16 %v717_v26, %v716_v24  ;;  %v1814_v34 = vpack.c.bf16 %v703_v28, %v702_v27  ;;  %v704_v39 = vld [vmem:[%s2768_s1 + $0xe0] sm:$0xff] }
  0x38   : > { %v686_v32 = vld [vmem:[%s2768_s1 + $0x50] sm:$0xff]  ;;  %v687_v35 = vld [vmem:[%s2768_s1 + $0x58] sm:$0xff]  ;;  %1843 = vmatprep.subr.bf16.mxu1 %v1842_v25  ;;  %v1846_v38 = vpack.c.bf16 %v735_v30, %v734_v29  ;;  %v705_v40 = vld [vmem:[%s2768_s1 + $0xe8] sm:$0xff] }
  0x39   : > { %v718_v36 = vld [vmem:[%s2768_s1 + $0x150] sm:$0xff]  ;;  %v719_v37 = vld [vmem:[%s2768_s1 + $0x158] sm:$0xff]  ;;  %v736_v41 = vld [vmem:[%s2768_s1 + $0x1e0] sm:$0xff]  ;;  %v1816_v45 = vpack.c.bf16 %v687_v35, %v686_v32  ;;  %v1818_v50 = vpack.c.bf16 %v705_v40, %v704_v39 }
  0x3a   : > { %v737_v42 = vld [vmem:[%s2768_s1 + $0x1e8] sm:$0xff]  ;;  %v688_v43 = vld [vmem:[%s2768_s1 + $0x60] sm:$0xff]  ;;  %1813 = vmatpush3.bf16.msra.mxu0 %v1812_v31  ;;  %v706_v48 = vld [vmem:[%s2768_s1 + $0xf0] sm:$0xff]  ;;  %v1848_v49 = vpack.c.bf16 %v719_v37, %v718_v36 }
  0x3b   : > { %v689_v44 = vld [vmem:[%s2768_s1 + $0x68] sm:$0xff]  ;;  %v720_v46 = vld [vmem:[%s2768_s1 + $0x160] sm:$0xff]  ;;  %1845 = vmatpush3.bf16.msra.mxu1 %v1844_v33  ;;  %1815 = vmatprep.subr.bf16.mxu0 %v1814_v34  ;;  %v707_v51 = vld [vmem:[%s2768_s1 + $0xf8] sm:$0xff]  ;;  %v1850_v54 = vpack.c.bf16 %v737_v42, %v736_v41 }
  0x3c   : > { %v721_v47 = vld [vmem:[%s2768_s1 + $0x168] sm:$0xff]  ;;  %v368_v53 = vld [vmem:[%s2324_s27] sm:$0xff]  ;;  %1847 = vmatprep.subr.bf16.mxu1 %v1846_v38  ;;  %v738_v58 = vld [vmem:[%s2768_s1 + $0x1f0] sm:$0xff]  ;;  %v1820_v62 = vpack.c.bf16 %v689_v44, %v688_v43  ;;  %v1822_v3 = vpack.c.bf16 %v707_v51, %v706_v48 }
  0x3d   : > { %v475_v52 = vld [vmem:[#allocation2 + $0x1] sm:$0xff]  ;;  %v739_v59 = vld [vmem:[%s2768_s1 + $0x1f8] sm:$0xff]  ;;  %v690_v63 = vld [vmem:[%s2768_s1 + $0x70] sm:$0xff]  ;;  %v1852_v2 = vpack.c.bf16 %v721_v47, %v720_v46 }
  0x3e   : > { %888 = vmatprep.mubr.f32.mxu0 %v475_v52  ;;  %v376_v55 = vld [vmem:[%s2324_s27 + $0x40] sm:$0xff]  ;;  %1817 = vmatpush3.bf16.msra.mxu0 %v1816_v45  ;;  %v691_v0 = vld [vmem:[%s2768_s1 + $0x78] sm:$0xff]  ;;  %v722_v1 = vld [vmem:[%s2768_s1 + $0x170] sm:$0xff]  ;;  %v1854_v8 = vpack.c.bf16 %v739_v59, %v738_v58 }
  0x3f   : > { %v384_v56 = vld [vmem:[%s2324_s27 + $0x80] sm:$0xff]  ;;  %v400_v60 = vmax.f32 %v368_v53, %v376_v55  ;;  %1849 = vmatpush3.bf16.msra.mxu1 %v1848_v49  ;;  %1819 = vmatprep.subr.bf16.mxu0 %v1818_v50  ;;  %v723_v4 = vld [vmem:[%s2768_s1 + $0x178] sm:$0xff]  ;;  %v757_v7 = vld [vmem:[%s2768_s1 + $0x288] sm:$0xff]  ;;  %v1824_v16 = vpack.c.bf16 %v691_v0, %v690_v63 }
  0x40   : > { %v392_v57 = vld [vmem:[%s2324_s27 + $0xc0] sm:$0xff]  ;;  %1851 = vmatprep.subr.bf16.mxu1 %v1850_v54  ;;  %v369_v10 = vld [vmem:[%s2324_s27 + $0x8] sm:$0xff]  ;;  %v1856_v21 = vpack.c.bf16 %v723_v4, %v722_v1  ;;  %v758_v24 = vld [vmem:[%s2768_s1 + $0x290] sm:$0xff] }
  0x41   : > { %v408_v61 = vmax.f32 %v384_v56, %v392_v57  ;;  %v756_v6 = vld [vmem:[%s2768_s1 + $0x280] sm:$0xff]  ;;  %v377_v11 = vld [vmem:[%s2324_s27 + $0x48] sm:$0xff]  ;;  %v759_v25 = vld [vmem:[%s2768_s1 + $0x298] sm:$0xff] }
  0x42   : > { %v788_v9 = vld [vmem:[%s2768_s1 + $0x380] sm:$0xff]  ;;  %v789_v12 = vld [vmem:[%s2768_s1 + $0x388] sm:$0xff]  ;;  %v401_v15 = vmax.f32 %v369_v10, %v377_v11  ;;  %1821 = vmatpush3.bf16.msra.mxu0 %v1820_v62  ;;  %v1858_v22 = vpack.c.bf16 %v757_v7, %v756_v6  ;;  %v790_v29 = vld [vmem:[%s2768_s1 + $0x390] sm:$0xff]  ;;  %v1862_v47 = vpack.c.bf16 %v759_v25, %v758_v24 }
  0x43   : > { %v2348_v5 = vmax.f32 %v400_v60, %v408_v61  ;;  %v385_v13 = vld [vmem:[%s2324_s27 + $0x88] sm:$0xff]  ;;  %v740_v17 = vld [vmem:[%s2768_s1 + $0x200] sm:$0xff]  ;;  %1853 = vmatpush3.bf16.msra.mxu1 %v1852_v2  ;;  %1823 = vmatprep.subr.bf16.mxu0 %v1822_v3  ;;  %v1890_v27 = vpack.c.bf16 %v789_v12, %v788_v9  ;;  %v370_v30 = vld [vmem:[%s2324_s27 + $0x10] sm:$0xff] }
  0x44   : > { %v393_v14 = vld [vmem:[%s2324_s27 + $0xc8] sm:$0xff]  ;;  %v772_v19 = vld [vmem:[%s2768_s1 + $0x300] sm:$0xff]  ;;  %1855 = vmatprep.subr.bf16.mxu1 %v1854_v8  ;;  %v378_v31 = vld [vmem:[%s2324_s27 + $0x50] sm:$0xff] }
  0x45   : > { %451 = vst [vmem:[#allocation2 + $0x11] sm:$0xff] %v2348_v5  ;;  %v741_v18 = vld [vmem:[%s2768_s1 + $0x208] sm:$0xff]  ;;  %v409_v20 = vmax.f32 %v385_v13, %v393_v14  ;;  %v459_v26 = vld [vmem:[#allocation2] sm:$0xff]  ;;  %v791_v32 = vld [vmem:[%s2768_s1 + $0x398] sm:$0xff]  ;;  %v402_v35 = vmax.f32 %v370_v30, %v378_v31 }
  0x46   : > { %v773_v23 = vld [vmem:[%s2768_s1 + $0x308] sm:$0xff]  ;;  %v386_v33 = vld [vmem:[%s2324_s27 + $0x90] sm:$0xff]  ;;  %1825 = vmatpush3.bf16.msra.mxu0 %v1824_v16  ;;  %v1860_v37 = vpack.c.bf16 %v741_v18, %v740_v17  ;;  %v743_v39 = vld [vmem:[%s2768_s1 + $0x218] sm:$0xff]  ;;  %v1894_v48 = vpack.c.bf16 %v791_v32, %v790_v29 }
  0x47   : > { %v2385_v28 = vmax.f32 %v401_v15, %v409_v20  ;;  %v394_v34 = vld [vmem:[%s2324_s27 + $0xd0] sm:$0xff]  ;;  %v491_v36 = vld [vmem:[#allocation2 + $0x2] sm:$0xff]  ;;  %1857 = vmatpush3.bf16.msra.mxu1 %v1856_v21  ;;  %1859 = vmatprep.subr.bf16.mxu0 %v1858_v22  ;;  %v1892_v41 = vpack.c.bf16 %v773_v23, %v772_v19  ;;  %v775_v43 = vld [vmem:[%s2768_s1 + $0x318] sm:$0xff] }
  0x48   : > { %v742_v38 = vld [vmem:[%s2768_s1 + $0x210] sm:$0xff]  ;;  %v410_v40 = vmax.f32 %v386_v33, %v394_v34  ;;  %v760_v44 = vld [vmem:[%s2768_s1 + $0x2a0] sm:$0xff]  ;;  %v761_v45 = vld [vmem:[%s2768_s1 + $0x2a8] sm:$0xff]  ;;  %1891 = vmatprep.subr.bf16.mxu1 %v1890_v27 }
  0x49   : > { %452 = vst [vmem:[#allocation2 + $0x21] sm:$0xff] %v2385_v28  ;;  %v774_v42 = vld [vmem:[%s2768_s1 + $0x310] sm:$0xff]  ;;  %v792_v50 = vld [vmem:[%s2768_s1 + $0x3a0] sm:$0xff]  ;;  %v793_v51 = vld [vmem:[%s2768_s1 + $0x3a8] sm:$0xff]  ;;  %889 = vmatmul.mubr.f32.vlgmr.msra.gmra.mrb[0].mxu0 %v459_v26  ;;  %v1864_v55 = vpack.c.bf16 %v743_v39, %v742_v38  ;;  %v1866_v1 = vpack.c.bf16 %v761_v45, %v760_v44 }
  0x4a   : > { %v2416_v49 = vmax.f32 %v402_v35, %v410_v40  ;;  %v371_v52 = vld [vmem:[%s2324_s27 + $0x18] sm:$0xff]  ;;  %1861 = vmatpush3.bf16.msra.mxu0 %v1860_v37  ;;  %v744_v56 = vld [vmem:[%s2768_s1 + $0x220] sm:$0xff]  ;;  %v745_v57 = vld [vmem:[%s2768_s1 + $0x228] sm:$0xff]  ;;  %893 = vmatprep.mubr.f32.mxu0 %v2348_v5  ;;  %v1896_v0 = vpack.c.bf16 %v775_v43, %v774_v42  ;;  %v1898_v7 = vpack.c.bf16 %v793_v51, %v792_v50 }
  0x4b   : > { %v379_v53 = vld [vmem:[%s2324_s27 + $0x58] sm:$0xff]  ;;  %v776_v61 = vld [vmem:[%s2768_s1 + $0x320] sm:$0xff]  ;;  %v777_v62 = vld [vmem:[%s2768_s1 + $0x328] sm:$0xff]  ;;  %1863 = vmatprep.subr.bf16.mxu0 %v1862_v47  ;;  %v1868_v11 = vpack.c.bf16 %v745_v57, %v744_v56 }
  0x4c   : > { %v507_v46 = vld [vmem:[#allocation2 + $0x10] sm:$0xff]  ;;  %v387_v54 = vld [vmem:[%s2324_s27 + $0x98] sm:$0xff]  ;;  %453 = vst [vmem:[#allocation2 + $0x31] sm:$0xff] %v2416_v49  ;;  %v403_v59 = vmax.f32 %v371_v52, %v379_v53  ;;  %v372_v10 = vld [vmem:[%s2324_s27 + $0x20] sm:$0xff]  ;;  %v1900_v20 = vpack.c.bf16 %v777_v62, %v776_v61 }
  0x4d   : > { %993 = vmatprep.mubr.f32.mxu1 %v507_v46  ;;  %v395_v58 = vld [vmem:[%s2324_s27 + $0xd8] sm:$0xff]  ;;  %v762_v2 = vld [vmem:[%s2768_s1 + $0x2b0] sm:$0xff]  ;;  %894 = vmatmul.mubr.f32.gmra.mrb[2].mxu0 %v507_v46  ;;  %v380_v12 = vld [vmem:[%s2324_s27 + $0x60] sm:$0xff] }
  0x4e   : > { %994 = vmatmul.mubr.f32.vlgmr.msra.gmra.mrb[0].mxu1 %v491_v36  ;;  %v2436_v60 = vld [vmem:[#allocation2 + $0x12] sm:$0xff]  ;;  %v411_v63 = vmax.f32 %v387_v54, %v395_v58  ;;  %1865 = vmatpush3.bf16.msra.mxu0 %v1864_v55  ;;  %v388_v13 = vld [vmem:[%s2324_s27 + $0xa0] sm:$0xff]  ;;  %v404_v17 = vmax.f32 %v372_v10, %v380_v12  ;;  %v765_v25 = vld [vmem:[%s2768_s1 + $0x2c8] sm:$0xff] }
  0x4f   : > { %1893 = vmatpush3.bf16.msra.mxu1 %v1892_v41  ;;  %v763_v3 = vld [vmem:[%s2768_s1 + $0x2b8] sm:$0xff]  ;;  %v794_v4 = vld [vmem:[%s2768_s1 + $0x3b0] sm:$0xff]  ;;  %v396_v14 = vld [vmem:[%s2324_s27 + $0xe0] sm:$0xff]  ;;  %898 = vmatprep.mubr.f32.mxu0 %v2385_v28 }
  0x50   : > { %1895 = vmatprep.subr.bf16.mxu1 %v1894_v48  ;;  %v2453_v6 = vld [vmem:[#allocation2 + $0x20] sm:$0xff]  ;;  %v2455_v8 = vmax.f32 %v403_v59, %v411_v63  ;;  %v795_v9 = vld [vmem:[%s2768_s1 + $0x3b8] sm:$0xff]  ;;  %v746_v15 = vld [vmem:[%s2768_s1 + $0x230] sm:$0xff]  ;;  %v412_v18 = vmax.f32 %v388_v13, %v396_v14  ;;  %1867 = vmatprep.subr.bf16.mxu0 %v1866_v1  ;;  %v1870_v21 = vpack.c.bf16 %v763_v3, %v762_v2 }
  0x51   : > { %998 = vmatprep.mubr.f32.mxu1 %v2453_v6  ;;  %v747_v16 = vld [vmem:[%s2768_s1 + $0x238] sm:$0xff]  ;;  %v2474_v19 = vld [vmem:[#allocation2 + $0x22] sm:$0xff]  ;;  %v778_v22 = vld [vmem:[%s2768_s1 + $0x330] sm:$0xff]  ;;  %899 = vmatmul.mubr.f32.gmra.mrb[4].mxu0 %v2453_v6  ;;  %v1902_v27 = vpack.c.bf16 %v795_v9, %v794_v4 }
  0x52   : > { %999 = vmatmul.mubr.f32.gmra.mrb[2].mxu1 %v2436_v60  ;;  %454 = vst [vmem:[#allocation2 + $0x41] sm:$0xff] %v2455_v8  ;;  %v779_v23 = vld [vmem:[%s2768_s1 + $0x338] sm:$0xff]  ;;  %v764_v24 = vld [vmem:[%s2768_s1 + $0x2c0] sm:$0xff]  ;;  %v2491_v29 = vmax.f32 %v404_v17, %v412_v18  ;;  %v797_v31 = vld [vmem:[%s2768_s1 + $0x3c8] sm:$0xff]  ;;  %1869 = vmatpush3.bf16.msra.mxu0 %v1868_v11  ;;  %v1872_v33 = vpack.c.bf16 %v747_v16, %v746_v15 }
  0x53   : > { %1897 = vmatpush3.bf16.msra.mxu1 %v1896_v0  ;;  %v2488_v26 = vld [vmem:[#allocation2 + $0x30] sm:$0xff]  ;;  %v796_v30 = vld [vmem:[%s2768_s1 + $0x3c0] sm:$0xff]  ;;  %v749_v34 = vld [vmem:[%s2768_s1 + $0x248] sm:$0xff]  ;;  %903 = vmatprep.mubr.f32.mxu0 %v2416_v49  ;;  %v1874_v38 = vpack.c.bf16 %v765_v25, %v764_v24  ;;  %v1904_v46 = vpack.c.bf16 %v779_v23, %v778_v22 }
  0x54   : > { %1899 = vmatprep.subr.bf16.mxu1 %v1898_v7  ;;  %v748_v32 = vld [vmem:[%s2768_s1 + $0x240] sm:$0xff]  ;;  %1003 = vmatprep.mubr.f32.mxu1 %v2488_v26  ;;  %v373_v35 = vld [vmem:[%s2324_s27 + $0x28] sm:$0xff]  ;;  %v2510_v37 = vld [vmem:[#allocation2 + $0x32] sm:$0xff]  ;;  %455 = vst [vmem:[#allocation2 + $0x51] sm:$0xff] %v2491_v29  ;;  %v1906_v52 = vpack.c.bf16 %v797_v31, %v796_v30 }
  0x55   : > { %v381_v36 = vld [vmem:[%s2324_s27 + $0x68] sm:$0xff]  ;;  %1871 = vmatprep.subr.bf16.mxu0 %v1870_v21  ;;  %v780_v42 = vld [vmem:[%s2768_s1 + $0x340] sm:$0xff]  ;;  %v766_v45 = vld [vmem:[%s2768_s1 + $0x2d0] sm:$0xff]  ;;  %904 = vmatmul.mubr.f32.gmra.mrb[6].mxu0 %v2488_v26  ;;  %v1876_v53 = vpack.c.bf16 %v749_v34, %v748_v32 }
  0x56   : > { %1004 = vmatmul.mubr.f32.gmra.mrb[4].mxu1 %v2474_v19  ;;  %v389_v39 = vld [vmem:[%s2324_s27 + $0xa8] sm:$0xff]  ;;  %v405_v41 = vmax.f32 %v373_v35, %v381_v36  ;;  %v767_v47 = vld [vmem:[%s2768_s1 + $0x2d8] sm:$0xff]  ;;  %v798_v48 = vld [vmem:[%s2768_s1 + $0x3d0] sm:$0xff]  ;;  %1873 = vmatpush3.bf16.msra.mxu0 %v1872_v33 }
  0x57   : > { %v397_v40 = vld [vmem:[%s2324_s27 + $0xe8] sm:$0xff]  ;;  %1901 = vmatpush3.bf16.msra.mxu1 %v1900_v20  ;;  %v799_v50 = vld [vmem:[%s2768_s1 + $0x3d8] sm:$0xff]  ;;  %908 = vmatprep.mubr.f32.mxu0 %v2455_v8  ;;  %v750_v55 = vld [vmem:[%s2768_s1 + $0x250] sm:$0xff]  ;;  %v1878_v61 = vpack.c.bf16 %v767_v47, %v766_v45 }
  0x58   : > { %v781_v43 = vld [vmem:[%s2768_s1 + $0x348] sm:$0xff]  ;;  %v413_v44 = vmax.f32 %v389_v39, %v397_v40  ;;  %1903 = vmatprep.subr.bf16.mxu1 %v1902_v27  ;;  %v751_v56 = vld [vmem:[%s2768_s1 + $0x258] sm:$0xff]  ;;  %1875 = vmatprep.subr.bf16.mxu0 %v1874_v38  ;;  %v374_v57 = vld [vmem:[%s2324_s27 + $0x30] sm:$0xff]  ;;  %v1910_v11 = vpack.c.bf16 %v799_v50, %v798_v48 }
  0x59   : > { %v2534_v51 = vld [vmem:[#allocation2 + $0x40] sm:$0xff]  ;;  %v382_v58 = vld [vmem:[%s2324_s27 + $0x70] sm:$0xff]  ;;  %v769_v1 = vld [vmem:[%s2768_s1 + $0x2e8] sm:$0xff]  ;;  %v1908_v3 = vpack.c.bf16 %v781_v43, %v780_v42  ;;  %v1880_v12 = vpack.c.bf16 %v751_v56, %v750_v55 }
  0x5a   : > { %v2537_v54 = vmax.f32 %v405_v41, %v413_v44  ;;  %1008 = vmatprep.mubr.f32.mxu1 %v2534_v51  ;;  %v390_v59 = vld [vmem:[%s2324_s27 + $0xb0] sm:$0xff]  ;;  %v406_v63 = vmax.f32 %v374_v57, %v382_v58  ;;  %v768_v0 = vld [vmem:[%s2768_s1 + $0x2e0] sm:$0xff]  ;;  %909 = vmatmul.mubr.f32.gmra.mrb[8].mxu0 %v2534_v51  ;;  %v783_v7 = vld [vmem:[%s2768_s1 + $0x358] sm:$0xff] }
  0x5b   : > { %1009 = vmatmul.mubr.f32.gmra.mrb[6].mxu1 %v2510_v37  ;;  %v398_v62 = vld [vmem:[%s2324_s27 + $0xf0] sm:$0xff]  ;;  %v2559_v2 = vld [vmem:[#allocation2 + $0x42] sm:$0xff]  ;;  %1877 = vmatpush3.bf16.msra.mxu0 %v1876_v53  ;;  %v1882_v16 = vpack.c.bf16 %v769_v1, %v768_v0  ;;  %v375_v20 = vld [vmem:[%s2324_s27 + $0x38] sm:$0xff] }
  0x5c   : > { %456 = vst [vmem:[#allocation2 + $0x61] sm:$0xff] %v2537_v54  ;;  %1905 = vmatpush3.bf16.msra.mxu1 %v1904_v46  ;;  %v782_v4 = vld [vmem:[%s2768_s1 + $0x350] sm:$0xff]  ;;  %v414_v9 = vmax.f32 %v390_v59, %v398_v62  ;;  %v800_v13 = vld [vmem:[%s2768_s1 + $0x3e0] sm:$0xff]  ;;  %v801_v14 = vld [vmem:[%s2768_s1 + $0x3e8] sm:$0xff]  ;;  %913 = vmatprep.mubr.f32.mxu0 %v2491_v29 }
  0x5d   : > { %v2567_v10 = vld [vmem:[#allocation2 + $0x50] sm:$0xff]  ;;  %1907 = vmatprep.subr.bf16.mxu1 %v1906_v52  ;;  %v752_v17 = vld [vmem:[%s2768_s1 + $0x260] sm:$0xff]  ;;  %v753_v18 = vld [vmem:[%s2768_s1 + $0x268] sm:$0xff]  ;;  %1879 = vmatprep.subr.bf16.mxu0 %v1878_v61  ;;  %v1912_v32 = vpack.c.bf16 %v783_v7, %v782_v4  ;;  %v1914_v35 = vpack.c.bf16 %v801_v14, %v800_v13 }
  0x5e   : > { %1013 = vmatprep.mubr.f32.mxu1 %v2567_v10  ;;  %v2577_v15 = vmax.f32 %v406_v63, %v414_v9  ;;  %v383_v21 = vld [vmem:[%s2324_s27 + $0x78] sm:$0xff]  ;;  %914 = vmatmul.mubr.f32.gmra.mrb[10].mxu0 %v2567_v10  ;;  %v770_v27 = vld [vmem:[%s2768_s1 + $0x2f0] sm:$0xff]  ;;  %v1884_v33 = vpack.c.bf16 %v753_v18, %v752_v17  ;;  %v784_v40 = vld [vmem:[%s2768_s1 + $0x360] sm:$0xff] }
  0x5f   : > { %1014 = vmatmul.mubr.f32.gmra.mrb[8].mxu1 %v2559_v2  ;;  %v391_v22 = vld [vmem:[%s2324_s27 + $0xb8] sm:$0xff]  ;;  %v407_v24 = vmax.f32 %v375_v20, %v383_v21  ;;  %1881 = vmatpush3.bf16.msra.mxu0 %v1880_v12  ;;  %v754_v38 = vld [vmem:[%s2768_s1 + $0x270] sm:$0xff]  ;;  %v785_v41 = vld [vmem:[%s2768_s1 + $0x368] sm:$0xff] }
  0x60   : > { %v399_v23 = vld [vmem:[%s2324_s27 + $0xf8] sm:$0xff]  ;;  %1909 = vmatpush3.bf16.msra.mxu1 %v1908_v3  ;;  %457 = vst [vmem:[#allocation2 + $0x71] sm:$0xff] %v2577_v15  ;;  %918 = vmatprep.mubr.f32.mxu0 %v2537_v54  ;;  %v802_v43 = vld [vmem:[%s2768_s1 + $0x3f0] sm:$0xff]  ;;  %v804_v45 = vld [vmem:[%s2768_s1 + $0x400] sm:$0xff]  ;;  %v1916_v50 = vpack.c.bf16 %v785_v41, %v784_v40 }
  0x61   : > { %v415_v25 = vmax.f32 %v391_v22, %v399_v23  ;;  %v771_v30 = vld [vmem:[%s2768_s1 + $0x2f8] sm:$0xff]  ;;  %1911 = vmatprep.subr.bf16.mxu1 %v1910_v11  ;;  %1883 = vmatprep.subr.bf16.mxu0 %v1882_v16  ;;  %v805_v46 = vld [vmem:[%s2768_s1 + $0x408] sm:$0xff]  ;;  %v786_v55 = vld [vmem:[%s2768_s1 + $0x370] sm:$0xff] }
  0x62   : > { %v2598_v31 = vld [vmem:[#allocation2 + $0x52] sm:$0xff]  ;;  %v1886_v42 = vpack.c.bf16 %v771_v30, %v770_v27  ;;  %v1922_v57 = vpack.c.bf16 %v805_v46, %v804_v45  ;;  %v808_v1 = vld [vmem:[%s2768_s1 + $0x420] sm:$0xff]  ;;  %v813_v7 = vld [vmem:[%s2768_s1 + $0x448] sm:$0xff] }
  0x63   : > { %v2600_v34 = vld [vmem:[#allocation2 + $0x60] sm:$0xff]  ;;  %v2603_v36 = vmax.f32 %v407_v24, %v415_v25  ;;  %v755_v39 = vld [vmem:[%s2768_s1 + $0x278] sm:$0xff]  ;;  %1885 = vmatpush3.bf16.msra.mxu0 %v1884_v33  ;;  %v806_v58 = vld [vmem:[%s2768_s1 + $0x410] sm:$0xff] }
  0x64   : > { %1018 = vmatprep.mubr.f32.mxu1 %v2600_v34  ;;  %919 = vmatmul.mubr.f32.gmra.mrb[12].mxu0 %v2600_v34  ;;  %v803_v44 = vld [vmem:[%s2768_s1 + $0x3f8] sm:$0xff]  ;;  %v1888_v47 = vpack.c.bf16 %v755_v39, %v754_v38  ;;  %v2633_v48 = vld [vmem:[#allocation2 + $0x62] sm:$0xff]  ;;  %v810_v3 = vld [vmem:[%s2768_s1 + $0x430] sm:$0xff] }
  0x65   : > { %1019 = vmatmul.mubr.f32.gmra.mrb[10].mxu1 %v2598_v31  ;;  %458 = vst [vmem:[#allocation2 + $0x81] sm:$0xff] %v2603_v36  ;;  %923 = vmatprep.mubr.f32.mxu0 %v2577_v15  ;;  %v1918_v53 = vpack.c.bf16 %v803_v44, %v802_v43  ;;  %v787_v56 = vld [vmem:[%s2768_s1 + $0x378] sm:$0xff]  ;;  %v817_v11 = vld [vmem:[%s2768_s1 + $0x468] sm:$0xff] }
  0x66   : > { %1913 = vmatpush3.bf16.msra.mxu1 %v1912_v32  ;;  %1887 = vmatprep.subr.bf16.mxu0 %v1886_v42  ;;  %v807_v59 = vld [vmem:[%s2768_s1 + $0x418] sm:$0xff]  ;;  %v1920_v62 = vpack.c.bf16 %v787_v56, %v786_v55 }
  0x67   : > { %1915 = vmatprep.subr.bf16.mxu1 %v1914_v35  ;;  %v2636_v52 = vld [vmem:[#allocation2 + $0x70] sm:$0xff]  ;;  %1889 = vmatpush3.bf16.msra.mxu0 %v1888_v47  ;;  %v1926_v0 = vpack.c.bf16 %v807_v59, %v806_v58  ;;  %v811_v4 = vld [vmem:[%s2768_s1 + $0x438] sm:$0xff] }
  0x68   : > { %1023 = vmatprep.mubr.f32.mxu1 %v2636_v52  ;;  %924 = vmatmul.mubr.f32.gmra.mrb[14].mxu0 %v2636_v52  ;;  %v2653_v61 = vld [vmem:[#allocation2 + $0x72] sm:$0xff] }
  0x69   : > { %1024 = vmatmul.mubr.f32.gmra.mrb[12].mxu1 %v2633_v48  ;;  %1098 = vmatprep.mubr.f32.mxu0 %v2436_v60  ;;  %v809_v60 = vld [vmem:[%s2768_s1 + $0x428] sm:$0xff]  ;;  %v815_v9 = vld [vmem:[%s2768_s1 + $0x458] sm:$0xff] }
  0x6a   : > { %1917 = vmatpush3.bf16.msra.mxu1 %v1916_v50  ;;  %1923 = vmatprep.subr.bf16.mxu0 %v1922_v57  ;;  %v819_v12 = vld [vmem:[%s2768_s1 + $0x478] sm:$0xff] }
  0x6b   : > { %1919 = vmatprep.subr.bf16.mxu1 %v1918_v53  ;;  %v579_v14 = vld [vmem:[#allocation2 + $0x91] sm:$0xff] }
  0x6c   : > { %v2656_v63 = vld [vmem:[#allocation2 + $0x80] sm:$0xff]  ;;  %1099 = vmatmul.mubr.f32.vlgmr.msra.gmra.mrb[16].mxu0 %v2348_v5  ;;  %v1930_v5 = vpack.c.bf16 %v809_v60, %v808_v1  ;;  %v595_v16 = vld [vmem:[#allocation2 + $0x92] sm:$0xff] }
  0x6d   : > { %1028 = vmatprep.mubr.f32.mxu1 %v2656_v63  ;;  %1925 = vmatpush3.bf16.msra.mxu0 %v1922_v57 }
  0x6e   : > { %1029 = vmatmul.mubr.f32.gmra.mrb[14].mxu1 %v2653_v61  ;;  %1103 = vmatprep.mubr.f32.mxu0 %v2474_v19 }
  0x6f   : > { %1921 = vmatpush3.bf16.msra.mxu1 %v1920_v62  ;;  %1203 = vmatprep.mubr.f32.mxu1 %v2385_v28 }
  0x70   : > { %1954 = vmatprep.subr.bf16.mxu1 %v1922_v57  ;;  %1104 = vmatmul.mubr.f32.gmra.mrb[18].mxu0 %v2385_v28  ;;  %v1934_v28 = vpack.c.bf16 %v811_v4, %v810_v3 }
  0x71   : > { %1927 = vmatprep.subr.bf16.mxu0 %v1926_v0  ;;  %1108 = vmatprep.mubr.f32.mxu0 %v2510_v37 }
  0x72   : > { %1204 = vmatmul.mubr.f32.vlgmr.msra.gmra.mrb[16].mxu1 %v2453_v6  ;;  %1929 = vmatpush3.bf16.msra.mxu0 %v1926_v0  ;;  %v812_v6 = vld [vmem:[%s2768_s1 + $0x440] sm:$0xff] }
  0x73   : > { %1962 = vmatpush3.bf16.msra.mxu1 %v1922_v57  ;;  %1208 = vmatprep.mubr.f32.mxu1 %v2416_v49 }
  0x74   : > { %1955 = vmatprep.subr.bf16.mxu1 %v1926_v0  ;;  %1109 = vmatmul.mubr.f32.gmra.mrb[20].mxu0 %v2416_v49  ;;  %v1938_v49 = vpack.c.bf16 %v813_v7, %v812_v6 }
  0x75   : > { %1931 = vmatprep.subr.bf16.mxu0 %v1930_v5  ;;  %1113 = vmatprep.mubr.f32.mxu0 %v2559_v2 }
  0x76   : > { %1209 = vmatmul.mubr.f32.gmra.mrb[18].mxu1 %v2488_v26  ;;  %1933 = vmatpush3.bf16.msra.mxu0 %v1930_v5  ;;  %v814_v26 = vld [vmem:[%s2768_s1 + $0x450] sm:$0xff] }
  0x77   : > { %1963 = vmatpush3.bf16.msra.mxu1 %v1926_v0  ;;  %1213 = vmatprep.mubr.f32.mxu1 %v2455_v8 }
  0x78   : > { %1956 = vmatprep.subr.bf16.mxu1 %v1930_v5  ;;  %1114 = vmatmul.mubr.f32.gmra.mrb[22].mxu0 %v2455_v8  ;;  %v1942_v8 = vpack.c.bf16 %v815_v9, %v814_v26 }
  0x79   : > { %1935 = vmatprep.subr.bf16.mxu0 %v1934_v28  ;;  %1118 = vmatprep.mubr.f32.mxu0 %v2598_v31 }
  0x7a   : > { %1214 = vmatmul.mubr.f32.gmra.mrb[20].mxu1 %v2534_v51  ;;  %1937 = vmatpush3.bf16.msra.mxu0 %v1934_v28  ;;  %v816_v51 = vld [vmem:[%s2768_s1 + $0x460] sm:$0xff] }
  0x7b   : > { %1964 = vmatpush3.bf16.msra.mxu1 %v1930_v5  ;;  %1218 = vmatprep.mubr.f32.mxu1 %v2491_v29 }
  0x7c   : > { %1957 = vmatprep.subr.bf16.mxu1 %v1934_v28  ;;  %1119 = vmatmul.mubr.f32.gmra.mrb[24].mxu0 %v2491_v29  ;;  %v1946_v29 = vpack.c.bf16 %v817_v11, %v816_v51 }
  0x7d   : > { %1939 = vmatprep.subr.bf16.mxu0 %v1938_v49  ;;  %1123 = vmatprep.mubr.f32.mxu0 %v2633_v48 }
  0x7e   : > { %1219 = vmatmul.mubr.f32.gmra.mrb[22].mxu1 %v2567_v10  ;;  %1941 = vmatpush3.bf16.msra.mxu0 %v1938_v49  ;;  %v818_v10 = vld [vmem:[%s2768_s1 + $0x470] sm:$0xff] }
  0x7f   : > { %1965 = vmatpush3.bf16.msra.mxu1 %v1934_v28  ;;  %1223 = vmatprep.mubr.f32.mxu1 %v2537_v54  ;;  %v1950_v13 = vpack.c.bf16 %v819_v12, %v818_v10 }
  0x80   : > { %1958 = vmatprep.subr.bf16.mxu1 %v1938_v49  ;;  %1124 = vmatmul.mubr.f32.gmra.mrb[26].mxu0 %v2537_v54  ;;  %v546_v54 = vld [vmem:[#allocation2 + $0x82] sm:$0xff] }
  0x81   : > { %1943 = vmatprep.subr.bf16.mxu0 %v1942_v8  ;;  %1128 = vmatprep.mubr.f32.mxu0 %v2653_v61 }
  0x82   : > { %1224 = vmatmul.mubr.f32.gmra.mrb[24].mxu1 %v2600_v34  ;;  %1945 = vmatpush3.bf16.msra.mxu0 %v1942_v8 }
  0x83   : > { %1966 = vmatpush3.bf16.msra.mxu1 %v1938_v49  ;;  %1228 = vmatprep.mubr.f32.mxu1 %v2577_v15 }
  0x84   : > { %1959 = vmatprep.subr.bf16.mxu1 %v1942_v8  ;;  %1129 = vmatmul.mubr.f32.gmra.mrb[28].mxu0 %v2577_v15  ;;  %v563_v15 = vld [vmem:[#allocation2 + $0x90] sm:$0xff] }
  0x85   : > { %1947 = vmatprep.subr.bf16.mxu0 %v1946_v29  ;;  %1133 = vmatprep.mubr.f32.mxu0 %v546_v54 }
  0x86   : > { %1229 = vmatmul.mubr.f32.gmra.mrb[26].mxu1 %v2636_v52  ;;  %1949 = vmatpush3.bf16.msra.mxu0 %v1946_v29 }
  0x87   : > { %1967 = vmatpush3.bf16.msra.mxu1 %v1942_v8  ;;  %1233 = vmatprep.mubr.f32.mxu1 %v2603_v36 }
  0x88   : > { %1960 = vmatprep.subr.bf16.mxu1 %v1946_v29  ;;  %1134 = vmatmul.mubr.f32.gmra.mrb[30].mxu0 %v2603_v36 }
  0x89   : > { %1951 = vmatprep.subr.bf16.mxu0 %v1950_v13  ;;  %1782 = vmatprep.mubr.f32.mxu0 %v2474_v19  ;;  %v1497_v19 = vld [vmem:[%s2769_s2] ss:$0 sm:$0xff] }
  0x8a   : > { %1234 = vmatmul.mubr.f32.gmra.mrb[28].mxu1 %v2656_v63  ;;  %1953 = vmatpush3.bf16.msra.mxu0 %v1950_v13 }
  0x8b   : > { %1968 = vmatpush3.bf16.msra.mxu1 %v1946_v29  ;;  %1238 = vmatprep.mubr.f32.mxu1 %v579_v14 }
  0x8c   : > { %1961 = vmatprep.subr.bf16.mxu1 %v1950_v13 }
  0x8d   : > { %1783 = vmatmul.mubr.f32.vlgmr.msra.gmra.mrb[32].mxu0 %v2510_v37 }
  0x8e   : > { %1239 = vmatmul.mubr.f32.gmra.mrb[30].mxu1 %v563_v15  ;;  %1785 = vmatprep.mubr.f32.mxu0 %v2559_v2 }
  0x8f   : > { %1969 = vmatpush3.bf16.msra.mxu1 %v1950_v13  ;;  %1788 = vmatprep.mubr.f32.mxu1 %v2633_v48 }
  0x91   : > { %1786 = vmatmul.mubr.f32.gmra.mrb[34].mxu0 %v2598_v31 }
  0x92   : > { %1789 = vmatmul.mubr.f32.vlgmr.msra.gmra.mrb[32].mxu1 %v2653_v61 }
  0x93   : > { %1791 = vmatprep.mubr.f32.mxu1 %v546_v54 }
  0x96   : > { %1792 = vmatmul.mubr.f32.gmra.mrb[34].mxu1 %v595_v16 }
 0x11c   : > { %v1534_v17 = vpop.f32.mrb[0].mxu0 }
 0x11d   : > { %v1535_v18 = vpop.f32.mrb[1].mxu0 }
 0x11e   : > { %v1536_v20 = vadd.f32 %v1535_v18, %v1534_v17 }
 0x120   : > { %v891_v22 = vadd.f32 %v1536_v20, %v1497_v19  ;;  %v1537_v23 = vpop.f32.mrb[2].mxu0 }
 0x121   : > { %v1590_v37 = vpop.f32.mrb[0].mxu1  ;;  %v1538_v24 = vpop.f32.mrb[3].mxu0 }
 0x122   : > { %v1591_v21 = vpop.f32.mrb[1].mxu1  ;;  %v1539_v27 = vadd.f32 %v1538_v24, %v1537_v23 }
 0x123   : > { %v1592_v2 = vadd.f32 %v1591_v21, %v1590_v37 }
 0x124   : > { %v896_v32 = vadd.f32 %v1539_v27, %v1497_v19  ;;  %v1540_v34 = vpop.f32.mrb[4].mxu0 }
 0x125   : > { %v996_v25 = vadd.f32 %v1592_v2, %v891_v22  ;;  %v1593_v30 = vpop.f32.mrb[2].mxu1  ;;  %v1541_v35 = vpop.f32.mrb[5].mxu0 }
 0x126   : > { %v1594_v31 = vpop.f32.mrb[3].mxu1  ;;  %v1542_v38 = vadd.f32 %v1541_v35, %v1540_v34 }
 0x127   : > { %v1595_v33 = vadd.f32 %v1594_v31, %v1593_v30 }
 0x128   : > { %v901_v41 = vadd.f32 %v1542_v38, %v1497_v19  ;;  %v1543_v43 = vpop.f32.mrb[6].mxu0 }
 0x129   : > { %v1001_v36 = vadd.f32 %v1595_v33, %v896_v32  ;;  %v1596_v39 = vpop.f32.mrb[4].mxu1  ;;  %v1544_v44 = vpop.f32.mrb[7].mxu0 }
 0x12a   : > { %v1597_v40 = vpop.f32.mrb[5].mxu1  ;;  %v1545_v46 = vadd.f32 %v1544_v44, %v1543_v43 }
 0x12b   : > { %v1598_v42 = vadd.f32 %v1597_v40, %v1596_v39 }
 0x12c   : > { %v906_v48 = vadd.f32 %v1545_v46, %v1497_v19 }
 0x12d   : > { %v1006_v45 = vadd.f32 %v1598_v42, %v901_v41  ;;  %v1546_v52 = vpop.f32.mrb[8].mxu0 }
 0x12e   : > { %v1599_v47 = vpop.f32.mrb[6].mxu1  ;;  %v1547_v55 = vpop.f32.mrb[9].mxu0 }
 0x12f   : > { %v1600_v50 = vpop.f32.mrb[7].mxu1  ;;  %v1548_v56 = vadd.f32 %v1547_v55, %v1546_v52 }
 0x130   : > { %v1601_v53 = vadd.f32 %v1600_v50, %v1599_v47 }
 0x131   : > { %v911_v59 = vadd.f32 %v1548_v56, %v1497_v19  ;;  %v1549_v62 = vpop.f32.mrb[10].mxu0 }
 0x132   : > { %v1011_v57 = vadd.f32 %v1601_v53, %v906_v48  ;;  %v1602_v58 = vpop.f32.mrb[8].mxu1  ;;  %v1550_v0 = vpop.f32.mrb[11].mxu0 }
 0x133   : > { %v1603_v61 = vpop.f32.mrb[9].mxu1  ;;  %v1551_v1 = vadd.f32 %v1550_v0, %v1549_v62 }
 0x134   : > { %v1604_v63 = vadd.f32 %v1603_v61, %v1602_v58 }
 0x135   : > { %v916_v5 = vadd.f32 %v1551_v1, %v1497_v19 }
 0x136   : > { %v1016_v60 = vadd.f32 %v1604_v63, %v911_v59 }
 0x137   : > { %v1552_v4 = vpop.f32.mrb[12].mxu0 }
 0x138   : > { %v1605_v3 = vpop.f32.mrb[10].mxu1  ;;  %v1553_v6 = vpop.f32.mrb[13].mxu0 }
 0x139   : > { %v1606_v28 = vpop.f32.mrb[11].mxu1  ;;  %v1554_v49 = vadd.f32 %v1553_v6, %v1552_v4 }
 0x13a   : > { %v1607_v7 = vadd.f32 %v1606_v28, %v1605_v3 }
 0x13b   : > { %v1555_v9 = vpop.f32.mrb[14].mxu0  ;;  %v921_v8 = vadd.f32 %v1554_v49, %v1497_v19 }
 0x13c   : > { %v1021_v26 = vadd.f32 %v1607_v7, %v916_v5  ;;  %v1608_v51 = vpop.f32.mrb[12].mxu1  ;;  %v1556_v11 = vpop.f32.mrb[15].mxu0 }
 0x13d   : > { %v1609_v29 = vpop.f32.mrb[13].mxu1  ;;  %v1557_v10 = vadd.f32 %v1556_v11, %v1555_v9 }
 0x13e   : > { %v1610_v12 = vadd.f32 %v1609_v29, %v1608_v51 }
 0x13f   : > { %v1646_v54 = vpop.f32.mrb[16].mxu0  ;;  %v926_v14 = vadd.f32 %v1557_v10, %v1497_v19 }
 0x140   : > { %v1026_v13 = vadd.f32 %v1610_v12, %v921_v8  ;;  %v1647_v16 = vpop.f32.mrb[17].mxu0 }
 0x141   : > { %v1611_v15 = vpop.f32.mrb[14].mxu1  ;;  %v1648_v18 = vadd.f32 %v1647_v16, %v1646_v54 }
 0x142   : > { %v1612_v17 = vpop.f32.mrb[15].mxu1 }
 0x143   : > { %v1613_v37 = vadd.f32 %v1612_v17, %v1611_v15  ;;  %v1101_v20 = vadd.f32 %v1648_v18, %v996_v25  ;;  %v1649_v21 = vpop.f32.mrb[18].mxu0 }
 0x144   : > { %v1650_v23 = vpop.f32.mrb[19].mxu0 }
 0x145   : > { %v1031_v2 = vadd.f32 %v1613_v37, %v926_v14  ;;  %v1702_v22 = vpop.f32.mrb[16].mxu1  ;;  %v1651_v27 = vadd.f32 %v1650_v23, %v1649_v21 }
 0x146   : > { %v1703_v24 = vpop.f32.mrb[17].mxu1 }
 0x147   : > { %v1704_v30 = vadd.f32 %v1703_v24, %v1702_v22  ;;  %v1106_v31 = vadd.f32 %v1651_v27, %v1001_v36  ;;  %v1652_v32 = vpop.f32.mrb[20].mxu0 }
 0x148   : > { %v1653_v34 = vpop.f32.mrb[21].mxu0 }
 0x149   : > { %v1705_v33 = vpop.f32.mrb[18].mxu1  ;;  %v1206_v35 = vadd.f32 %v1704_v30, %v1101_v20  ;;  %v1654_v19 = vadd.f32 %v1653_v34, %v1652_v32 }
 0x14a   : > { %v1706_v38 = vpop.f32.mrb[19].mxu1 }
 0x14b   : > { %v1707_v39 = vadd.f32 %v1706_v38, %v1705_v33  ;;  %v1111_v40 = vadd.f32 %v1654_v19, %v1006_v45  ;;  %v1655_v41 = vpop.f32.mrb[22].mxu0 }
 0x14c   : > { %v1656_v43 = vpop.f32.mrb[23].mxu0 }
 0x14d   : > { %v1708_v42 = vpop.f32.mrb[20].mxu1  ;;  %v1211_v25 = vadd.f32 %v1707_v39, %v1106_v31  ;;  %v1657_v46 = vadd.f32 %v1656_v43, %v1655_v41 }
 0x14e   : > { %v1709_v44 = vpop.f32.mrb[21].mxu1 }
 0x14f   : > { %v1710_v47 = vadd.f32 %v1709_v44, %v1708_v42  ;;  %v1116_v48 = vadd.f32 %v1657_v46, %v1011_v57  ;;  %v1658_v50 = vpop.f32.mrb[24].mxu0 }
 0x150   : > { %v1659_v36 = vpop.f32.mrb[25].mxu0 }
 0x151   : > { %v1711_v52 = vpop.f32.mrb[22].mxu1  ;;  %v1216_v53 = vadd.f32 %v1710_v47, %v1111_v40  ;;  %v1660_v56 = vadd.f32 %v1659_v36, %v1658_v50 }
 0x152   : > { %v1712_v55 = vpop.f32.mrb[23].mxu1 }
 0x153   : > { %v1713_v58 = vadd.f32 %v1712_v55, %v1711_v52  ;;  %v1121_v59 = vadd.f32 %v1660_v56, %v1016_v60  ;;  %v1661_v61 = vpop.f32.mrb[26].mxu0 }
 0x154   : > { %v1662_v62 = vpop.f32.mrb[27].mxu0 }
 0x155   : > { %v1714_v45 = vpop.f32.mrb[24].mxu1  ;;  %v1221_v63 = vadd.f32 %v1713_v58, %v1116_v48  ;;  %v1663_v1 = vadd.f32 %v1662_v62, %v1661_v61 }
 0x156   : > { %v1715_v0 = vpop.f32.mrb[25].mxu1 }
 0x157   : > { %v1716_v5 = vadd.f32 %v1715_v0, %v1714_v45  ;;  %v1126_v3 = vadd.f32 %v1663_v1, %v1021_v26  ;;  %v1664_v57 = vpop.f32.mrb[28].mxu0 }
 0x158   : > { %v1665_v28 = vpop.f32.mrb[29].mxu0 }
 0x159   : > { %v1717_v4 = vpop.f32.mrb[26].mxu1  ;;  %v1226_v6 = vadd.f32 %v1716_v5, %v1121_v59  ;;  %v1666_v60 = vadd.f32 %v1665_v28, %v1664_v57 }
 0x15a   : > { %v1718_v7 = vpop.f32.mrb[27].mxu1 }
 0x15b   : > { %v1719_v49 = vadd.f32 %v1718_v7, %v1717_v4  ;;  %v1131_v9 = vadd.f32 %v1666_v60, %v1026_v13  ;;  %v1667_v8 = vpop.f32.mrb[30].mxu0 }
 0x15c   : > { %v1668_v11 = vpop.f32.mrb[31].mxu0 }
 0x15d   : > { %v1720_v51 = vpop.f32.mrb[28].mxu1  ;;  %v1231_v29 = vadd.f32 %v1719_v49, %v1126_v3  ;;  %v1669_v12 = vadd.f32 %v1668_v11, %v1667_v8 }
 0x15e   : > { %v1721_v10 = vpop.f32.mrb[29].mxu1 }
 0x15f   : > { %v1722_v26 = vadd.f32 %v1721_v10, %v1720_v51  ;;  %v1136_v54 = vadd.f32 %v1669_v12, %v1031_v2 }
 0x160   : > { %v1784_v14 = vpop.f32.mrb[32].mxu0 }
 0x161   : > { %v1723_v15 = vpop.f32.mrb[30].mxu1  ;;  %v1316_v16 = vadd.f32 %v1784_v14, %v1211_v25  ;;  %v1310_v13 = vpop.f32.mrb[33].mxu0  ;;  %v1236_v17 = vadd.f32 %v1722_v26, %v1131_v9 }
 0x162   : > { %v1724_v18 = vpop.f32.mrb[31].mxu1  ;;  %v1311_v37 = vadd.f32 %v1310_v13, %v1206_v35 }
 0x163   : > { %v1725_v20 = vadd.f32 %v1724_v18, %v1723_v15  ;;  %1350 = vst [vmem:[%s2743_s17 + $0x8] sm:$0xff] %v1316_v16  ;;  %v1372_v21 = vmul.f32 %v1316_v16, %v1316_v16 }
 0x164   : > { %1349 = vst [vmem:[%s2743_s17] sm:$0xff] %v1311_v37  ;;  %v1357_v2 = vadd.f32 %v1316_v16, %v1311_v37  ;;  %v1371_v22 = vmul.f32 %v1311_v37, %v1311_v37  ;;  %v1787_v23 = vpop.f32.mrb[34].mxu0 }
 0x165   : > { %v1790_v24 = vpop.f32.mrb[32].mxu1  ;;  %v1326_v27 = vadd.f32 %v1787_v23, %v1221_v63  ;;  %v1241_v30 = vadd.f32 %v1725_v20, %v1136_v54  ;;  %v1320_v31 = vpop.f32.mrb[35].mxu0 }
 0x166   : > { %v1336_v32 = vadd.f32 %v1790_v24, %v1231_v29  ;;  %v1379_v33 = vadd.f32 %v1372_v21, %v1371_v22  ;;  %v1330_v34 = vpop.f32.mrb[33].mxu1  ;;  %v1321_v38 = vadd.f32 %v1320_v31, %v1216_v53 }
 0x167   : > { %v1331_v35 = vadd.f32 %v1330_v34, %v1226_v6  ;;  %1352 = vst [vmem:[%s2743_s17 + $0x18] sm:$0xff] %v1326_v27  ;;  %v1374_v41 = vmul.f32 %v1326_v27, %v1326_v27 }
 0x168   : > { %1354 = vst [vmem:[%s2743_s17 + $0x28] sm:$0xff] %v1336_v32  ;;  %1351 = vst [vmem:[%s2743_s17 + $0x10] sm:$0xff] %v1321_v38  ;;  %v1358_v19 = vadd.f32 %v1357_v2, %v1321_v38  ;;  %v1373_v39 = vmul.f32 %v1321_v38, %v1321_v38  ;;  %v1376_v52 = vmul.f32 %v1336_v32, %v1336_v32 }
 0x169   : > { %1353 = vst [vmem:[%s2743_s17 + $0x20] sm:$0xff] %v1331_v35  ;;  %v1793_v40 = vpop.f32.mrb[34].mxu1  ;;  %v1375_v47 = vmul.f32 %v1331_v35, %v1331_v35 }
 0x16a   : > { %v1346_v42 = vadd.f32 %v1793_v40, %v1241_v30  ;;  %v1359_v43 = vadd.f32 %v1358_v19, %v1326_v27  ;;  %v1380_v25 = vadd.f32 %v1379_v33, %v1373_v39  ;;  %v1340_v44 = vpop.f32.mrb[35].mxu1 }
 0x16b   : > { %v1341_v46 = vadd.f32 %v1340_v44, %v1236_v17 }
 0x16c   : > { %1356 = vst [vmem:[%s2743_s17 + $0x38] sm:$0xff] %v1346_v42  ;;  %v1381_v48 = vadd.f32 %v1380_v25, %v1374_v41  ;;  %v1360_v50 = vadd.f32 %v1359_v43, %v1331_v35  ;;  %v1378_v59 = vmul.f32 %v1346_v42, %v1346_v42 }
 0x16d   : > { %1355 = vst [vmem:[%s2743_s17 + $0x30] sm:$0xff] %v1341_v46  ;;  %v1377_v56 = vmul.f32 %v1341_v46, %v1341_v46 }
 0x16e   : > { %v1361_v36 = vadd.f32 %v1360_v50, %v1336_v32  ;;  %v1382_v53 = vadd.f32 %v1381_v48, %v1375_v47 }
 0x170   : > { %v1362_v55 = vadd.f32 %v1361_v36, %v1341_v46  ;;  %v1383_v58 = vadd.f32 %v1382_v53, %v1376_v52 }
 0x172   : > { %v1363_v61 = vadd.f32 %v1362_v55, %v1346_v42  ;;  %v1384_v45 = vadd.f32 %v1383_v58, %v1377_v56 }
 0x174   : > { %v1364_v62 = vrot.slane %v1363_v61, 4  ;;  %v1385_v63 = vadd.f32 %v1384_v45, %v1378_v59 }
 0x176   : > { %v1365_v0 = vadd.f32 %v1364_v62, %v1363_v61  ;;  %v1386_v1 = vrot.slane %v1385_v63, 4 }
 0x178   : > { %v1366_v5 = vrot.slane %v1365_v0, 2  ;;  %v1387_v3 = vadd.f32 %v1386_v1, %v1385_v63 }
 0x17a   : > { %v1367_v57 = vadd.f32 %v1366_v5, %v1365_v0  ;;  %v1388_v4 = vrot.slane %v1387_v3, 2 }
 0x17c   : > { %v1368_v28 = vrot.slane %v1367_v57, 1  ;;  %v1389_v6 = vadd.f32 %v1388_v4, %v1387_v3 }
 0x17e   : > { %v1369_v7 = vadd.f32 %v1368_v28, %v1367_v57  ;;  %v1390_v60 = vrot.slane %v1389_v6, 1 }
 0x180   : > { %1370 = vst [vmem:[%s367_s25] sm:$0x1] %v1369_v7  ;;  %v1391_v49 = vadd.f32 %v1390_v60, %v1389_v6 }
 0x182   : > { %1392 = vst [vmem:[%s367_s25 + $0x1] sm:$0x1] %v1391_v49 }
 0x183 PF: > { %p12_p9 = scmp.ge.s32.totalorder %s2062_s19, 4   ;;  %s2772_s15 = smov %s2013_s16 }
 0x184   : > { %s2773_s16 = smov %s2071_s22  ;;  %s2774_s17 = smov %s2062_s19 }
 0x185   :  { %14 = sbr.rel (!%p12_p9) target bundleno = 2 (0x2), region = 120 }

</bundles_post_ra>
